<compile_context>
chip_gen: v5e
topology: v5e:2x2
jax: 0.10.0
libtpu: 0.0.40
codegen_flags: <defaults>
</compile_context>

<pallas_src>
import functools

import numpy as np

import jax
import jax.numpy as jnp
from jax.experimental import pallas as pl
from jax.experimental.pallas import tpu as pltpu

BN_EPS = 1e-5

# (hin, win, cin, cout) per layer, fixed by the module (32x32x3 input).
ENC_CFG = ((32, 32, 3, 8), (16, 16, 8, 16), (8, 8, 16, 32))
DEC_CFG = ((4, 4, 32, 16), (8, 8, 16, 8), (16, 16, 8, 3))

# Row layout of the packed small-parameter array (one row per (1, <=128) param).
_SM_ENC = 0      # rows 0..8 : encoder (conv bias, BN gamma, BN beta) x 3 layers
_SM_BMU = 9      # row 9     : mu Linear bias        (width = latent)
_SM_BLV = 10     # row 10    : logvar Linear bias    (width = latent)
_SM_BDEF = 11    # rows 11..14: deflatten bias, one 128-wide row per output h index
_SM_DEC = 15     # rows 15..23: decoder (convT bias, BN gamma, BN beta) x 3 layers
_SM_ROWS = 24

PARAM_ORDER = (
    ["enc_w0", "enc_w1", "enc_w2", "w_stack", "w_tall",
     "dec_w0", "dec_w1", "dec_w2", "smalls"]
)


# ------------------------------ fused kernel --------------------------------

def _vae_kernel(x_ref, eps_ref, ew0, ew1, ew2, wstk_ref, wtall_ref,
                dw0, dw1, dw2, sm_ref,
                stat_out, img_out, *, batch, latent):
    f32 = jnp.float32
    bf16 = jnp.bfloat16

    def mm(a, b):
        return jnp.dot(a, b, preferred_element_type=f32)

    def iota(shape, dim):
        return jax.lax.broadcasted_iota(jnp.int32, shape, dim)

    def fdiv(x, d):
        # exact floor(x / d) for small non-negative integer-valued x, as f32
        return jnp.floor((x.astype(f32) + 0.5) * (1.0 / d))

    def fmod(x, d):
        return x.astype(f32) - d * fdiv(x, d)

    def sel(rows, cols, mult, offset, by_col):
        # 0/1 selection / scatter matrix built from iota (VPU only, no HBM input)
        r = iota((rows, cols), 0)
        c = iota((rows, cols), 1)
        if by_col:                                   # S[r, c] = (c == mult*r + off)
            return (c == mult * r + offset).astype(f32)
        return (r == mult * c + offset).astype(f32)  # S[r, c] = (r == mult*c + off)

    def batchnorm(y, cout, gamma, beta):
        # torch train-mode BatchNorm2d on the (B*H, W*C) layout.
        rows, n = y.shape
        inv_cnt = 1.0 / (rows * (n // cout))
        # per-channel broadcast map A[i, j] = (i % cout == j % cout), built in-kernel
        amap = (fmod(iota((n, n), 0), cout) == fmod(iota((n, n), 1), cout)).astype(f32)
        sum1 = jnp.sum(y, axis=0, keepdims=True)
        sum2 = jnp.sum(y * y, axis=0, keepdims=True)
        # fused stat matmul: sum lives in rows [0:8), sum-of-squares in rows [8:16)
        ri = iota((16, n), 0)
        st = jnp.where(ri < 8, jnp.broadcast_to(sum1, (16, n)),
                       jnp.broadcast_to(sum2, (16, n)))
        bc = mm(st, amap) * inv_cnt
        mean_bc = bc[0:1, :]
        var_bc = bc[8:9, :] - mean_bc * mean_bc       # biased variance (train mode)
        return (y - mean_bc) * jax.lax.rsqrt(var_bc + BN_EPS) * gamma + beta

    # ---------------- encoder: 3 x [Conv(k=2,s=2) + BN + ReLU] ----------------
    h = x_ref[...]                                    # (B*32, 32*3) f32
    for l, (hin, win, cin, cout) in enumerate(ENC_CFG):
        w_ref = (ew0, ew1, ew2)[l]                    # (2, Win*Cin, Wout*Cout) bf16
        hout, n_out = hin // 2, (win // 2) * cout
        hb = h.astype(bf16)
        s0 = sel(batch * hout, batch * hin, 2, 0, True).astype(bf16)   # even rows
        s1 = sel(batch * hout, batch * hin, 2, 1, True).astype(bf16)   # odd rows
        p0 = mm(s0, hb).astype(bf16)
        p1 = mm(s1, hb).astype(bf16)
        y = (mm(p0, w_ref[0]) + mm(p1, w_ref[1])
             + sm_ref[3 * l:3 * l + 1, :n_out])                        # conv bias
        y = batchnorm(y, cout,
                      sm_ref[3 * l + 1:3 * l + 2, :n_out],             # gamma
                      sm_ref[3 * l + 2:3 * l + 3, :n_out])             # beta
        h = jnp.maximum(y, 0.0)                                        # ReLU

    # -------- flatten + (mu | logvar) Linear, collapsed into one main matmul --------
    L2 = 2 * latent
    rows = 4 * batch
    hb = h.astype(bf16)                               # (B*4, 128)
    t = mm(hb, wstk_ref[...])                         # (B*4, 4*2L) f32
    # keep only the column block whose hh matches this row's hh = row % 4
    keep = (fmod(iota((rows, 4 * L2), 0), 4)
            == fdiv(iota((rows, 4 * L2), 1), L2)).astype(f32)
    t = t * keep
    # fold the 4 column blocks down to `latent` columns (mu / logvar separately)
    fold_mu = (fmod(iota((4 * L2, latent), 0), L2)
               == iota((4 * L2, latent), 1).astype(f32)).astype(f32)
    fold_lv = (fmod(iota((4 * L2, latent), 0), L2)
               == (iota((4 * L2, latent), 1) + latent).astype(f32)).astype(f32)
    # sum the 4 rows (hh) that belong to each batch element
    ssum = (iota((batch, rows), 0).astype(f32)
            == fdiv(iota((batch, rows), 1), 4)).astype(f32)
    mean = mm(ssum, mm(t, fold_mu)) + sm_ref[_SM_BMU:_SM_BMU + 1, :latent]
    logvar = mm(ssum, mm(t, fold_lv)) + sm_ref[_SM_BLV:_SM_BLV + 1, :latent]
    stat_out[0] = mean
    stat_out[1] = logvar
    z = mean + eps_ref[...] * jnp.exp(0.5 * logvar)   # reparametrization (f32)

    # ------------- deflatten Linear back to the (B*4, 4*32) conv layout -------------
    pexp = (fdiv(iota((rows, batch), 0), 4)
            == iota((rows, batch), 1).astype(f32)).astype(f32)
    zexp = mm(pexp, z)                                # (B*4, latent)
    trep = (iota((latent, 4 * latent), 0).astype(f32)
            == fmod(iota((latent, 4 * latent), 1), latent)).astype(f32)
    zbig = mm(zexp, trep)                             # (B*4, 4*latent): 4 copies
    keep2 = (fmod(iota((rows, 4 * latent), 0), 4)
             == fdiv(iota((rows, 4 * latent), 1), latent)).astype(f32)
    zbig = (zbig * keep2).astype(bf16)                # keep the block for hh = row%4
    p4 = (fmod(iota((rows, 4), 0), 4)
          == iota((rows, 4), 1).astype(f32)).astype(f32)
    h = mm(zbig, wtall_ref[...]) + mm(p4, sm_ref[_SM_BDEF:_SM_BDEF + 4, :])

    # ----------- decoder: 3 x [ConvT(k=2,s=2) + BN + LeakyReLU/Sigmoid] -------------
    for l, (hin, win, cin, cout) in enumerate(DEC_CFG):
        w_ref = (dw0, dw1, dw2)[l]                    # (2, Win*Cin, 2*Win*Cout) bf16
        hout, n_out = 2 * hin, 2 * win * cout
        base = _SM_DEC + 3 * l
        hb = h.astype(bf16)
        t0 = mm(hb, w_ref[0]).astype(bf16)            # kh = 0 contribution
        t1 = mm(hb, w_ref[1]).astype(bf16)            # kh = 1 contribution
        r0 = sel(batch * hout, batch * hin, 2, 0, False).astype(bf16)  # scatter even
        r1 = sel(batch * hout, batch * hin, 2, 1, False).astype(bf16)  # scatter odd
        y = mm(r0, t0) + mm(r1, t1) + sm_ref[base:base + 1, :n_out]
        y = batchnorm(y, cout,
                      sm_ref[base + 1:base + 2, :n_out],
                      sm_ref[base + 2:base + 3, :n_out])
        if l < 2:
            h = jnp.where(y >= 0.0, y, 0.2 * y)       # LeakyReLU(0.2)
        else:
            h = 1.0 / (1.0 + jnp.exp(-y))             # Sigmoid

    img_out[...] = h                                  # (B*32, 32*3)


# --------------------- host-side parameter preparation ----------------------

def _build_enc_weight(wc, win, cin, cout):
    """Conv2d(k=2,s=2) weight (kh,kw,cin,cout) -> (2, Win*Cin, Wout*Cout)."""
    wout = win // 2
    m = np.zeros((2, win * cin, wout * cout), np.float32)
    for kh in range(2):
        for j in range(wout):
            for kw in range(2):
                w = 2 * j + kw
                m[kh, w * cin:(w + 1) * cin, j * cout:(j + 1) * cout] = wc[kh, kw]
    return m


def _build_dec_weight(wt, win, cin, cout):
    """ConvTranspose2d(k=2,s=2) weight (cin,cout,kh,kw) -> (2, Win*Cin, 2*Win*Cout)."""
    wout = 2 * win
    m = np.zeros((2, win * cin, wout * cout), np.float32)
    for kh in range(2):
        for j in range(win):
            for kw in range(2):
                jo = 2 * j + kw
                m[kh, j * cin:(j + 1) * cin, jo * cout:(jo + 1) * cout] = wt[:, :, kh, kw]
    return m


def init_params(latent_dim, key):
    assert latent_dim <= 64
    ks = jax.random.split(key, 20)

    def rnd(k, shape, fan_in):
        return np.asarray(jax.random.normal(k, shape, jnp.float32)) / np.sqrt(np.float32(fan_in))

    p = {}
    smalls = np.zeros((_SM_ROWS, 128), np.float32)
    ki = 0

    for l, (hin, win, cin, cout) in enumerate(ENC_CFG):
        wc = rnd(ks[ki], (2, 2, cin, cout), 4 * cin); ki += 1       # (kh,kw,ci,co)
        p[f"enc_w{l}"] = jnp.asarray(_build_enc_weight(wc, win, cin, cout),
                                     dtype=jnp.bfloat16)
        n_out = (win // 2) * cout
        smalls[3 * l, :n_out] = np.tile(rnd(ks[ki], (cout,), 4 * cin), win // 2); ki += 1
        smalls[3 * l + 1, :n_out] = 1.0                              # BN gamma (beta=0)

    L2 = 2 * latent_dim
    wmu = rnd(ks[ki], (512, latent_dim), 512); ki += 1
    wlv = rnd(ks[ki], (512, latent_dim), 512); ki += 1
    wml = np.concatenate([wmu, wlv], axis=1)                         # (512, 2L)
    w_stack = np.zeros((128, 4 * L2), np.float32)
    for hh in range(4):
        w_stack[:, hh * L2:(hh + 1) * L2] = wml[hh * 128:(hh + 1) * 128, :]
    p["w_stack"] = jnp.asarray(w_stack, dtype=jnp.bfloat16)
    smalls[_SM_BMU, :latent_dim] = rnd(ks[ki], (latent_dim,), 512); ki += 1
    smalls[_SM_BLV, :latent_dim] = rnd(ks[ki], (latent_dim,), 512); ki += 1

    wdef = rnd(ks[ki], (latent_dim, 512), latent_dim); ki += 1
    bdef = rnd(ks[ki], (512,), latent_dim); ki += 1
    w_tall = np.zeros((4 * latent_dim, 128), np.float32)
    for hh in range(4):
        w_tall[hh * latent_dim:(hh + 1) * latent_dim, :] = wdef[:, hh * 128:(hh + 1) * 128]
        smalls[_SM_BDEF + hh, :] = bdef[hh * 128:(hh + 1) * 128]
    p["w_tall"] = jnp.asarray(w_tall, dtype=jnp.bfloat16)

    for l, (hin, win, cin, cout) in enumerate(DEC_CFG):
        wt = rnd(ks[ki], (cin, cout, 2, 2), cin); ki += 1            # (ci,co,kh,kw)
        p[f"dec_w{l}"] = jnp.asarray(_build_dec_weight(wt, win, cin, cout),
                                     dtype=jnp.bfloat16)
        n_out = 2 * win * cout
        base = _SM_DEC + 3 * l
        smalls[base, :n_out] = np.tile(rnd(ks[ki], (cout,), cin), 2 * win); ki += 1
        smalls[base + 1, :n_out] = 1.0                               # BN gamma (beta=0)

    p["smalls"] = jnp.asarray(smalls)
    return p


# ---------------------------------- forward ----------------------------------

def _fullspec(shape):
    nd = len(shape)
    return pl.BlockSpec(shape, lambda i, nd=nd: (0,) * nd)


@functools.partial(jax.jit, static_argnames=("latent_dim",))
def vae_forward(x_nchw, params, eps, *, latent_dim):
    B = x_nchw.shape[0]
    # NCHW -> NHWC -> 2-D (B*H, W*C) layout used throughout the kernel.
    x2d = jnp.transpose(x_nchw, (0, 2, 3, 1)).reshape(B * 32, 32 * 3).astype(jnp.float32)

    args = [x2d, eps.astype(jnp.float32)] + [params[k] for k in PARAM_ORDER]

    out_shapes = (
        jax.ShapeDtypeStruct((2, B, latent_dim), jnp.float32),      # [mean; logvar]
        jax.ShapeDtypeStruct((B * 32, 32 * 3), jnp.float32),        # image (B*H, W*C)
    )
    in_bytes = sum(int(np.prod(a.shape)) * a.dtype.itemsize for a in args)
    out_bytes = sum(int(np.prod(s.shape)) * 4 for s in out_shapes)

    kernel = functools.partial(_vae_kernel, batch=B, latent=latent_dim)

    stats, img2d = pl.pallas_call(
        kernel,
        out_shape=out_shapes,
        grid=(1,),
        in_specs=[_fullspec(a.shape) for a in args],
        out_specs=tuple(_fullspec(s.shape) for s in out_shapes),
        compiler_params=pltpu.CompilerParams(
            dimension_semantics=("arbitrary",),
        ),
        cost_estimate=pl.CostEstimate(
            flops=12_000_000, transcendentals=8_192,
            bytes_accessed=int(in_bytes + out_bytes)),
    )(*args)

    mean = stats[0]
    logvar = stats[1]
    img = jnp.transpose(img2d.reshape(B, 32, 32, 3), (0, 3, 1, 2))   # back to NCHW
    return img, mean, logvar


# ------------------------------------ main ------------------------------------

if __name__ == "__main__":
    LATENT_DIM = 16
    B = 2

    key = jax.random.PRNGKey(0)
    k_x, k_params, k_noise = jax.random.split(key, 3)

    x = jax.random.uniform(k_x, (B, 3, 32, 32), jnp.float32)   # NCHW, like PyTorch
    params = init_params(LATENT_DIM, k_params)
    eps = jax.random.normal(k_noise, (B, LATENT_DIM), jnp.float32)

    img, mean, logvar = vae_forward(x, params, eps, latent_dim=LATENT_DIM)
    jax.block_until_ready((img, mean, logvar))

    assert img.shape == (B, 3, 32, 32)
    assert mean.shape == (B, LATENT_DIM)
    assert logvar.shape == (B, LATENT_DIM)
    assert bool(jnp.isfinite(img).all())
    assert bool(jnp.isfinite(mean).all())
    assert bool(jnp.isfinite(logvar).all())
    assert bool(((img >= 0.0) & (img <= 1.0)).all())            # sigmoid range
    print("KERNEL_OK")
</pallas_src>

<mosaic_0001>
module attributes {stable_mosaic.version = 11 : i64} {
  func.func @_vae_kernel(%arg0: i32, %arg1: memref<64x96xf32, #tpu.memory_space<vmem>>, %arg2: memref<2x16xf32, #tpu.memory_space<vmem>>, %arg3: memref<2x96x128xbf16, #tpu.memory_space<vmem>>, %arg4: memref<2x128x128xbf16, #tpu.memory_space<vmem>>, %arg5: memref<2x128x128xbf16, #tpu.memory_space<vmem>>, %arg6: memref<128x128xbf16, #tpu.memory_space<vmem>>, %arg7: memref<64x128xbf16, #tpu.memory_space<vmem>>, %arg8: memref<2x128x128xbf16, #tpu.memory_space<vmem>>, %arg9: memref<2x128x128xbf16, #tpu.memory_space<vmem>>, %arg10: memref<2x128x96xbf16, #tpu.memory_space<vmem>>, %arg11: memref<24x128xf32, #tpu.memory_space<vmem>>, %arg12: memref<2x2x16xf32, #tpu.memory_space<vmem>>, %arg13: memref<64x96xf32, #tpu.memory_space<vmem>>) attributes {dimension_semantics = [#tpu.dimension_semantics<arbitrary>], iteration_bounds = array<i64: 1>, scalar_prefetch = 0 : i64, scratch_operands = 0 : i64, tpu.core_type = #tpu.core_type<tc>, window_params = [{pipeline_mode = #tpu.pipeline_mode<synchronous>, transform_indices = @transform_0, window_bounds = array<i64: 64, 96>}, {pipeline_mode = #tpu.pipeline_mode<synchronous>, transform_indices = @transform_1, window_bounds = array<i64: 2, 16>}, {pipeline_mode = #tpu.pipeline_mode<synchronous>, transform_indices = @transform_2, window_bounds = array<i64: 2, 96, 128>}, {pipeline_mode = #tpu.pipeline_mode<synchronous>, transform_indices = @transform_3, window_bounds = array<i64: 2, 128, 128>}, {pipeline_mode = #tpu.pipeline_mode<synchronous>, transform_indices = @transform_4, window_bounds = array<i64: 2, 128, 128>}, {pipeline_mode = #tpu.pipeline_mode<synchronous>, transform_indices = @transform_5, window_bounds = array<i64: 128, 128>}, {pipeline_mode = #tpu.pipeline_mode<synchronous>, transform_indices = @transform_6, window_bounds = array<i64: 64, 128>}, {pipeline_mode = #tpu.pipeline_mode<synchronous>, transform_indices = @transform_7, window_bounds = array<i64: 2, 128, 128>}, {pipeline_mode = #tpu.pipeline_mode<synchronous>, transform_indices = @transform_8, window_bounds = array<i64: 2, 128, 128>}, {pipeline_mode = #tpu.pipeline_mode<synchronous>, transform_indices = @transform_9, window_bounds = array<i64: 2, 128, 96>}, {pipeline_mode = #tpu.pipeline_mode<synchronous>, transform_indices = @transform_10, window_bounds = array<i64: 24, 128>}, {pipeline_mode = #tpu.pipeline_mode<synchronous>, transform_indices = @transform_11, window_bounds = array<i64: 2, 2, 16>}, {pipeline_mode = #tpu.pipeline_mode<synchronous>, transform_indices = @transform_12, window_bounds = array<i64: 64, 96>}]} {
    %c0 = arith.constant 0 : index
    %c0_0 = arith.constant 0 : index
    %0 = vector.load %arg1[%c0, %c0_0] : memref<64x96xf32, #tpu.memory_space<vmem>>, vector<64x96xf32>
    %1 = arith.truncf %0 : vector<64x96xf32> to vector<64x96xbf16>
    %2 = tpu.iota {dimensions = array<i32: 0>} : vector<32x64xi32>
    %3 = tpu.iota {dimensions = array<i32: 1>} : vector<32x64xi32>
    %c2_i32 = arith.constant 2 : i32
    %4 = vector.broadcast %c2_i32 : i32 to vector<32x64xi32>
    %5 = arith.muli %4, %2 : vector<32x64xi32>
    %c0_i32 = arith.constant 0 : i32
    %6 = vector.broadcast %c0_i32 : i32 to vector<32x64xi32>
    %7 = arith.addi %5, %6 : vector<32x64xi32>
    %8 = arith.cmpi eq, %3, %7 : vector<32x64xi32>
    %9 = arith.extui %8 : vector<32x64xi1> to vector<32x64xi32>
    %10 = arith.sitofp %9 : vector<32x64xi32> to vector<32x64xf32>
    %11 = arith.truncf %10 : vector<32x64xf32> to vector<32x64xbf16>
    %12 = tpu.iota {dimensions = array<i32: 0>} : vector<32x64xi32>
    %13 = tpu.iota {dimensions = array<i32: 1>} : vector<32x64xi32>
    %c2_i32_1 = arith.constant 2 : i32
    %14 = vector.broadcast %c2_i32_1 : i32 to vector<32x64xi32>
    %15 = arith.muli %14, %12 : vector<32x64xi32>
    %c1_i32 = arith.constant 1 : i32
    %16 = vector.broadcast %c1_i32 : i32 to vector<32x64xi32>
    %17 = arith.addi %15, %16 : vector<32x64xi32>
    %18 = arith.cmpi eq, %13, %17 : vector<32x64xi32>
    %19 = arith.extui %18 : vector<32x64xi1> to vector<32x64xi32>
    %20 = arith.sitofp %19 : vector<32x64xi32> to vector<32x64xf32>
    %21 = arith.truncf %20 : vector<32x64xf32> to vector<32x64xbf16>
    %cst = arith.constant dense<0.000000e+00> : vector<32x96xf32>
    %22 = tpu.matmul %11, %1, %cst {dimension_numbers = #tpu.dot_dimension_numbers<[1], [0], [0], [1], [0, 0, 1, 1], [], []>} : vector<32x64xbf16>, vector<64x96xbf16>, vector<32x96xf32> -> vector<32x96xf32>
    %23 = arith.truncf %22 : vector<32x96xf32> to vector<32x96xbf16>
    %cst_2 = arith.constant dense<0.000000e+00> : vector<32x96xf32>
    %24 = tpu.matmul %21, %1, %cst_2 {dimension_numbers = #tpu.dot_dimension_numbers<[1], [0], [0], [1], [0, 0, 1, 1], [], []>} : vector<32x64xbf16>, vector<64x96xbf16>, vector<32x96xf32> -> vector<32x96xf32>
    %25 = arith.truncf %24 : vector<32x96xf32> to vector<32x96xbf16>
    %c0_3 = arith.constant 0 : index
    %c0_4 = arith.constant 0 : index
    %c0_5 = arith.constant 0 : index
    %26 = vector.load %arg3[%c0_3, %c0_4, %c0_5] : memref<2x96x128xbf16, #tpu.memory_space<vmem>>, vector<1x96x128xbf16>
    %27 = vector.shape_cast %26 : vector<1x96x128xbf16> to vector<96x128xbf16>
    %cst_6 = arith.constant dense<0.000000e+00> : vector<32x128xf32>
    %28 = tpu.matmul %23, %27, %cst_6 {dimension_numbers = #tpu.dot_dimension_numbers<[1], [0], [0], [1], [0, 0, 1, 1], [], []>} : vector<32x96xbf16>, vector<96x128xbf16>, vector<32x128xf32> -> vector<32x128xf32>
    %c1 = arith.constant 1 : index
    %c0_7 = arith.constant 0 : index
    %c0_8 = arith.constant 0 : index
    %29 = vector.load %arg3[%c1, %c0_7, %c0_8] : memref<2x96x128xbf16, #tpu.memory_space<vmem>>, vector<1x96x128xbf16>
    %30 = vector.shape_cast %29 : vector<1x96x128xbf16> to vector<96x128xbf16>
    %cst_9 = arith.constant dense<0.000000e+00> : vector<32x128xf32>
    %31 = tpu.matmul %25, %30, %cst_9 {dimension_numbers = #tpu.dot_dimension_numbers<[1], [0], [0], [1], [0, 0, 1, 1], [], []>} : vector<32x96xbf16>, vector<96x128xbf16>, vector<32x128xf32> -> vector<32x128xf32>
    %32 = arith.addf %28, %31 : vector<32x128xf32>
    %c0_10 = arith.constant 0 : index
    %c0_11 = arith.constant 0 : index
    %33 = vector.load %arg11[%c0_10, %c0_11] : memref<24x128xf32, #tpu.memory_space<vmem>>, vector<1x128xf32>
    %34 = vector.broadcast %33 : vector<1x128xf32> to vector<32x128xf32>
    %35 = arith.addf %32, %34 : vector<32x128xf32>
    %c1_12 = arith.constant 1 : index
    %c0_13 = arith.constant 0 : index
    %36 = vector.load %arg11[%c1_12, %c0_13] : memref<24x128xf32, #tpu.memory_space<vmem>>, vector<1x128xf32>
    %c2 = arith.constant 2 : index
    %c0_14 = arith.constant 0 : index
    %37 = vector.load %arg11[%c2, %c0_14] : memref<24x128xf32, #tpu.memory_space<vmem>>, vector<1x128xf32>
    %38 = tpu.iota {dimensions = array<i32: 0>} : vector<128x128xi32>
    %39 = arith.sitofp %38 : vector<128x128xi32> to vector<128x128xf32>
    %40 = arith.sitofp %38 : vector<128x128xi32> to vector<128x128xf32>
    %cst_15 = arith.constant 5.000000e-01 : f32
    %41 = vector.broadcast %cst_15 : f32 to vector<128x128xf32>
    %42 = arith.addf %40, %41 : vector<128x128xf32>
    %cst_16 = arith.constant 1.250000e-01 : f32
    %43 = vector.broadcast %cst_16 : f32 to vector<128x128xf32>
    %44 = arith.mulf %42, %43 : vector<128x128xf32>
    %45 = math.floor %44 : vector<128x128xf32>
    %cst_17 = arith.constant 8.000000e+00 : f32
    %46 = vector.broadcast %cst_17 : f32 to vector<128x128xf32>
    %47 = arith.mulf %46, %45 : vector<128x128xf32>
    %48 = arith.subf %39, %47 : vector<128x128xf32>
    %49 = tpu.iota {dimensions = array<i32: 1>} : vector<128x128xi32>
    %50 = arith.sitofp %49 : vector<128x128xi32> to vector<128x128xf32>
    %51 = arith.sitofp %49 : vector<128x128xi32> to vector<128x128xf32>
    %cst_18 = arith.constant 5.000000e-01 : f32
    %52 = vector.broadcast %cst_18 : f32 to vector<128x128xf32>
    %53 = arith.addf %51, %52 : vector<128x128xf32>
    %cst_19 = arith.constant 1.250000e-01 : f32
    %54 = vector.broadcast %cst_19 : f32 to vector<128x128xf32>
    %55 = arith.mulf %53, %54 : vector<128x128xf32>
    %56 = math.floor %55 : vector<128x128xf32>
    %cst_20 = arith.constant 8.000000e+00 : f32
    %57 = vector.broadcast %cst_20 : f32 to vector<128x128xf32>
    %58 = arith.mulf %57, %56 : vector<128x128xf32>
    %59 = arith.subf %50, %58 : vector<128x128xf32>
    %60 = arith.cmpf oeq, %48, %59 : vector<128x128xf32>
    %61 = arith.extui %60 : vector<128x128xi1> to vector<128x128xi32>
    %62 = arith.sitofp %61 : vector<128x128xi32> to vector<128x128xf32>
    %cst_21 = arith.constant dense<0.000000e+00> : vector<128xf32>
    %63 = vector.multi_reduction <add>, %35, %cst_21 [0] : vector<32x128xf32> to vector<128xf32>
    %64 = vector.shape_cast %63 : vector<128xf32> to vector<1x128xf32>
    %65 = arith.mulf %35, %35 : vector<32x128xf32>
    %cst_22 = arith.constant dense<0.000000e+00> : vector<128xf32>
    %66 = vector.multi_reduction <add>, %65, %cst_22 [0] : vector<32x128xf32> to vector<128xf32>
    %67 = vector.shape_cast %66 : vector<128xf32> to vector<1x128xf32>
    %68 = tpu.iota {dimensions = array<i32: 0>} : vector<16x128xi32>
    %c8_i32 = arith.constant 8 : i32
    %69 = vector.broadcast %c8_i32 : i32 to vector<16x128xi32>
    %70 = arith.cmpi slt, %68, %69 : vector<16x128xi32>
    %71 = vector.shape_cast %64 : vector<1x128xf32> to vector<1x128xf32>
    %72 = vector.broadcast %71 : vector<1x128xf32> to vector<16x128xf32>
    %73 = vector.shape_cast %67 : vector<1x128xf32> to vector<1x128xf32>
    %74 = vector.broadcast %73 : vector<1x128xf32> to vector<16x128xf32>
    %75 = arith.select %70, %72, %74 : vector<16x128xi1>, vector<16x128xf32>
    %cst_23 = arith.constant dense<0.000000e+00> : vector<16x128xf32>
    %76 = tpu.matmul %75, %62, %cst_23 {dimension_numbers = #tpu.dot_dimension_numbers<[1], [0], [0], [1], [0, 0, 1, 1], [], []>} : vector<16x128xf32>, vector<128x128xf32>, vector<16x128xf32> -> vector<16x128xf32>
    %cst_24 = arith.constant 0.001953125 : f32
    %77 = vector.broadcast %cst_24 : f32 to vector<16x128xf32>
    %78 = arith.mulf %76, %77 : vector<16x128xf32>
    %79 = vector.extract_strided_slice %78 {offsets = [0, 0], sizes = [1, 128], strides = [1, 1]} : vector<16x128xf32> to vector<1x128xf32>
    %80 = vector.extract_strided_slice %78 {offsets = [8, 0], sizes = [1, 128], strides = [1, 1]} : vector<16x128xf32> to vector<1x128xf32>
    %81 = arith.mulf %79, %79 : vector<1x128xf32>
    %82 = arith.subf %80, %81 : vector<1x128xf32>
    %83 = vector.broadcast %79 : vector<1x128xf32> to vector<32x128xf32>
    %84 = arith.subf %35, %83 : vector<32x128xf32>
    %cst_25 = arith.constant 9.99999974E-6 : f32
    %85 = vector.broadcast %cst_25 : f32 to vector<1x128xf32>
    %86 = arith.addf %82, %85 : vector<1x128xf32>
    %87 = math.rsqrt %86 : vector<1x128xf32>
    %88 = vector.broadcast %87 : vector<1x128xf32> to vector<32x128xf32>
    %89 = arith.mulf %84, %88 : vector<32x128xf32>
    %90 = vector.broadcast %36 : vector<1x128xf32> to vector<32x128xf32>
    %91 = arith.mulf %89, %90 : vector<32x128xf32>
    %92 = vector.broadcast %37 : vector<1x128xf32> to vector<32x128xf32>
    %93 = arith.addf %91, %92 : vector<32x128xf32>
    %cst_26 = arith.constant 0.000000e+00 : f32
    %94 = vector.broadcast %cst_26 : f32 to vector<32x128xf32>
    %95 = arith.maximumf %93, %94 : vector<32x128xf32>
    %96 = arith.truncf %95 : vector<32x128xf32> to vector<32x128xbf16>
    %97 = tpu.iota {dimensions = array<i32: 0>} : vector<16x32xi32>
    %98 = tpu.iota {dimensions = array<i32: 1>} : vector<16x32xi32>
    %c2_i32_27 = arith.constant 2 : i32
    %99 = vector.broadcast %c2_i32_27 : i32 to vector<16x32xi32>
    %100 = arith.muli %99, %97 : vector<16x32xi32>
    %c0_i32_28 = arith.constant 0 : i32
    %101 = vector.broadcast %c0_i32_28 : i32 to vector<16x32xi32>
    %102 = arith.addi %100, %101 : vector<16x32xi32>
    %103 = arith.cmpi eq, %98, %102 : vector<16x32xi32>
    %104 = arith.extui %103 : vector<16x32xi1> to vector<16x32xi32>
    %105 = arith.sitofp %104 : vector<16x32xi32> to vector<16x32xf32>
    %106 = arith.truncf %105 : vector<16x32xf32> to vector<16x32xbf16>
    %107 = tpu.iota {dimensions = array<i32: 0>} : vector<16x32xi32>
    %108 = tpu.iota {dimensions = array<i32: 1>} : vector<16x32xi32>
    %c2_i32_29 = arith.constant 2 : i32
    %109 = vector.broadcast %c2_i32_29 : i32 to vector<16x32xi32>
    %110 = arith.muli %109, %107 : vector<16x32xi32>
    %c1_i32_30 = arith.constant 1 : i32
    %111 = vector.broadcast %c1_i32_30 : i32 to vector<16x32xi32>
    %112 = arith.addi %110, %111 : vector<16x32xi32>
    %113 = arith.cmpi eq, %108, %112 : vector<16x32xi32>
    %114 = arith.extui %113 : vector<16x32xi1> to vector<16x32xi32>
    %115 = arith.sitofp %114 : vector<16x32xi32> to vector<16x32xf32>
    %116 = arith.truncf %115 : vector<16x32xf32> to vector<16x32xbf16>
    %cst_31 = arith.constant dense<0.000000e+00> : vector<16x128xf32>
    %117 = tpu.matmul %106, %96, %cst_31 {dimension_numbers = #tpu.dot_dimension_numbers<[1], [0], [0], [1], [0, 0, 1, 1], [], []>} : vector<16x32xbf16>, vector<32x128xbf16>, vector<16x128xf32> -> vector<16x128xf32>
    %118 = arith.truncf %117 : vector<16x128xf32> to vector<16x128xbf16>
    %cst_32 = arith.constant dense<0.000000e+00> : vector<16x128xf32>
    %119 = tpu.matmul %116, %96, %cst_32 {dimension_numbers = #tpu.dot_dimension_numbers<[1], [0], [0], [1], [0, 0, 1, 1], [], []>} : vector<16x32xbf16>, vector<32x128xbf16>, vector<16x128xf32> -> vector<16x128xf32>
    %120 = arith.truncf %119 : vector<16x128xf32> to vector<16x128xbf16>
    %c0_33 = arith.constant 0 : index
    %c0_34 = arith.constant 0 : index
    %c0_35 = arith.constant 0 : index
    %121 = vector.load %arg4[%c0_33, %c0_34, %c0_35] : memref<2x128x128xbf16, #tpu.memory_space<vmem>>, vector<1x128x128xbf16>
    %122 = vector.shape_cast %121 : vector<1x128x128xbf16> to vector<128x128xbf16>
    %cst_36 = arith.constant dense<0.000000e+00> : vector<16x128xf32>
    %123 = tpu.matmul %118, %122, %cst_36 {dimension_numbers = #tpu.dot_dimension_numbers<[1], [0], [0], [1], [0, 0, 1, 1], [], []>} : vector<16x128xbf16>, vector<128x128xbf16>, vector<16x128xf32> -> vector<16x128xf32>
    %c1_37 = arith.constant 1 : index
    %c0_38 = arith.constant 0 : index
    %c0_39 = arith.constant 0 : index
    %124 = vector.load %arg4[%c1_37, %c0_38, %c0_39] : memref<2x128x128xbf16, #tpu.memory_space<vmem>>, vector<1x128x128xbf16>
    %125 = vector.shape_cast %124 : vector<1x128x128xbf16> to vector<128x128xbf16>
    %cst_40 = arith.constant dense<0.000000e+00> : vector<16x128xf32>
    %126 = tpu.matmul %120, %125, %cst_40 {dimension_numbers = #tpu.dot_dimension_numbers<[1], [0], [0], [1], [0, 0, 1, 1], [], []>} : vector<16x128xbf16>, vector<128x128xbf16>, vector<16x128xf32> -> vector<16x128xf32>
    %127 = arith.addf %123, %126 : vector<16x128xf32>
    %c3 = arith.constant 3 : index
    %c0_41 = arith.constant 0 : index
    %128 = vector.load %arg11[%c3, %c0_41] : memref<24x128xf32, #tpu.memory_space<vmem>>, vector<1x128xf32>
    %129 = vector.broadcast %128 : vector<1x128xf32> to vector<16x128xf32>
    %130 = arith.addf %127, %129 : vector<16x128xf32>
    %c4 = arith.constant 4 : index
    %c0_42 = arith.constant 0 : index
    %131 = vector.load %arg11[%c4, %c0_42] : memref<24x128xf32, #tpu.memory_space<vmem>>, vector<1x128xf32>
    %c5 = arith.constant 5 : index
    %c0_43 = arith.constant 0 : index
    %132 = vector.load %arg11[%c5, %c0_43] : memref<24x128xf32, #tpu.memory_space<vmem>>, vector<1x128xf32>
    %133 = tpu.iota {dimensions = array<i32: 0>} : vector<128x128xi32>
    %134 = arith.sitofp %133 : vector<128x128xi32> to vector<128x128xf32>
    %135 = arith.sitofp %133 : vector<128x128xi32> to vector<128x128xf32>
    %cst_44 = arith.constant 5.000000e-01 : f32
    %136 = vector.broadcast %cst_44 : f32 to vector<128x128xf32>
    %137 = arith.addf %135, %136 : vector<128x128xf32>
    %cst_45 = arith.constant 6.250000e-02 : f32
    %138 = vector.broadcast %cst_45 : f32 to vector<128x128xf32>
    %139 = arith.mulf %137, %138 : vector<128x128xf32>
    %140 = math.floor %139 : vector<128x128xf32>
    %cst_46 = arith.constant 1.600000e+01 : f32
    %141 = vector.broadcast %cst_46 : f32 to vector<128x128xf32>
    %142 = arith.mulf %141, %140 : vector<128x128xf32>
    %143 = arith.subf %134, %142 : vector<128x128xf32>
    %144 = tpu.iota {dimensions = array<i32: 1>} : vector<128x128xi32>
    %145 = arith.sitofp %144 : vector<128x128xi32> to vector<128x128xf32>
    %146 = arith.sitofp %144 : vector<128x128xi32> to vector<128x128xf32>
    %cst_47 = arith.constant 5.000000e-01 : f32
    %147 = vector.broadcast %cst_47 : f32 to vector<128x128xf32>
    %148 = arith.addf %146, %147 : vector<128x128xf32>
    %cst_48 = arith.constant 6.250000e-02 : f32
    %149 = vector.broadcast %cst_48 : f32 to vector<128x128xf32>
    %150 = arith.mulf %148, %149 : vector<128x128xf32>
    %151 = math.floor %150 : vector<128x128xf32>
    %cst_49 = arith.constant 1.600000e+01 : f32
    %152 = vector.broadcast %cst_49 : f32 to vector<128x128xf32>
    %153 = arith.mulf %152, %151 : vector<128x128xf32>
    %154 = arith.subf %145, %153 : vector<128x128xf32>
    %155 = arith.cmpf oeq, %143, %154 : vector<128x128xf32>
    %156 = arith.extui %155 : vector<128x128xi1> to vector<128x128xi32>
    %157 = arith.sitofp %156 : vector<128x128xi32> to vector<128x128xf32>
    %cst_50 = arith.constant dense<0.000000e+00> : vector<128xf32>
    %158 = vector.multi_reduction <add>, %130, %cst_50 [0] : vector<16x128xf32> to vector<128xf32>
    %159 = vector.shape_cast %158 : vector<128xf32> to vector<1x128xf32>
    %160 = arith.mulf %130, %130 : vector<16x128xf32>
    %cst_51 = arith.constant dense<0.000000e+00> : vector<128xf32>
    %161 = vector.multi_reduction <add>, %160, %cst_51 [0] : vector<16x128xf32> to vector<128xf32>
    %162 = vector.shape_cast %161 : vector<128xf32> to vector<1x128xf32>
    %163 = tpu.iota {dimensions = array<i32: 0>} : vector<16x128xi32>
    %c8_i32_52 = arith.constant 8 : i32
    %164 = vector.broadcast %c8_i32_52 : i32 to vector<16x128xi32>
    %165 = arith.cmpi slt, %163, %164 : vector<16x128xi32>
    %166 = vector.shape_cast %159 : vector<1x128xf32> to vector<1x128xf32>
    %167 = vector.broadcast %166 : vector<1x128xf32> to vector<16x128xf32>
    %168 = vector.shape_cast %162 : vector<1x128xf32> to vector<1x128xf32>
    %169 = vector.broadcast %168 : vector<1x128xf32> to vector<16x128xf32>
    %170 = arith.select %165, %167, %169 : vector<16x128xi1>, vector<16x128xf32>
    %cst_53 = arith.constant dense<0.000000e+00> : vector<16x128xf32>
    %171 = tpu.matmul %170, %157, %cst_53 {dimension_numbers = #tpu.dot_dimension_numbers<[1], [0], [0], [1], [0, 0, 1, 1], [], []>} : vector<16x128xf32>, vector<128x128xf32>, vector<16x128xf32> -> vector<16x128xf32>
    %cst_54 = arith.constant 7.812500e-03 : f32
    %172 = vector.broadcast %cst_54 : f32 to vector<16x128xf32>
    %173 = arith.mulf %171, %172 : vector<16x128xf32>
    %174 = vector.extract_strided_slice %173 {offsets = [0, 0], sizes = [1, 128], strides = [1, 1]} : vector<16x128xf32> to vector<1x128xf32>
    %175 = vector.extract_strided_slice %173 {offsets = [8, 0], sizes = [1, 128], strides = [1, 1]} : vector<16x128xf32> to vector<1x128xf32>
    %176 = arith.mulf %174, %174 : vector<1x128xf32>
    %177 = arith.subf %175, %176 : vector<1x128xf32>
    %178 = vector.broadcast %174 : vector<1x128xf32> to vector<16x128xf32>
    %179 = arith.subf %130, %178 : vector<16x128xf32>
    %cst_55 = arith.constant 9.99999974E-6 : f32
    %180 = vector.broadcast %cst_55 : f32 to vector<1x128xf32>
    %181 = arith.addf %177, %180 : vector<1x128xf32>
    %182 = math.rsqrt %181 : vector<1x128xf32>
    %183 = vector.broadcast %182 : vector<1x128xf32> to vector<16x128xf32>
    %184 = arith.mulf %179, %183 : vector<16x128xf32>
    %185 = vector.broadcast %131 : vector<1x128xf32> to vector<16x128xf32>
    %186 = arith.mulf %184, %185 : vector<16x128xf32>
    %187 = vector.broadcast %132 : vector<1x128xf32> to vector<16x128xf32>
    %188 = arith.addf %186, %187 : vector<16x128xf32>
    %cst_56 = arith.constant 0.000000e+00 : f32
    %189 = vector.broadcast %cst_56 : f32 to vector<16x128xf32>
    %190 = arith.maximumf %188, %189 : vector<16x128xf32>
    %191 = arith.truncf %190 : vector<16x128xf32> to vector<16x128xbf16>
    %192 = tpu.iota {dimensions = array<i32: 0>} : vector<8x16xi32>
    %193 = tpu.iota {dimensions = array<i32: 1>} : vector<8x16xi32>
    %c2_i32_57 = arith.constant 2 : i32
    %194 = vector.broadcast %c2_i32_57 : i32 to vector<8x16xi32>
    %195 = arith.muli %194, %192 : vector<8x16xi32>
    %c0_i32_58 = arith.constant 0 : i32
    %196 = vector.broadcast %c0_i32_58 : i32 to vector<8x16xi32>
    %197 = arith.addi %195, %196 : vector<8x16xi32>
    %198 = arith.cmpi eq, %193, %197 : vector<8x16xi32>
    %199 = arith.extui %198 : vector<8x16xi1> to vector<8x16xi32>
    %200 = arith.sitofp %199 : vector<8x16xi32> to vector<8x16xf32>
    %201 = arith.truncf %200 : vector<8x16xf32> to vector<8x16xbf16>
    %202 = tpu.iota {dimensions = array<i32: 0>} : vector<8x16xi32>
    %203 = tpu.iota {dimensions = array<i32: 1>} : vector<8x16xi32>
    %c2_i32_59 = arith.constant 2 : i32
    %204 = vector.broadcast %c2_i32_59 : i32 to vector<8x16xi32>
    %205 = arith.muli %204, %202 : vector<8x16xi32>
    %c1_i32_60 = arith.constant 1 : i32
    %206 = vector.broadcast %c1_i32_60 : i32 to vector<8x16xi32>
    %207 = arith.addi %205, %206 : vector<8x16xi32>
    %208 = arith.cmpi eq, %203, %207 : vector<8x16xi32>
    %209 = arith.extui %208 : vector<8x16xi1> to vector<8x16xi32>
    %210 = arith.sitofp %209 : vector<8x16xi32> to vector<8x16xf32>
    %211 = arith.truncf %210 : vector<8x16xf32> to vector<8x16xbf16>
    %cst_61 = arith.constant dense<0.000000e+00> : vector<8x128xf32>
    %212 = tpu.matmul %201, %191, %cst_61 {dimension_numbers = #tpu.dot_dimension_numbers<[1], [0], [0], [1], [0, 0, 1, 1], [], []>} : vector<8x16xbf16>, vector<16x128xbf16>, vector<8x128xf32> -> vector<8x128xf32>
    %213 = arith.truncf %212 : vector<8x128xf32> to vector<8x128xbf16>
    %cst_62 = arith.constant dense<0.000000e+00> : vector<8x128xf32>
    %214 = tpu.matmul %211, %191, %cst_62 {dimension_numbers = #tpu.dot_dimension_numbers<[1], [0], [0], [1], [0, 0, 1, 1], [], []>} : vector<8x16xbf16>, vector<16x128xbf16>, vector<8x128xf32> -> vector<8x128xf32>
    %215 = arith.truncf %214 : vector<8x128xf32> to vector<8x128xbf16>
    %c0_63 = arith.constant 0 : index
    %c0_64 = arith.constant 0 : index
    %c0_65 = arith.constant 0 : index
    %216 = vector.load %arg5[%c0_63, %c0_64, %c0_65] : memref<2x128x128xbf16, #tpu.memory_space<vmem>>, vector<1x128x128xbf16>
    %217 = vector.shape_cast %216 : vector<1x128x128xbf16> to vector<128x128xbf16>
    %cst_66 = arith.constant dense<0.000000e+00> : vector<8x128xf32>
    %218 = tpu.matmul %213, %217, %cst_66 {dimension_numbers = #tpu.dot_dimension_numbers<[1], [0], [0], [1], [0, 0, 1, 1], [], []>} : vector<8x128xbf16>, vector<128x128xbf16>, vector<8x128xf32> -> vector<8x128xf32>
    %c1_67 = arith.constant 1 : index
    %c0_68 = arith.constant 0 : index
    %c0_69 = arith.constant 0 : index
    %219 = vector.load %arg5[%c1_67, %c0_68, %c0_69] : memref<2x128x128xbf16, #tpu.memory_space<vmem>>, vector<1x128x128xbf16>
    %220 = vector.shape_cast %219 : vector<1x128x128xbf16> to vector<128x128xbf16>
    %cst_70 = arith.constant dense<0.000000e+00> : vector<8x128xf32>
    %221 = tpu.matmul %215, %220, %cst_70 {dimension_numbers = #tpu.dot_dimension_numbers<[1], [0], [0], [1], [0, 0, 1, 1], [], []>} : vector<8x128xbf16>, vector<128x128xbf16>, vector<8x128xf32> -> vector<8x128xf32>
    %222 = arith.addf %218, %221 : vector<8x128xf32>
    %c6 = arith.constant 6 : index
    %c0_71 = arith.constant 0 : index
    %223 = vector.load %arg11[%c6, %c0_71] : memref<24x128xf32, #tpu.memory_space<vmem>>, vector<1x128xf32>
    %224 = vector.broadcast %223 : vector<1x128xf32> to vector<8x128xf32>
    %225 = arith.addf %222, %224 : vector<8x128xf32>
    %c7 = arith.constant 7 : index
    %c0_72 = arith.constant 0 : index
    %226 = vector.load %arg11[%c7, %c0_72] : memref<24x128xf32, #tpu.memory_space<vmem>>, vector<1x128xf32>
    %c8 = arith.constant 8 : index
    %c0_73 = arith.constant 0 : index
    %227 = vector.load %arg11[%c8, %c0_73] : memref<24x128xf32, #tpu.memory_space<vmem>>, vector<1x128xf32>
    %228 = tpu.iota {dimensions = array<i32: 0>} : vector<128x128xi32>
    %229 = arith.sitofp %228 : vector<128x128xi32> to vector<128x128xf32>
    %230 = arith.sitofp %228 : vector<128x128xi32> to vector<128x128xf32>
    %cst_74 = arith.constant 5.000000e-01 : f32
    %231 = vector.broadcast %cst_74 : f32 to vector<128x128xf32>
    %232 = arith.addf %230, %231 : vector<128x128xf32>
    %cst_75 = arith.constant 3.125000e-02 : f32
    %233 = vector.broadcast %cst_75 : f32 to vector<128x128xf32>
    %234 = arith.mulf %232, %233 : vector<128x128xf32>
    %235 = math.floor %234 : vector<128x128xf32>
    %cst_76 = arith.constant 3.200000e+01 : f32
    %236 = vector.broadcast %cst_76 : f32 to vector<128x128xf32>
    %237 = arith.mulf %236, %235 : vector<128x128xf32>
    %238 = arith.subf %229, %237 : vector<128x128xf32>
    %239 = tpu.iota {dimensions = array<i32: 1>} : vector<128x128xi32>
    %240 = arith.sitofp %239 : vector<128x128xi32> to vector<128x128xf32>
    %241 = arith.sitofp %239 : vector<128x128xi32> to vector<128x128xf32>
    %cst_77 = arith.constant 5.000000e-01 : f32
    %242 = vector.broadcast %cst_77 : f32 to vector<128x128xf32>
    %243 = arith.addf %241, %242 : vector<128x128xf32>
    %cst_78 = arith.constant 3.125000e-02 : f32
    %244 = vector.broadcast %cst_78 : f32 to vector<128x128xf32>
    %245 = arith.mulf %243, %244 : vector<128x128xf32>
    %246 = math.floor %245 : vector<128x128xf32>
    %cst_79 = arith.constant 3.200000e+01 : f32
    %247 = vector.broadcast %cst_79 : f32 to vector<128x128xf32>
    %248 = arith.mulf %247, %246 : vector<128x128xf32>
    %249 = arith.subf %240, %248 : vector<128x128xf32>
    %250 = arith.cmpf oeq, %238, %249 : vector<128x128xf32>
    %251 = arith.extui %250 : vector<128x128xi1> to vector<128x128xi32>
    %252 = arith.sitofp %251 : vector<128x128xi32> to vector<128x128xf32>
    %cst_80 = arith.constant dense<0.000000e+00> : vector<128xf32>
    %253 = vector.multi_reduction <add>, %225, %cst_80 [0] : vector<8x128xf32> to vector<128xf32>
    %254 = vector.shape_cast %253 : vector<128xf32> to vector<1x128xf32>
    %255 = arith.mulf %225, %225 : vector<8x128xf32>
    %cst_81 = arith.constant dense<0.000000e+00> : vector<128xf32>
    %256 = vector.multi_reduction <add>, %255, %cst_81 [0] : vector<8x128xf32> to vector<128xf32>
    %257 = vector.shape_cast %256 : vector<128xf32> to vector<1x128xf32>
    %258 = tpu.iota {dimensions = array<i32: 0>} : vector<16x128xi32>
    %c8_i32_82 = arith.constant 8 : i32
    %259 = vector.broadcast %c8_i32_82 : i32 to vector<16x128xi32>
    %260 = arith.cmpi slt, %258, %259 : vector<16x128xi32>
    %261 = vector.shape_cast %254 : vector<1x128xf32> to vector<1x128xf32>
    %262 = vector.broadcast %261 : vector<1x128xf32> to vector<16x128xf32>
    %263 = vector.shape_cast %257 : vector<1x128xf32> to vector<1x128xf32>
    %264 = vector.broadcast %263 : vector<1x128xf32> to vector<16x128xf32>
    %265 = arith.select %260, %262, %264 : vector<16x128xi1>, vector<16x128xf32>
    %cst_83 = arith.constant dense<0.000000e+00> : vector<16x128xf32>
    %266 = tpu.matmul %265, %252, %cst_83 {dimension_numbers = #tpu.dot_dimension_numbers<[1], [0], [0], [1], [0, 0, 1, 1], [], []>} : vector<16x128xf32>, vector<128x128xf32>, vector<16x128xf32> -> vector<16x128xf32>
    %cst_84 = arith.constant 3.125000e-02 : f32
    %267 = vector.broadcast %cst_84 : f32 to vector<16x128xf32>
    %268 = arith.mulf %266, %267 : vector<16x128xf32>
    %269 = vector.extract_strided_slice %268 {offsets = [0, 0], sizes = [1, 128], strides = [1, 1]} : vector<16x128xf32> to vector<1x128xf32>
    %270 = vector.extract_strided_slice %268 {offsets = [8, 0], sizes = [1, 128], strides = [1, 1]} : vector<16x128xf32> to vector<1x128xf32>
    %271 = arith.mulf %269, %269 : vector<1x128xf32>
    %272 = arith.subf %270, %271 : vector<1x128xf32>
    %273 = vector.broadcast %269 : vector<1x128xf32> to vector<8x128xf32>
    %274 = arith.subf %225, %273 : vector<8x128xf32>
    %cst_85 = arith.constant 9.99999974E-6 : f32
    %275 = vector.broadcast %cst_85 : f32 to vector<1x128xf32>
    %276 = arith.addf %272, %275 : vector<1x128xf32>
    %277 = math.rsqrt %276 : vector<1x128xf32>
    %278 = vector.broadcast %277 : vector<1x128xf32> to vector<8x128xf32>
    %279 = arith.mulf %274, %278 : vector<8x128xf32>
    %280 = vector.broadcast %226 : vector<1x128xf32> to vector<8x128xf32>
    %281 = arith.mulf %279, %280 : vector<8x128xf32>
    %282 = vector.broadcast %227 : vector<1x128xf32> to vector<8x128xf32>
    %283 = arith.addf %281, %282 : vector<8x128xf32>
    %cst_86 = arith.constant 0.000000e+00 : f32
    %284 = vector.broadcast %cst_86 : f32 to vector<8x128xf32>
    %285 = arith.maximumf %283, %284 : vector<8x128xf32>
    %286 = arith.truncf %285 : vector<8x128xf32> to vector<8x128xbf16>
    %c0_87 = arith.constant 0 : index
    %c0_88 = arith.constant 0 : index
    %287 = vector.load %arg6[%c0_87, %c0_88] : memref<128x128xbf16, #tpu.memory_space<vmem>>, vector<128x128xbf16>
    %cst_89 = arith.constant dense<0.000000e+00> : vector<8x128xf32>
    %288 = tpu.matmul %286, %287, %cst_89 {dimension_numbers = #tpu.dot_dimension_numbers<[1], [0], [0], [1], [0, 0, 1, 1], [], []>} : vector<8x128xbf16>, vector<128x128xbf16>, vector<8x128xf32> -> vector<8x128xf32>
    %289 = tpu.iota {dimensions = array<i32: 0>} : vector<8x128xi32>
    %290 = arith.sitofp %289 : vector<8x128xi32> to vector<8x128xf32>
    %291 = arith.sitofp %289 : vector<8x128xi32> to vector<8x128xf32>
    %cst_90 = arith.constant 5.000000e-01 : f32
    %292 = vector.broadcast %cst_90 : f32 to vector<8x128xf32>
    %293 = arith.addf %291, %292 : vector<8x128xf32>
    %cst_91 = arith.constant 2.500000e-01 : f32
    %294 = vector.broadcast %cst_91 : f32 to vector<8x128xf32>
    %295 = arith.mulf %293, %294 : vector<8x128xf32>
    %296 = math.floor %295 : vector<8x128xf32>
    %cst_92 = arith.constant 4.000000e+00 : f32
    %297 = vector.broadcast %cst_92 : f32 to vector<8x128xf32>
    %298 = arith.mulf %297, %296 : vector<8x128xf32>
    %299 = arith.subf %290, %298 : vector<8x128xf32>
    %300 = tpu.iota {dimensions = array<i32: 1>} : vector<8x128xi32>
    %301 = arith.sitofp %300 : vector<8x128xi32> to vector<8x128xf32>
    %cst_93 = arith.constant 5.000000e-01 : f32
    %302 = vector.broadcast %cst_93 : f32 to vector<8x128xf32>
    %303 = arith.addf %301, %302 : vector<8x128xf32>
    %cst_94 = arith.constant 3.125000e-02 : f32
    %304 = vector.broadcast %cst_94 : f32 to vector<8x128xf32>
    %305 = arith.mulf %303, %304 : vector<8x128xf32>
    %306 = math.floor %305 : vector<8x128xf32>
    %307 = arith.cmpf oeq, %299, %306 : vector<8x128xf32>
    %308 = arith.extui %307 : vector<8x128xi1> to vector<8x128xi32>
    %309 = arith.sitofp %308 : vector<8x128xi32> to vector<8x128xf32>
    %310 = arith.mulf %288, %309 : vector<8x128xf32>
    %311 = tpu.iota {dimensions = array<i32: 0>} : vector<128x16xi32>
    %312 = arith.sitofp %311 : vector<128x16xi32> to vector<128x16xf32>
    %313 = arith.sitofp %311 : vector<128x16xi32> to vector<128x16xf32>
    %cst_95 = arith.constant 5.000000e-01 : f32
    %314 = vector.broadcast %cst_95 : f32 to vector<128x16xf32>
    %315 = arith.addf %313, %314 : vector<128x16xf32>
    %cst_96 = arith.constant 3.125000e-02 : f32
    %316 = vector.broadcast %cst_96 : f32 to vector<128x16xf32>
    %317 = arith.mulf %315, %316 : vector<128x16xf32>
    %318 = math.floor %317 : vector<128x16xf32>
    %cst_97 = arith.constant 3.200000e+01 : f32
    %319 = vector.broadcast %cst_97 : f32 to vector<128x16xf32>
    %320 = arith.mulf %319, %318 : vector<128x16xf32>
    %321 = arith.subf %312, %320 : vector<128x16xf32>
    %322 = tpu.iota {dimensions = array<i32: 1>} : vector<128x16xi32>
    %323 = arith.sitofp %322 : vector<128x16xi32> to vector<128x16xf32>
    %324 = arith.cmpf oeq, %321, %323 : vector<128x16xf32>
    %325 = arith.extui %324 : vector<128x16xi1> to vector<128x16xi32>
    %326 = arith.sitofp %325 : vector<128x16xi32> to vector<128x16xf32>
    %327 = tpu.iota {dimensions = array<i32: 0>} : vector<128x16xi32>
    %328 = arith.sitofp %327 : vector<128x16xi32> to vector<128x16xf32>
    %329 = arith.sitofp %327 : vector<128x16xi32> to vector<128x16xf32>
    %cst_98 = arith.constant 5.000000e-01 : f32
    %330 = vector.broadcast %cst_98 : f32 to vector<128x16xf32>
    %331 = arith.addf %329, %330 : vector<128x16xf32>
    %cst_99 = arith.constant 3.125000e-02 : f32
    %332 = vector.broadcast %cst_99 : f32 to vector<128x16xf32>
    %333 = arith.mulf %331, %332 : vector<128x16xf32>
    %334 = math.floor %333 : vector<128x16xf32>
    %cst_100 = arith.constant 3.200000e+01 : f32
    %335 = vector.broadcast %cst_100 : f32 to vector<128x16xf32>
    %336 = arith.mulf %335, %334 : vector<128x16xf32>
    %337 = arith.subf %328, %336 : vector<128x16xf32>
    %338 = tpu.iota {dimensions = array<i32: 1>} : vector<128x16xi32>
    %c16_i32 = arith.constant 16 : i32
    %339 = vector.broadcast %c16_i32 : i32 to vector<128x16xi32>
    %340 = arith.addi %338, %339 : vector<128x16xi32>
    %341 = arith.sitofp %340 : vector<128x16xi32> to vector<128x16xf32>
    %342 = arith.cmpf oeq, %337, %341 : vector<128x16xf32>
    %343 = arith.extui %342 : vector<128x16xi1> to vector<128x16xi32>
    %344 = arith.sitofp %343 : vector<128x16xi32> to vector<128x16xf32>
    %345 = tpu.iota {dimensions = array<i32: 0>} : vector<2x8xi32>
    %346 = arith.sitofp %345 : vector<2x8xi32> to vector<2x8xf32>
    %347 = tpu.iota {dimensions = array<i32: 1>} : vector<2x8xi32>
    %348 = arith.sitofp %347 : vector<2x8xi32> to vector<2x8xf32>
    %cst_101 = arith.constant 5.000000e-01 : f32
    %349 = vector.broadcast %cst_101 : f32 to vector<2x8xf32>
    %350 = arith.addf %348, %349 : vector<2x8xf32>
    %cst_102 = arith.constant 2.500000e-01 : f32
    %351 = vector.broadcast %cst_102 : f32 to vector<2x8xf32>
    %352 = arith.mulf %350, %351 : vector<2x8xf32>
    %353 = math.floor %352 : vector<2x8xf32>
    %354 = arith.cmpf oeq, %346, %353 : vector<2x8xf32>
    %355 = arith.extui %354 : vector<2x8xi1> to vector<2x8xi32>
    %356 = arith.sitofp %355 : vector<2x8xi32> to vector<2x8xf32>
    %cst_103 = arith.constant dense<0.000000e+00> : vector<8x16xf32>
    %357 = tpu.matmul %310, %326, %cst_103 {dimension_numbers = #tpu.dot_dimension_numbers<[1], [0], [0], [1], [0, 0, 1, 1], [], []>} : vector<8x128xf32>, vector<128x16xf32>, vector<8x16xf32> -> vector<8x16xf32>
    %cst_104 = arith.constant dense<0.000000e+00> : vector<2x16xf32>
    %358 = tpu.matmul %356, %357, %cst_104 {dimension_numbers = #tpu.dot_dimension_numbers<[1], [0], [0], [1], [0, 0, 1, 1], [], []>} : vector<2x8xf32>, vector<8x16xf32>, vector<2x16xf32> -> vector<2x16xf32>
    %c9 = arith.constant 9 : index
    %c0_105 = arith.constant 0 : index
    %359 = vector.load %arg11[%c9, %c0_105] : memref<24x128xf32, #tpu.memory_space<vmem>>, vector<1x16xf32>
    %360 = vector.broadcast %359 : vector<1x16xf32> to vector<2x16xf32>
    %361 = arith.addf %358, %360 : vector<2x16xf32>
    %cst_106 = arith.constant dense<0.000000e+00> : vector<8x16xf32>
    %362 = tpu.matmul %310, %344, %cst_106 {dimension_numbers = #tpu.dot_dimension_numbers<[1], [0], [0], [1], [0, 0, 1, 1], [], []>} : vector<8x128xf32>, vector<128x16xf32>, vector<8x16xf32> -> vector<8x16xf32>
    %cst_107 = arith.constant dense<0.000000e+00> : vector<2x16xf32>
    %363 = tpu.matmul %356, %362, %cst_107 {dimension_numbers = #tpu.dot_dimension_numbers<[1], [0], [0], [1], [0, 0, 1, 1], [], []>} : vector<2x8xf32>, vector<8x16xf32>, vector<2x16xf32> -> vector<2x16xf32>
    %c10 = arith.constant 10 : index
    %c0_108 = arith.constant 0 : index
    %364 = vector.load %arg11[%c10, %c0_108] : memref<24x128xf32, #tpu.memory_space<vmem>>, vector<1x16xf32>
    %365 = vector.broadcast %364 : vector<1x16xf32> to vector<2x16xf32>
    %366 = arith.addf %363, %365 : vector<2x16xf32>
    %c0_109 = arith.constant 0 : index
    %c0_110 = arith.constant 0 : index
    %c0_111 = arith.constant 0 : index
    %367 = vector.load %arg12[%c0_109, %c0_110, %c0_111] : memref<2x2x16xf32, #tpu.memory_space<vmem>>, vector<1x2x16xf32>
    %368 = vector.shape_cast %367 : vector<1x2x16xf32> to vector<2x16xf32>
    %369 = vector.shape_cast %361 : vector<2x16xf32> to vector<1x2x16xf32>
    tpu.vector_store %arg12[%c0_109, %c0_110, %c0_111], %369 {strides = array<i32>} : memref<2x2x16xf32, #tpu.memory_space<vmem>>, vector<1x2x16xf32>,
    %c1_112 = arith.constant 1 : index
    %c0_113 = arith.constant 0 : index
    %c0_114 = arith.constant 0 : index
    %370 = vector.load %arg12[%c1_112, %c0_113, %c0_114] : memref<2x2x16xf32, #tpu.memory_space<vmem>>, vector<1x2x16xf32>
    %371 = vector.shape_cast %370 : vector<1x2x16xf32> to vector<2x16xf32>
    %372 = vector.shape_cast %366 : vector<2x16xf32> to vector<1x2x16xf32>
    tpu.vector_store %arg12[%c1_112, %c0_113, %c0_114], %372 {strides = array<i32>} : memref<2x2x16xf32, #tpu.memory_space<vmem>>, vector<1x2x16xf32>,
    %c0_115 = arith.constant 0 : index
    %c0_116 = arith.constant 0 : index
    %373 = vector.load %arg2[%c0_115, %c0_116] : memref<2x16xf32, #tpu.memory_space<vmem>>, vector<2x16xf32>
    %cst_117 = arith.constant 5.000000e-01 : f32
    %374 = vector.broadcast %cst_117 : f32 to vector<2x16xf32>
    %375 = arith.mulf %374, %366 : vector<2x16xf32>
    %376 = math.exp %375 : vector<2x16xf32>
    %377 = arith.mulf %373, %376 : vector<2x16xf32>
    %378 = arith.addf %361, %377 : vector<2x16xf32>
    %379 = tpu.iota {dimensions = array<i32: 0>} : vector<8x2xi32>
    %380 = arith.sitofp %379 : vector<8x2xi32> to vector<8x2xf32>
    %cst_118 = arith.constant 5.000000e-01 : f32
    %381 = vector.broadcast %cst_118 : f32 to vector<8x2xf32>
    %382 = arith.addf %380, %381 : vector<8x2xf32>
    %cst_119 = arith.constant 2.500000e-01 : f32
    %383 = vector.broadcast %cst_119 : f32 to vector<8x2xf32>
    %384 = arith.mulf %382, %383 : vector<8x2xf32>
    %385 = math.floor %384 : vector<8x2xf32>
    %386 = tpu.iota {dimensions = array<i32: 1>} : vector<8x2xi32>
    %387 = arith.sitofp %386 : vector<8x2xi32> to vector<8x2xf32>
    %388 = arith.cmpf oeq, %385, %387 : vector<8x2xf32>
    %389 = arith.extui %388 : vector<8x2xi1> to vector<8x2xi32>
    %390 = arith.sitofp %389 : vector<8x2xi32> to vector<8x2xf32>
    %cst_120 = arith.constant dense<0.000000e+00> : vector<8x16xf32>
    %391 = tpu.matmul %390, %378, %cst_120 {dimension_numbers = #tpu.dot_dimension_numbers<[1], [0], [0], [1], [0, 0, 1, 1], [], []>} : vector<8x2xf32>, vector<2x16xf32>, vector<8x16xf32> -> vector<8x16xf32>
    %392 = tpu.iota {dimensions = array<i32: 0>} : vector<16x64xi32>
    %393 = arith.sitofp %392 : vector<16x64xi32> to vector<16x64xf32>
    %394 = tpu.iota {dimensions = array<i32: 1>} : vector<16x64xi32>
    %395 = arith.sitofp %394 : vector<16x64xi32> to vector<16x64xf32>
    %396 = arith.sitofp %394 : vector<16x64xi32> to vector<16x64xf32>
    %cst_121 = arith.constant 5.000000e-01 : f32
    %397 = vector.broadcast %cst_121 : f32 to vector<16x64xf32>
    %398 = arith.addf %396, %397 : vector<16x64xf32>
    %cst_122 = arith.constant 6.250000e-02 : f32
    %399 = vector.broadcast %cst_122 : f32 to vector<16x64xf32>
    %400 = arith.mulf %398, %399 : vector<16x64xf32>
    %401 = math.floor %400 : vector<16x64xf32>
    %cst_123 = arith.constant 1.600000e+01 : f32
    %402 = vector.broadcast %cst_123 : f32 to vector<16x64xf32>
    %403 = arith.mulf %402, %401 : vector<16x64xf32>
    %404 = arith.subf %395, %403 : vector<16x64xf32>
    %405 = arith.cmpf oeq, %393, %404 : vector<16x64xf32>
    %406 = arith.extui %405 : vector<16x64xi1> to vector<16x64xi32>
    %407 = arith.sitofp %406 : vector<16x64xi32> to vector<16x64xf32>
    %cst_124 = arith.constant dense<0.000000e+00> : vector<8x64xf32>
    %408 = tpu.matmul %391, %407, %cst_124 {dimension_numbers = #tpu.dot_dimension_numbers<[1], [0], [0], [1], [0, 0, 1, 1], [], []>} : vector<8x16xf32>, vector<16x64xf32>, vector<8x64xf32> -> vector<8x64xf32>
    %409 = tpu.iota {dimensions = array<i32: 0>} : vector<8x64xi32>
    %410 = arith.sitofp %409 : vector<8x64xi32> to vector<8x64xf32>
    %411 = arith.sitofp %409 : vector<8x64xi32> to vector<8x64xf32>
    %cst_125 = arith.constant 5.000000e-01 : f32
    %412 = vector.broadcast %cst_125 : f32 to vector<8x64xf32>
    %413 = arith.addf %411, %412 : vector<8x64xf32>
    %cst_126 = arith.constant 2.500000e-01 : f32
    %414 = vector.broadcast %cst_126 : f32 to vector<8x64xf32>
    %415 = arith.mulf %413, %414 : vector<8x64xf32>
    %416 = math.floor %415 : vector<8x64xf32>
    %cst_127 = arith.constant 4.000000e+00 : f32
    %417 = vector.broadcast %cst_127 : f32 to vector<8x64xf32>
    %418 = arith.mulf %417, %416 : vector<8x64xf32>
    %419 = arith.subf %410, %418 : vector<8x64xf32>
    %420 = tpu.iota {dimensions = array<i32: 1>} : vector<8x64xi32>
    %421 = arith.sitofp %420 : vector<8x64xi32> to vector<8x64xf32>
    %cst_128 = arith.constant 5.000000e-01 : f32
    %422 = vector.broadcast %cst_128 : f32 to vector<8x64xf32>
    %423 = arith.addf %421, %422 : vector<8x64xf32>
    %cst_129 = arith.constant 6.250000e-02 : f32
    %424 = vector.broadcast %cst_129 : f32 to vector<8x64xf32>
    %425 = arith.mulf %423, %424 : vector<8x64xf32>
    %426 = math.floor %425 : vector<8x64xf32>
    %427 = arith.cmpf oeq, %419, %426 : vector<8x64xf32>
    %428 = arith.extui %427 : vector<8x64xi1> to vector<8x64xi32>
    %429 = arith.sitofp %428 : vector<8x64xi32> to vector<8x64xf32>
    %430 = arith.mulf %408, %429 : vector<8x64xf32>
    %431 = arith.truncf %430 : vector<8x64xf32> to vector<8x64xbf16>
    %432 = tpu.iota {dimensions = array<i32: 0>} : vector<8x4xi32>
    %433 = arith.sitofp %432 : vector<8x4xi32> to vector<8x4xf32>
    %434 = arith.sitofp %432 : vector<8x4xi32> to vector<8x4xf32>
    %cst_130 = arith.constant 5.000000e-01 : f32
    %435 = vector.broadcast %cst_130 : f32 to vector<8x4xf32>
    %436 = arith.addf %434, %435 : vector<8x4xf32>
    %cst_131 = arith.constant 2.500000e-01 : f32
    %437 = vector.broadcast %cst_131 : f32 to vector<8x4xf32>
    %438 = arith.mulf %436, %437 : vector<8x4xf32>
    %439 = math.floor %438 : vector<8x4xf32>
    %cst_132 = arith.constant 4.000000e+00 : f32
    %440 = vector.broadcast %cst_132 : f32 to vector<8x4xf32>
    %441 = arith.mulf %440, %439 : vector<8x4xf32>
    %442 = arith.subf %433, %441 : vector<8x4xf32>
    %443 = tpu.iota {dimensions = array<i32: 1>} : vector<8x4xi32>
    %444 = arith.sitofp %443 : vector<8x4xi32> to vector<8x4xf32>
    %445 = arith.cmpf oeq, %442, %444 : vector<8x4xf32>
    %446 = arith.extui %445 : vector<8x4xi1> to vector<8x4xi32>
    %447 = arith.sitofp %446 : vector<8x4xi32> to vector<8x4xf32>
    %c0_133 = arith.constant 0 : index
    %c0_134 = arith.constant 0 : index
    %448 = vector.load %arg7[%c0_133, %c0_134] : memref<64x128xbf16, #tpu.memory_space<vmem>>, vector<64x128xbf16>
    %cst_135 = arith.constant dense<0.000000e+00> : vector<8x128xf32>
    %449 = tpu.matmul %431, %448, %cst_135 {dimension_numbers = #tpu.dot_dimension_numbers<[1], [0], [0], [1], [0, 0, 1, 1], [], []>} : vector<8x64xbf16>, vector<64x128xbf16>, vector<8x128xf32> -> vector<8x128xf32>
    %c11 = arith.constant 11 : index
    %c0_136 = arith.constant 0 : index
    %450 = vector.load %arg11[%c11, %c0_136] : memref<24x128xf32, #tpu.memory_space<vmem>>, vector<4x128xf32>
    %cst_137 = arith.constant dense<0.000000e+00> : vector<8x128xf32>
    %451 = tpu.matmul %447, %450, %cst_137 {dimension_numbers = #tpu.dot_dimension_numbers<[1], [0], [0], [1], [0, 0, 1, 1], [], []>} : vector<8x4xf32>, vector<4x128xf32>, vector<8x128xf32> -> vector<8x128xf32>
    %452 = arith.addf %449, %451 : vector<8x128xf32>
    %453 = arith.truncf %452 : vector<8x128xf32> to vector<8x128xbf16>
    %c0_138 = arith.constant 0 : index
    %c0_139 = arith.constant 0 : index
    %c0_140 = arith.constant 0 : index
    %454 = vector.load %arg8[%c0_138, %c0_139, %c0_140] : memref<2x128x128xbf16, #tpu.memory_space<vmem>>, vector<1x128x128xbf16>
    %455 = vector.shape_cast %454 : vector<1x128x128xbf16> to vector<128x128xbf16>
    %cst_141 = arith.constant dense<0.000000e+00> : vector<8x128xf32>
    %456 = tpu.matmul %453, %455, %cst_141 {dimension_numbers = #tpu.dot_dimension_numbers<[1], [0], [0], [1], [0, 0, 1, 1], [], []>} : vector<8x128xbf16>, vector<128x128xbf16>, vector<8x128xf32> -> vector<8x128xf32>
    %457 = arith.truncf %456 : vector<8x128xf32> to vector<8x128xbf16>
    %c1_142 = arith.constant 1 : index
    %c0_143 = arith.constant 0 : index
    %c0_144 = arith.constant 0 : index
    %458 = vector.load %arg8[%c1_142, %c0_143, %c0_144] : memref<2x128x128xbf16, #tpu.memory_space<vmem>>, vector<1x128x128xbf16>
    %459 = vector.shape_cast %458 : vector<1x128x128xbf16> to vector<128x128xbf16>
    %cst_145 = arith.constant dense<0.000000e+00> : vector<8x128xf32>
    %460 = tpu.matmul %453, %459, %cst_145 {dimension_numbers = #tpu.dot_dimension_numbers<[1], [0], [0], [1], [0, 0, 1, 1], [], []>} : vector<8x128xbf16>, vector<128x128xbf16>, vector<8x128xf32> -> vector<8x128xf32>
    %461 = arith.truncf %460 : vector<8x128xf32> to vector<8x128xbf16>
    %462 = tpu.iota {dimensions = array<i32: 0>} : vector<16x8xi32>
    %463 = tpu.iota {dimensions = array<i32: 1>} : vector<16x8xi32>
    %c2_i32_146 = arith.constant 2 : i32
    %464 = vector.broadcast %c2_i32_146 : i32 to vector<16x8xi32>
    %465 = arith.muli %464, %463 : vector<16x8xi32>
    %c0_i32_147 = arith.constant 0 : i32
    %466 = vector.broadcast %c0_i32_147 : i32 to vector<16x8xi32>
    %467 = arith.addi %465, %466 : vector<16x8xi32>
    %468 = arith.cmpi eq, %462, %467 : vector<16x8xi32>
    %469 = arith.extui %468 : vector<16x8xi1> to vector<16x8xi32>
    %470 = arith.sitofp %469 : vector<16x8xi32> to vector<16x8xf32>
    %471 = arith.truncf %470 : vector<16x8xf32> to vector<16x8xbf16>
    %472 = tpu.iota {dimensions = array<i32: 0>} : vector<16x8xi32>
    %473 = tpu.iota {dimensions = array<i32: 1>} : vector<16x8xi32>
    %c2_i32_148 = arith.constant 2 : i32
    %474 = vector.broadcast %c2_i32_148 : i32 to vector<16x8xi32>
    %475 = arith.muli %474, %473 : vector<16x8xi32>
    %c1_i32_149 = arith.constant 1 : i32
    %476 = vector.broadcast %c1_i32_149 : i32 to vector<16x8xi32>
    %477 = arith.addi %475, %476 : vector<16x8xi32>
    %478 = arith.cmpi eq, %472, %477 : vector<16x8xi32>
    %479 = arith.extui %478 : vector<16x8xi1> to vector<16x8xi32>
    %480 = arith.sitofp %479 : vector<16x8xi32> to vector<16x8xf32>
    %481 = arith.truncf %480 : vector<16x8xf32> to vector<16x8xbf16>
    %cst_150 = arith.constant dense<0.000000e+00> : vector<16x128xf32>
    %482 = tpu.matmul %471, %457, %cst_150 {dimension_numbers = #tpu.dot_dimension_numbers<[1], [0], [0], [1], [0, 0, 1, 1], [], []>} : vector<16x8xbf16>, vector<8x128xbf16>, vector<16x128xf32> -> vector<16x128xf32>
    %cst_151 = arith.constant dense<0.000000e+00> : vector<16x128xf32>
    %483 = tpu.matmul %481, %461, %cst_151 {dimension_numbers = #tpu.dot_dimension_numbers<[1], [0], [0], [1], [0, 0, 1, 1], [], []>} : vector<16x8xbf16>, vector<8x128xbf16>, vector<16x128xf32> -> vector<16x128xf32>
    %484 = arith.addf %482, %483 : vector<16x128xf32>
    %c15 = arith.constant 15 : index
    %c0_152 = arith.constant 0 : index
    %485 = vector.load %arg11[%c15, %c0_152] : memref<24x128xf32, #tpu.memory_space<vmem>>, vector<1x128xf32>
    %486 = vector.broadcast %485 : vector<1x128xf32> to vector<16x128xf32>
    %487 = arith.addf %484, %486 : vector<16x128xf32>
    %c16 = arith.constant 16 : index
    %c0_153 = arith.constant 0 : index
    %488 = vector.load %arg11[%c16, %c0_153] : memref<24x128xf32, #tpu.memory_space<vmem>>, vector<1x128xf32>
    %c17 = arith.constant 17 : index
    %c0_154 = arith.constant 0 : index
    %489 = vector.load %arg11[%c17, %c0_154] : memref<24x128xf32, #tpu.memory_space<vmem>>, vector<1x128xf32>
    %490 = tpu.iota {dimensions = array<i32: 0>} : vector<128x128xi32>
    %491 = arith.sitofp %490 : vector<128x128xi32> to vector<128x128xf32>
    %492 = arith.sitofp %490 : vector<128x128xi32> to vector<128x128xf32>
    %cst_155 = arith.constant 5.000000e-01 : f32
    %493 = vector.broadcast %cst_155 : f32 to vector<128x128xf32>
    %494 = arith.addf %492, %493 : vector<128x128xf32>
    %cst_156 = arith.constant 6.250000e-02 : f32
    %495 = vector.broadcast %cst_156 : f32 to vector<128x128xf32>
    %496 = arith.mulf %494, %495 : vector<128x128xf32>
    %497 = math.floor %496 : vector<128x128xf32>
    %cst_157 = arith.constant 1.600000e+01 : f32
    %498 = vector.broadcast %cst_157 : f32 to vector<128x128xf32>
    %499 = arith.mulf %498, %497 : vector<128x128xf32>
    %500 = arith.subf %491, %499 : vector<128x128xf32>
    %501 = tpu.iota {dimensions = array<i32: 1>} : vector<128x128xi32>
    %502 = arith.sitofp %501 : vector<128x128xi32> to vector<128x128xf32>
    %503 = arith.sitofp %501 : vector<128x128xi32> to vector<128x128xf32>
    %cst_158 = arith.constant 5.000000e-01 : f32
    %504 = vector.broadcast %cst_158 : f32 to vector<128x128xf32>
    %505 = arith.addf %503, %504 : vector<128x128xf32>
    %cst_159 = arith.constant 6.250000e-02 : f32
    %506 = vector.broadcast %cst_159 : f32 to vector<128x128xf32>
    %507 = arith.mulf %505, %506 : vector<128x128xf32>
    %508 = math.floor %507 : vector<128x128xf32>
    %cst_160 = arith.constant 1.600000e+01 : f32
    %509 = vector.broadcast %cst_160 : f32 to vector<128x128xf32>
    %510 = arith.mulf %509, %508 : vector<128x128xf32>
    %511 = arith.subf %502, %510 : vector<128x128xf32>
    %512 = arith.cmpf oeq, %500, %511 : vector<128x128xf32>
    %513 = arith.extui %512 : vector<128x128xi1> to vector<128x128xi32>
    %514 = arith.sitofp %513 : vector<128x128xi32> to vector<128x128xf32>
    %cst_161 = arith.constant dense<0.000000e+00> : vector<128xf32>
    %515 = vector.multi_reduction <add>, %487, %cst_161 [0] : vector<16x128xf32> to vector<128xf32>
    %516 = vector.shape_cast %515 : vector<128xf32> to vector<1x128xf32>
    %517 = arith.mulf %487, %487 : vector<16x128xf32>
    %cst_162 = arith.constant dense<0.000000e+00> : vector<128xf32>
    %518 = vector.multi_reduction <add>, %517, %cst_162 [0] : vector<16x128xf32> to vector<128xf32>
    %519 = vector.shape_cast %518 : vector<128xf32> to vector<1x128xf32>
    %520 = tpu.iota {dimensions = array<i32: 0>} : vector<16x128xi32>
    %c8_i32_163 = arith.constant 8 : i32
    %521 = vector.broadcast %c8_i32_163 : i32 to vector<16x128xi32>
    %522 = arith.cmpi slt, %520, %521 : vector<16x128xi32>
    %523 = vector.shape_cast %516 : vector<1x128xf32> to vector<1x128xf32>
    %524 = vector.broadcast %523 : vector<1x128xf32> to vector<16x128xf32>
    %525 = vector.shape_cast %519 : vector<1x128xf32> to vector<1x128xf32>
    %526 = vector.broadcast %525 : vector<1x128xf32> to vector<16x128xf32>
    %527 = arith.select %522, %524, %526 : vector<16x128xi1>, vector<16x128xf32>
    %cst_164 = arith.constant dense<0.000000e+00> : vector<16x128xf32>
    %528 = tpu.matmul %527, %514, %cst_164 {dimension_numbers = #tpu.dot_dimension_numbers<[1], [0], [0], [1], [0, 0, 1, 1], [], []>} : vector<16x128xf32>, vector<128x128xf32>, vector<16x128xf32> -> vector<16x128xf32>
    %cst_165 = arith.constant 7.812500e-03 : f32
    %529 = vector.broadcast %cst_165 : f32 to vector<16x128xf32>
    %530 = arith.mulf %528, %529 : vector<16x128xf32>
    %531 = vector.extract_strided_slice %530 {offsets = [0, 0], sizes = [1, 128], strides = [1, 1]} : vector<16x128xf32> to vector<1x128xf32>
    %532 = vector.extract_strided_slice %530 {offsets = [8, 0], sizes = [1, 128], strides = [1, 1]} : vector<16x128xf32> to vector<1x128xf32>
    %533 = arith.mulf %531, %531 : vector<1x128xf32>
    %534 = arith.subf %532, %533 : vector<1x128xf32>
    %535 = vector.broadcast %531 : vector<1x128xf32> to vector<16x128xf32>
    %536 = arith.subf %487, %535 : vector<16x128xf32>
    %cst_166 = arith.constant 9.99999974E-6 : f32
    %537 = vector.broadcast %cst_166 : f32 to vector<1x128xf32>
    %538 = arith.addf %534, %537 : vector<1x128xf32>
    %539 = math.rsqrt %538 : vector<1x128xf32>
    %540 = vector.broadcast %539 : vector<1x128xf32> to vector<16x128xf32>
    %541 = arith.mulf %536, %540 : vector<16x128xf32>
    %542 = vector.broadcast %488 : vector<1x128xf32> to vector<16x128xf32>
    %543 = arith.mulf %541, %542 : vector<16x128xf32>
    %544 = vector.broadcast %489 : vector<1x128xf32> to vector<16x128xf32>
    %545 = arith.addf %543, %544 : vector<16x128xf32>
    %cst_167 = arith.constant 0.000000e+00 : f32
    %546 = vector.broadcast %cst_167 : f32 to vector<16x128xf32>
    %547 = arith.cmpf oge, %545, %546 : vector<16x128xf32>
    %cst_168 = arith.constant 2.000000e-01 : f32
    %548 = vector.broadcast %cst_168 : f32 to vector<16x128xf32>
    %549 = arith.mulf %548, %545 : vector<16x128xf32>
    %550 = arith.select %547, %545, %549 : vector<16x128xi1>, vector<16x128xf32>
    %551 = arith.truncf %550 : vector<16x128xf32> to vector<16x128xbf16>
    %c0_169 = arith.constant 0 : index
    %c0_170 = arith.constant 0 : index
    %c0_171 = arith.constant 0 : index
    %552 = vector.load %arg9[%c0_169, %c0_170, %c0_171] : memref<2x128x128xbf16, #tpu.memory_space<vmem>>, vector<1x128x128xbf16>
    %553 = vector.shape_cast %552 : vector<1x128x128xbf16> to vector<128x128xbf16>
    %cst_172 = arith.constant dense<0.000000e+00> : vector<16x128xf32>
    %554 = tpu.matmul %551, %553, %cst_172 {dimension_numbers = #tpu.dot_dimension_numbers<[1], [0], [0], [1], [0, 0, 1, 1], [], []>} : vector<16x128xbf16>, vector<128x128xbf16>, vector<16x128xf32> -> vector<16x128xf32>
    %555 = arith.truncf %554 : vector<16x128xf32> to vector<16x128xbf16>
    %c1_173 = arith.constant 1 : index
    %c0_174 = arith.constant 0 : index
    %c0_175 = arith.constant 0 : index
    %556 = vector.load %arg9[%c1_173, %c0_174, %c0_175] : memref<2x128x128xbf16, #tpu.memory_space<vmem>>, vector<1x128x128xbf16>
    %557 = vector.shape_cast %556 : vector<1x128x128xbf16> to vector<128x128xbf16>
    %cst_176 = arith.constant dense<0.000000e+00> : vector<16x128xf32>
    %558 = tpu.matmul %551, %557, %cst_176 {dimension_numbers = #tpu.dot_dimension_numbers<[1], [0], [0], [1], [0, 0, 1, 1], [], []>} : vector<16x128xbf16>, vector<128x128xbf16>, vector<16x128xf32> -> vector<16x128xf32>
    %559 = arith.truncf %558 : vector<16x128xf32> to vector<16x128xbf16>
    %560 = tpu.iota {dimensions = array<i32: 0>} : vector<32x16xi32>
    %561 = tpu.iota {dimensions = array<i32: 1>} : vector<32x16xi32>
    %c2_i32_177 = arith.constant 2 : i32
    %562 = vector.broadcast %c2_i32_177 : i32 to vector<32x16xi32>
    %563 = arith.muli %562, %561 : vector<32x16xi32>
    %c0_i32_178 = arith.constant 0 : i32
    %564 = vector.broadcast %c0_i32_178 : i32 to vector<32x16xi32>
    %565 = arith.addi %563, %564 : vector<32x16xi32>
    %566 = arith.cmpi eq, %560, %565 : vector<32x16xi32>
    %567 = arith.extui %566 : vector<32x16xi1> to vector<32x16xi32>
    %568 = arith.sitofp %567 : vector<32x16xi32> to vector<32x16xf32>
    %569 = arith.truncf %568 : vector<32x16xf32> to vector<32x16xbf16>
    %570 = tpu.iota {dimensions = array<i32: 0>} : vector<32x16xi32>
    %571 = tpu.iota {dimensions = array<i32: 1>} : vector<32x16xi32>
    %c2_i32_179 = arith.constant 2 : i32
    %572 = vector.broadcast %c2_i32_179 : i32 to vector<32x16xi32>
    %573 = arith.muli %572, %571 : vector<32x16xi32>
    %c1_i32_180 = arith.constant 1 : i32
    %574 = vector.broadcast %c1_i32_180 : i32 to vector<32x16xi32>
    %575 = arith.addi %573, %574 : vector<32x16xi32>
    %576 = arith.cmpi eq, %570, %575 : vector<32x16xi32>
    %577 = arith.extui %576 : vector<32x16xi1> to vector<32x16xi32>
    %578 = arith.sitofp %577 : vector<32x16xi32> to vector<32x16xf32>
    %579 = arith.truncf %578 : vector<32x16xf32> to vector<32x16xbf16>
    %cst_181 = arith.constant dense<0.000000e+00> : vector<32x128xf32>
    %580 = tpu.matmul %569, %555, %cst_181 {dimension_numbers = #tpu.dot_dimension_numbers<[1], [0], [0], [1], [0, 0, 1, 1], [], []>} : vector<32x16xbf16>, vector<16x128xbf16>, vector<32x128xf32> -> vector<32x128xf32>
    %cst_182 = arith.constant dense<0.000000e+00> : vector<32x128xf32>
    %581 = tpu.matmul %579, %559, %cst_182 {dimension_numbers = #tpu.dot_dimension_numbers<[1], [0], [0], [1], [0, 0, 1, 1], [], []>} : vector<32x16xbf16>, vector<16x128xbf16>, vector<32x128xf32> -> vector<32x128xf32>
    %582 = arith.addf %580, %581 : vector<32x128xf32>
    %c18 = arith.constant 18 : index
    %c0_183 = arith.constant 0 : index
    %583 = vector.load %arg11[%c18, %c0_183] : memref<24x128xf32, #tpu.memory_space<vmem>>, vector<1x128xf32>
    %584 = vector.broadcast %583 : vector<1x128xf32> to vector<32x128xf32>
    %585 = arith.addf %582, %584 : vector<32x128xf32>
    %c19 = arith.constant 19 : index
    %c0_184 = arith.constant 0 : index
    %586 = vector.load %arg11[%c19, %c0_184] : memref<24x128xf32, #tpu.memory_space<vmem>>, vector<1x128xf32>
    %c20 = arith.constant 20 : index
    %c0_185 = arith.constant 0 : index
    %587 = vector.load %arg11[%c20, %c0_185] : memref<24x128xf32, #tpu.memory_space<vmem>>, vector<1x128xf32>
    %588 = tpu.iota {dimensions = array<i32: 0>} : vector<128x128xi32>
    %589 = arith.sitofp %588 : vector<128x128xi32> to vector<128x128xf32>
    %590 = arith.sitofp %588 : vector<128x128xi32> to vector<128x128xf32>
    %cst_186 = arith.constant 5.000000e-01 : f32
    %591 = vector.broadcast %cst_186 : f32 to vector<128x128xf32>
    %592 = arith.addf %590, %591 : vector<128x128xf32>
    %cst_187 = arith.constant 1.250000e-01 : f32
    %593 = vector.broadcast %cst_187 : f32 to vector<128x128xf32>
    %594 = arith.mulf %592, %593 : vector<128x128xf32>
    %595 = math.floor %594 : vector<128x128xf32>
    %cst_188 = arith.constant 8.000000e+00 : f32
    %596 = vector.broadcast %cst_188 : f32 to vector<128x128xf32>
    %597 = arith.mulf %596, %595 : vector<128x128xf32>
    %598 = arith.subf %589, %597 : vector<128x128xf32>
    %599 = tpu.iota {dimensions = array<i32: 1>} : vector<128x128xi32>
    %600 = arith.sitofp %599 : vector<128x128xi32> to vector<128x128xf32>
    %601 = arith.sitofp %599 : vector<128x128xi32> to vector<128x128xf32>
    %cst_189 = arith.constant 5.000000e-01 : f32
    %602 = vector.broadcast %cst_189 : f32 to vector<128x128xf32>
    %603 = arith.addf %601, %602 : vector<128x128xf32>
    %cst_190 = arith.constant 1.250000e-01 : f32
    %604 = vector.broadcast %cst_190 : f32 to vector<128x128xf32>
    %605 = arith.mulf %603, %604 : vector<128x128xf32>
    %606 = math.floor %605 : vector<128x128xf32>
    %cst_191 = arith.constant 8.000000e+00 : f32
    %607 = vector.broadcast %cst_191 : f32 to vector<128x128xf32>
    %608 = arith.mulf %607, %606 : vector<128x128xf32>
    %609 = arith.subf %600, %608 : vector<128x128xf32>
    %610 = arith.cmpf oeq, %598, %609 : vector<128x128xf32>
    %611 = arith.extui %610 : vector<128x128xi1> to vector<128x128xi32>
    %612 = arith.sitofp %611 : vector<128x128xi32> to vector<128x128xf32>
    %cst_192 = arith.constant dense<0.000000e+00> : vector<128xf32>
    %613 = vector.multi_reduction <add>, %585, %cst_192 [0] : vector<32x128xf32> to vector<128xf32>
    %614 = vector.shape_cast %613 : vector<128xf32> to vector<1x128xf32>
    %615 = arith.mulf %585, %585 : vector<32x128xf32>
    %cst_193 = arith.constant dense<0.000000e+00> : vector<128xf32>
    %616 = vector.multi_reduction <add>, %615, %cst_193 [0] : vector<32x128xf32> to vector<128xf32>
    %617 = vector.shape_cast %616 : vector<128xf32> to vector<1x128xf32>
    %618 = tpu.iota {dimensions = array<i32: 0>} : vector<16x128xi32>
    %c8_i32_194 = arith.constant 8 : i32
    %619 = vector.broadcast %c8_i32_194 : i32 to vector<16x128xi32>
    %620 = arith.cmpi slt, %618, %619 : vector<16x128xi32>
    %621 = vector.shape_cast %614 : vector<1x128xf32> to vector<1x128xf32>
    %622 = vector.broadcast %621 : vector<1x128xf32> to vector<16x128xf32>
    %623 = vector.shape_cast %617 : vector<1x128xf32> to vector<1x128xf32>
    %624 = vector.broadcast %623 : vector<1x128xf32> to vector<16x128xf32>
    %625 = arith.select %620, %622, %624 : vector<16x128xi1>, vector<16x128xf32>
    %cst_195 = arith.constant dense<0.000000e+00> : vector<16x128xf32>
    %626 = tpu.matmul %625, %612, %cst_195 {dimension_numbers = #tpu.dot_dimension_numbers<[1], [0], [0], [1], [0, 0, 1, 1], [], []>} : vector<16x128xf32>, vector<128x128xf32>, vector<16x128xf32> -> vector<16x128xf32>
    %cst_196 = arith.constant 0.001953125 : f32
    %627 = vector.broadcast %cst_196 : f32 to vector<16x128xf32>
    %628 = arith.mulf %626, %627 : vector<16x128xf32>
    %629 = vector.extract_strided_slice %628 {offsets = [0, 0], sizes = [1, 128], strides = [1, 1]} : vector<16x128xf32> to vector<1x128xf32>
    %630 = vector.extract_strided_slice %628 {offsets = [8, 0], sizes = [1, 128], strides = [1, 1]} : vector<16x128xf32> to vector<1x128xf32>
    %631 = arith.mulf %629, %629 : vector<1x128xf32>
    %632 = arith.subf %630, %631 : vector<1x128xf32>
    %633 = vector.broadcast %629 : vector<1x128xf32> to vector<32x128xf32>
    %634 = arith.subf %585, %633 : vector<32x128xf32>
    %cst_197 = arith.constant 9.99999974E-6 : f32
    %635 = vector.broadcast %cst_197 : f32 to vector<1x128xf32>
    %636 = arith.addf %632, %635 : vector<1x128xf32>
    %637 = math.rsqrt %636 : vector<1x128xf32>
    %638 = vector.broadcast %637 : vector<1x128xf32> to vector<32x128xf32>
    %639 = arith.mulf %634, %638 : vector<32x128xf32>
    %640 = vector.broadcast %586 : vector<1x128xf32> to vector<32x128xf32>
    %641 = arith.mulf %639, %640 : vector<32x128xf32>
    %642 = vector.broadcast %587 : vector<1x128xf32> to vector<32x128xf32>
    %643 = arith.addf %641, %642 : vector<32x128xf32>
    %cst_198 = arith.constant 0.000000e+00 : f32
    %644 = vector.broadcast %cst_198 : f32 to vector<32x128xf32>
    %645 = arith.cmpf oge, %643, %644 : vector<32x128xf32>
    %cst_199 = arith.constant 2.000000e-01 : f32
    %646 = vector.broadcast %cst_199 : f32 to vector<32x128xf32>
    %647 = arith.mulf %646, %643 : vector<32x128xf32>
    %648 = arith.select %645, %643, %647 : vector<32x128xi1>, vector<32x128xf32>
    %649 = arith.truncf %648 : vector<32x128xf32> to vector<32x128xbf16>
    %c0_200 = arith.constant 0 : index
    %c0_201 = arith.constant 0 : index
    %c0_202 = arith.constant 0 : index
    %650 = vector.load %arg10[%c0_200, %c0_201, %c0_202] : memref<2x128x96xbf16, #tpu.memory_space<vmem>>, vector<1x128x96xbf16>
    %651 = vector.shape_cast %650 : vector<1x128x96xbf16> to vector<128x96xbf16>
    %cst_203 = arith.constant dense<0.000000e+00> : vector<32x96xf32>
    %652 = tpu.matmul %649, %651, %cst_203 {dimension_numbers = #tpu.dot_dimension_numbers<[1], [0], [0], [1], [0, 0, 1, 1], [], []>} : vector<32x128xbf16>, vector<128x96xbf16>, vector<32x96xf32> -> vector<32x96xf32>
    %653 = arith.truncf %652 : vector<32x96xf32> to vector<32x96xbf16>
    %c1_204 = arith.constant 1 : index
    %c0_205 = arith.constant 0 : index
    %c0_206 = arith.constant 0 : index
    %654 = vector.load %arg10[%c1_204, %c0_205, %c0_206] : memref<2x128x96xbf16, #tpu.memory_space<vmem>>, vector<1x128x96xbf16>
    %655 = vector.shape_cast %654 : vector<1x128x96xbf16> to vector<128x96xbf16>
    %cst_207 = arith.constant dense<0.000000e+00> : vector<32x96xf32>
    %656 = tpu.matmul %649, %655, %cst_207 {dimension_numbers = #tpu.dot_dimension_numbers<[1], [0], [0], [1], [0, 0, 1, 1], [], []>} : vector<32x128xbf16>, vector<128x96xbf16>, vector<32x96xf32> -> vector<32x96xf32>
    %657 = arith.truncf %656 : vector<32x96xf32> to vector<32x96xbf16>
    %658 = tpu.iota {dimensions = array<i32: 0>} : vector<64x32xi32>
    %659 = tpu.iota {dimensions = array<i32: 1>} : vector<64x32xi32>
    %c2_i32_208 = arith.constant 2 : i32
    %660 = vector.broadcast %c2_i32_208 : i32 to vector<64x32xi32>
    %661 = arith.muli %660, %659 : vector<64x32xi32>
    %c0_i32_209 = arith.constant 0 : i32
    %662 = vector.broadcast %c0_i32_209 : i32 to vector<64x32xi32>
    %663 = arith.addi %661, %662 : vector<64x32xi32>
    %664 = arith.cmpi eq, %658, %663 : vector<64x32xi32>
    %665 = arith.extui %664 : vector<64x32xi1> to vector<64x32xi32>
    %666 = arith.sitofp %665 : vector<64x32xi32> to vector<64x32xf32>
    %667 = arith.truncf %666 : vector<64x32xf32> to vector<64x32xbf16>
    %668 = tpu.iota {dimensions = array<i32: 0>} : vector<64x32xi32>
    %669 = tpu.iota {dimensions = array<i32: 1>} : vector<64x32xi32>
    %c2_i32_210 = arith.constant 2 : i32
    %670 = vector.broadcast %c2_i32_210 : i32 to vector<64x32xi32>
    %671 = arith.muli %670, %669 : vector<64x32xi32>
    %c1_i32_211 = arith.constant 1 : i32
    %672 = vector.broadcast %c1_i32_211 : i32 to vector<64x32xi32>
    %673 = arith.addi %671, %672 : vector<64x32xi32>
    %674 = arith.cmpi eq, %668, %673 : vector<64x32xi32>
    %675 = arith.extui %674 : vector<64x32xi1> to vector<64x32xi32>
    %676 = arith.sitofp %675 : vector<64x32xi32> to vector<64x32xf32>
    %677 = arith.truncf %676 : vector<64x32xf32> to vector<64x32xbf16>
    %cst_212 = arith.constant dense<0.000000e+00> : vector<64x96xf32>
    %678 = tpu.matmul %667, %653, %cst_212 {dimension_numbers = #tpu.dot_dimension_numbers<[1], [0], [0], [1], [0, 0, 1, 1], [], []>} : vector<64x32xbf16>, vector<32x96xbf16>, vector<64x96xf32> -> vector<64x96xf32>
    %cst_213 = arith.constant dense<0.000000e+00> : vector<64x96xf32>
    %679 = tpu.matmul %677, %657, %cst_213 {dimension_numbers = #tpu.dot_dimension_numbers<[1], [0], [0], [1], [0, 0, 1, 1], [], []>} : vector<64x32xbf16>, vector<32x96xbf16>, vector<64x96xf32> -> vector<64x96xf32>
    %680 = arith.addf %678, %679 : vector<64x96xf32>
    %c21 = arith.constant 21 : index
    %c0_214 = arith.constant 0 : index
    %681 = vector.load %arg11[%c21, %c0_214] : memref<24x128xf32, #tpu.memory_space<vmem>>, vector<1x96xf32>
    %682 = vector.broadcast %681 : vector<1x96xf32> to vector<64x96xf32>
    %683 = arith.addf %680, %682 : vector<64x96xf32>
    %c22 = arith.constant 22 : index
    %c0_215 = arith.constant 0 : index
    %684 = vector.load %arg11[%c22, %c0_215] : memref<24x128xf32, #tpu.memory_space<vmem>>, vector<1x96xf32>
    %c23 = arith.constant 23 : index
    %c0_216 = arith.constant 0 : index
    %685 = vector.load %arg11[%c23, %c0_216] : memref<24x128xf32, #tpu.memory_space<vmem>>, vector<1x96xf32>
    %686 = tpu.iota {dimensions = array<i32: 0>} : vector<96x96xi32>
    %687 = arith.sitofp %686 : vector<96x96xi32> to vector<96x96xf32>
    %688 = arith.sitofp %686 : vector<96x96xi32> to vector<96x96xf32>
    %cst_217 = arith.constant 5.000000e-01 : f32
    %689 = vector.broadcast %cst_217 : f32 to vector<96x96xf32>
    %690 = arith.addf %688, %689 : vector<96x96xf32>
    %cst_218 = arith.constant 0.333333343 : f32
    %691 = vector.broadcast %cst_218 : f32 to vector<96x96xf32>
    %692 = arith.mulf %690, %691 : vector<96x96xf32>
    %693 = math.floor %692 : vector<96x96xf32>
    %cst_219 = arith.constant 3.000000e+00 : f32
    %694 = vector.broadcast %cst_219 : f32 to vector<96x96xf32>
    %695 = arith.mulf %694, %693 : vector<96x96xf32>
    %696 = arith.subf %687, %695 : vector<96x96xf32>
    %697 = tpu.iota {dimensions = array<i32: 1>} : vector<96x96xi32>
    %698 = arith.sitofp %697 : vector<96x96xi32> to vector<96x96xf32>
    %699 = arith.sitofp %697 : vector<96x96xi32> to vector<96x96xf32>
    %cst_220 = arith.constant 5.000000e-01 : f32
    %700 = vector.broadcast %cst_220 : f32 to vector<96x96xf32>
    %701 = arith.addf %699, %700 : vector<96x96xf32>
    %cst_221 = arith.constant 0.333333343 : f32
    %702 = vector.broadcast %cst_221 : f32 to vector<96x96xf32>
    %703 = arith.mulf %701, %702 : vector<96x96xf32>
    %704 = math.floor %703 : vector<96x96xf32>
    %cst_222 = arith.constant 3.000000e+00 : f32
    %705 = vector.broadcast %cst_222 : f32 to vector<96x96xf32>
    %706 = arith.mulf %705, %704 : vector<96x96xf32>
    %707 = arith.subf %698, %706 : vector<96x96xf32>
    %708 = arith.cmpf oeq, %696, %707 : vector<96x96xf32>
    %709 = arith.extui %708 : vector<96x96xi1> to vector<96x96xi32>
    %710 = arith.sitofp %709 : vector<96x96xi32> to vector<96x96xf32>
    %cst_223 = arith.constant dense<0.000000e+00> : vector<96xf32>
    %711 = vector.multi_reduction <add>, %683, %cst_223 [0] : vector<64x96xf32> to vector<96xf32>
    %712 = vector.shape_cast %711 : vector<96xf32> to vector<1x96xf32>
    %713 = arith.mulf %683, %683 : vector<64x96xf32>
    %cst_224 = arith.constant dense<0.000000e+00> : vector<96xf32>
    %714 = vector.multi_reduction <add>, %713, %cst_224 [0] : vector<64x96xf32> to vector<96xf32>
    %715 = vector.shape_cast %714 : vector<96xf32> to vector<1x96xf32>
    %716 = tpu.iota {dimensions = array<i32: 0>} : vector<16x96xi32>
    %c8_i32_225 = arith.constant 8 : i32
    %717 = vector.broadcast %c8_i32_225 : i32 to vector<16x96xi32>
    %718 = arith.cmpi slt, %716, %717 : vector<16x96xi32>
    %719 = vector.shape_cast %712 : vector<1x96xf32> to vector<1x96xf32>
    %720 = vector.broadcast %719 : vector<1x96xf32> to vector<16x96xf32>
    %721 = vector.shape_cast %715 : vector<1x96xf32> to vector<1x96xf32>
    %722 = vector.broadcast %721 : vector<1x96xf32> to vector<16x96xf32>
    %723 = arith.select %718, %720, %722 : vector<16x96xi1>, vector<16x96xf32>
    %cst_226 = arith.constant dense<0.000000e+00> : vector<16x96xf32>
    %724 = tpu.matmul %723, %710, %cst_226 {dimension_numbers = #tpu.dot_dimension_numbers<[1], [0], [0], [1], [0, 0, 1, 1], [], []>} : vector<16x96xf32>, vector<96x96xf32>, vector<16x96xf32> -> vector<16x96xf32>
    %cst_227 = arith.constant 4.8828125E-4 : f32
    %725 = vector.broadcast %cst_227 : f32 to vector<16x96xf32>
    %726 = arith.mulf %724, %725 : vector<16x96xf32>
    %727 = vector.extract_strided_slice %726 {offsets = [0, 0], sizes = [1, 96], strides = [1, 1]} : vector<16x96xf32> to vector<1x96xf32>
    %728 = vector.extract_strided_slice %726 {offsets = [8, 0], sizes = [1, 96], strides = [1, 1]} : vector<16x96xf32> to vector<1x96xf32>
    %729 = arith.mulf %727, %727 : vector<1x96xf32>
    %730 = arith.subf %728, %729 : vector<1x96xf32>
    %731 = vector.broadcast %727 : vector<1x96xf32> to vector<64x96xf32>
    %732 = arith.subf %683, %731 : vector<64x96xf32>
    %cst_228 = arith.constant 9.99999974E-6 : f32
    %733 = vector.broadcast %cst_228 : f32 to vector<1x96xf32>
    %734 = arith.addf %730, %733 : vector<1x96xf32>
    %735 = math.rsqrt %734 : vector<1x96xf32>
    %736 = vector.broadcast %735 : vector<1x96xf32> to vector<64x96xf32>
    %737 = arith.mulf %732, %736 : vector<64x96xf32>
    %738 = vector.broadcast %684 : vector<1x96xf32> to vector<64x96xf32>
    %739 = arith.mulf %737, %738 : vector<64x96xf32>
    %740 = vector.broadcast %685 : vector<1x96xf32> to vector<64x96xf32>
    %741 = arith.addf %739, %740 : vector<64x96xf32>
    %cst_229 = arith.constant 0.000000e+00 : f32
    %742 = vector.broadcast %cst_229 : f32 to vector<64x96xf32>
    %743 = arith.subf %742, %741 : vector<64x96xf32>
    %744 = math.exp %743 : vector<64x96xf32>
    %cst_230 = arith.constant 1.000000e+00 : f32
    %745 = vector.broadcast %cst_230 : f32 to vector<64x96xf32>
    %746 = arith.addf %745, %744 : vector<64x96xf32>
    %cst_231 = arith.constant 1.000000e+00 : f32
    %747 = vector.broadcast %cst_231 : f32 to vector<64x96xf32>
    %748 = arith.divf %747, %746 : vector<64x96xf32>
    %c0_232 = arith.constant 0 : index
    %c0_233 = arith.constant 0 : index
    %749 = vector.load %arg13[%c0_232, %c0_233] : memref<64x96xf32, #tpu.memory_space<vmem>>, vector<64x96xf32>
    tpu.vector_store %arg13[%c0_232, %c0_233], %748 {strides = array<i32>} : memref<64x96xf32, #tpu.memory_space<vmem>>, vector<64x96xf32>,
    return
  }
  func.func @transform_0(%arg0: i32) -> (i32, i32) {
    %c0_i32 = arith.constant 0 : i32
    %c0_i32_0 = arith.constant 0 : i32
    %c0_i32_1 = arith.constant 0 : i32
    return %c0_i32, %c0_i32_0 : i32, i32
  }
  func.func @transform_1(%arg0: i32) -> (i32, i32) {
    %c0_i32 = arith.constant 0 : i32
    %c0_i32_0 = arith.constant 0 : i32
    %c0_i32_1 = arith.constant 0 : i32
    return %c0_i32, %c0_i32_0 : i32, i32
  }
  func.func @transform_2(%arg0: i32) -> (i32, i32, i32) {
    %c0_i32 = arith.constant 0 : i32
    %c0_i32_0 = arith.constant 0 : i32
    %c0_i32_1 = arith.constant 0 : i32
    %c0_i32_2 = arith.constant 0 : i32
    return %c0_i32, %c0_i32_0, %c0_i32_1 : i32, i32, i32
  }
  func.func @transform_3(%arg0: i32) -> (i32, i32, i32) {
    %c0_i32 = arith.constant 0 : i32
    %c0_i32_0 = arith.constant 0 : i32
    %c0_i32_1 = arith.constant 0 : i32
    %c0_i32_2 = arith.constant 0 : i32
    return %c0_i32, %c0_i32_0, %c0_i32_1 : i32, i32, i32
  }
  func.func @transform_4(%arg0: i32) -> (i32, i32, i32) {
    %c0_i32 = arith.constant 0 : i32
    %c0_i32_0 = arith.constant 0 : i32
    %c0_i32_1 = arith.constant 0 : i32
    %c0_i32_2 = arith.constant 0 : i32
    return %c0_i32, %c0_i32_0, %c0_i32_1 : i32, i32, i32
  }
  func.func @transform_5(%arg0: i32) -> (i32, i32) {
    %c0_i32 = arith.constant 0 : i32
    %c0_i32_0 = arith.constant 0 : i32
    %c0_i32_1 = arith.constant 0 : i32
    return %c0_i32, %c0_i32_0 : i32, i32
  }
  func.func @transform_6(%arg0: i32) -> (i32, i32) {
    %c0_i32 = arith.constant 0 : i32
    %c0_i32_0 = arith.constant 0 : i32
    %c0_i32_1 = arith.constant 0 : i32
    return %c0_i32, %c0_i32_0 : i32, i32
  }
  func.func @transform_7(%arg0: i32) -> (i32, i32, i32) {
    %c0_i32 = arith.constant 0 : i32
    %c0_i32_0 = arith.constant 0 : i32
    %c0_i32_1 = arith.constant 0 : i32
    %c0_i32_2 = arith.constant 0 : i32
    return %c0_i32, %c0_i32_0, %c0_i32_1 : i32, i32, i32
  }
  func.func @transform_8(%arg0: i32) -> (i32, i32, i32) {
    %c0_i32 = arith.constant 0 : i32
    %c0_i32_0 = arith.constant 0 : i32
    %c0_i32_1 = arith.constant 0 : i32
    %c0_i32_2 = arith.constant 0 : i32
    return %c0_i32, %c0_i32_0, %c0_i32_1 : i32, i32, i32
  }
  func.func @transform_9(%arg0: i32) -> (i32, i32, i32) {
    %c0_i32 = arith.constant 0 : i32
    %c0_i32_0 = arith.constant 0 : i32
    %c0_i32_1 = arith.constant 0 : i32
    %c0_i32_2 = arith.constant 0 : i32
    return %c0_i32, %c0_i32_0, %c0_i32_1 : i32, i32, i32
  }
  func.func @transform_10(%arg0: i32) -> (i32, i32) {
    %c0_i32 = arith.constant 0 : i32
    %c0_i32_0 = arith.constant 0 : i32
    %c0_i32_1 = arith.constant 0 : i32
    return %c0_i32, %c0_i32_0 : i32, i32
  }
  func.func @transform_11(%arg0: i32) -> (i32, i32, i32) {
    %c0_i32 = arith.constant 0 : i32
    %c0_i32_0 = arith.constant 0 : i32
    %c0_i32_1 = arith.constant 0 : i32
    %c0_i32_2 = arith.constant 0 : i32
    return %c0_i32, %c0_i32_0, %c0_i32_1 : i32, i32, i32
  }
  func.func @transform_12(%arg0: i32) -> (i32, i32) {
    %c0_i32 = arith.constant 0 : i32
    %c0_i32_0 = arith.constant 0 : i32
    %c0_i32_1 = arith.constant 0 : i32
    return %c0_i32, %c0_i32_0 : i32, i32
  }
}

</mosaic_0001>

<bundles_post_ra>
// kernel: vae_forward.1
= control target key start
LH: loop header
LB: loop body
LE: loop exit
PB: predicated region body
PF: predicated region fallthrough
CT: control target
= control target key end

     0   :  { %v53_v0 = vlaneseq  ;;  %v5772_v26 = vmov 0.0   ;;  %vm5790_vm4 = vcmask 523264   ;;  %vm5789_vm9 = vcmask 785408   ;;  %s5759_s0 = inlined_call_operand.vmem [shape: f32[64,96], index: 0, kind: input, shape index: {}]   ;;  %s5760_s2 = inlined_call_operand.vmem [shape: bf16[2,96,128], index: 2, kind: input, shape index: {}]   ;;  %s5761_s10 = inlined_call_operand.vmem [shape: f32[24,128], index: 10, kind: input, shape index: {}]   ;;  %s5762_s3 = inlined_call_operand.vmem [shape: bf16[2,128,128], index: 3, kind: input, shape index: {}]   ;;  %s5763_s4 = inlined_call_operand.vmem [shape: bf16[2,128,128], index: 4, kind: input, shape index: {}]   ;;  %s5764_s5 = inlined_call_operand.vmem [shape: bf16[128,128], index: 5, kind: input, shape index: {}]   ;;  %s5765_s11 = inlined_call_operand.vmem [shape: f32[2,2,16], index: 11, kind: output, shape index: {0}]   ;;  %s5766_s1 = inlined_call_operand.vmem [shape: f32[2,16], index: 1, kind: input, shape index: {}]   ;;  %s5767_s6 = inlined_call_operand.vmem [shape: bf16[64,128], index: 6, kind: input, shape index: {}]   ;;  %s5768_s7 = inlined_call_operand.vmem [shape: bf16[2,128,128], index: 7, kind: input, shape index: {}]   ;;  %s5769_s8 = inlined_call_operand.vmem [shape: bf16[2,128,128], index: 8, kind: input, shape index: {}]   ;;  %s5770_s9 = inlined_call_operand.vmem [shape: bf16[2,128,96], index: 9, kind: input, shape index: {}]   ;;  %s5771_s12 = inlined_call_operand.vmem [shape: f32[64,96], index: 12, kind: output, shape index: {1}]  }
   0x1   :  { %v47_v1 = vld [vmem:[%s5759_s0 + $0x30] sm:$0xff]  ;;  %v48_v2 = vld [vmem:[%s5759_s0 + $0x38] sm:$0xff]  ;;  %v45_v3 = vld [vmem:[%s5759_s0 + $0x20] sm:$0xff] }
   0x2   :  { %v52_v4 = vpack.c.bf16 %v48_v2, %v47_v1  ;;  %v46_v5 = vld [vmem:[%s5759_s0 + $0x28] sm:$0xff]  ;;  %v4093_v6 = vshrl.u32 %v53_v0, 7  ;;  %v3853_v7 = vld [vmem:[%s5760_s2 + $0x58] sm:$0xff]  ;;  %v43_v12 = vld [vmem:[%s5759_s0 + $0x10] sm:$0xff]  ;;  %v4111_v14 = vand.u32 127, %v53_v0 }
   0x3   :  { %v51_v8 = vpack.c.bf16 %v46_v5, %v45_v3  ;;  %v3847_v11 = vld [vmem:[%s5760_s2 + $0x28] sm:$0xff]  ;;  %v44_v13 = vld [vmem:[%s5759_s0 + $0x18] sm:$0xff]  ;;  %221 = vmatpush.bf16.msra.mxu2 %v3853_v7  ;;  %v3852_v15 = vld [vmem:[%s5760_s2 + $0x50] sm:$0xff] }
   0x4   :  { %5857 = vst [vmem:[#allocation2_spill] sm:$0xff] %v4093_v6  ;;  %107 = vmatpush.bf16.msra.mxu0 %v52_v4  ;;  %134 = vmatpush.bf16.msra.mxu1 %v52_v4  ;;  %v4099_v9 = vadd.s32 8, %v4093_v6  ;;  %v60_v10 = vmul.u32 2, %v4093_v6  ;;  %v3846_v18 = vld [vmem:[%s5760_s2 + $0x20] sm:$0xff]  ;;  %v50_v19 = vpack.c.bf16 %v44_v13, %v43_v12  ;;  %v42_v21 = vld [vmem:[%s5759_s0 + $0x8] sm:$0xff]  ;;  %v3845_v24 = vld [vmem:[%s5760_s2 + $0x18] sm:$0xff]  ;;  %v4195_v63 = vcvt.s32.f32 %v4111_v14 }
   0x5   :  { %5859 = vst [vmem:[#allocation4_spill] sm:$0xff] %v4111_v14  ;;  %282 = vmatpush.bf16.msra.mxu3 %v3847_v11  ;;  %v41_v20 = vld [vmem:[%s5759_s0] sm:$0xff]  ;;  %v3851_v23 = vld [vmem:[%s5760_s2 + $0x48] sm:$0xff]  ;;  %v4145_v31 = vadd.s32 16, %v4093_v6  ;;  %v4148_v32 = vadd.s32 24, %v4093_v6  ;;  %v3844_v46 = vld [vmem:[%s5760_s2 + $0x10] sm:$0xff] }
   0x6   :  { %5858 = vst [vmem:[#allocation3_spill] sm:$0xff] %v4099_v9  ;;  %v61_v16 = vmul.u32 2, %v4099_v9  ;;  %v78_v17 = vadd.s32 1, %v60_v10  ;;  %vm64_vm0 = vcmp.eq.s32.totalorder %v4111_v14, %v60_v10  ;;  %v49_v25 = vpack.c.bf16 %v42_v21, %v41_v20  ;;  %v3850_v45 = vld [vmem:[%s5760_s2 + $0x40] sm:$0xff]  ;;  %v3849_v47 = vld [vmem:[%s5760_s2 + $0x38] sm:$0xff]  ;;  %v3843_v48 = vld [vmem:[%s5760_s2 + $0x8] sm:$0xff] }
   0x7   :  { %222 = vmatpush.bf16.msra.mxu2 %v3852_v15  ;;  %v4137_v27 = vsel %vm64_vm0, 1.0, %v5772_v26  ;;  %5860 = vst [vmem:[#allocation5_spill] sm:$0xff] %v4145_v31  ;;  %v62_v35 = vmul.u32 2, %v4145_v31  ;;  %v63_v36 = vmul.u32 2, %v4148_v32  ;;  %v3848_v49 = vld [vmem:[%s5760_s2 + $0x30] sm:$0xff]  ;;  %v3842_v50 = vld [vmem:[%s5760_s2] sm:$0xff] }
   0x8   :  { %108 = vmatpush.bf16.msra.mxu0 %v51_v8  ;;  %135 = vmatpush.bf16.msra.mxu1 %v51_v8  ;;  %v79_v22 = vadd.s32 1, %v61_v16  ;;  %vm65_vm1 = vcmp.eq.s32.totalorder %v4111_v14, %v61_v16  ;;  %vm82_vm2 = vcmp.eq.s32.totalorder %v4111_v14, %v78_v17  ;;  %5861 = vst [vmem:[#allocation6_spill] sm:$0xff] %v4148_v32  ;;  %v318_v0 = vadd.s32 120, %v4093_v6 }
   0x9   :  { %283 = vmatpush.bf16.msra.mxu3 %v3846_v18  ;;  %v3049_v28 = vsel %vm65_vm1, 1.0, %v5772_v26  ;;  %v4141_v29 = vsel %vm82_vm2, 1.0, %v5772_v26  ;;  %v80_v37 = vadd.s32 1, %v62_v35  ;;  %v81_v38 = vadd.s32 1, %v63_v36 }
   0xa   :  { %vm83_vm3 = vcmp.eq.s32.totalorder %v4111_v14, %v79_v22  ;;  %v4151_v33 = vpack.c.bf16 %v3049_v28, %v4137_v27  ;;  %vm66_vm5 = vcmp.eq.s32.totalorder %v4111_v14, %v62_v35  ;;  %vm67_vm6 = vcmp.eq.s32.totalorder %v4111_v14, %v63_v36 }
   0xb   :  { %v3053_v30 = vsel %vm83_vm3, 1.0, %v5772_v26  ;;  %223 = vmatpush.bf16.msra.mxu2 %v3851_v23  ;;  %vm84_vm7 = vcmp.eq.s32.totalorder %v4111_v14, %v80_v37  ;;  %vm85_vm8 = vcmp.eq.s32.totalorder %v4111_v14, %v81_v38  ;;  %v3050_v39 = vsel %vm66_vm5, 1.0, %v5772_v26 }
   0xc   :  { %109 = vmatpush.bf16.msra.mxu0 %v50_v19  ;;  %136 = vmatpush.bf16.msra.mxu1 %v50_v19  ;;  %v4154_v34 = vpack.c.bf16 %v3053_v30, %v4141_v29  ;;  %v3051_v40 = vsel %vm67_vm6, 1.0, %v5772_v26  ;;  %v3054_v41 = vsel %vm84_vm7, 1.0, %v5772_v26  ;;  %v3055_v42 = vsel %vm85_vm8, 1.0, %v5772_v26 }
   0xd   :  { %284 = vmatpush.bf16.msra.mxu3 %v3845_v24  ;;  %v77_v43 = vpack.c.bf16 %v3051_v40, %v3050_v39  ;;  %v95_v44 = vpack.c.bf16 %v3055_v42, %v3054_v41  ;;  %v4198_v1 = vcvt.s32.f32 %v318_v0  ;;  %v317_v2 = vadd.s32 112, %v4093_v6 }
   0xe   :  { %v4205_v4 = vadd.f32 0.5, %v4195_v63  ;;  %v316_v7 = vadd.s32 104, %v4093_v6  ;;  %v315_v13 = vadd.s32 96, %v4093_v6  ;;  %v314_v20 = vadd.s32 88, %v4093_v6 }
   0xf   :  { %224 = vmatpush.bf16.msra.mxu2 %v3850_v45  ;;  %v4202_v3 = vadd.f32 0.5, %v4198_v1  ;;  %v4207_v5 = vcvt.s32.f32 %v317_v2  ;;  %v313_v30 = vadd.s32 80, %v4093_v6  ;;  %v312_v42 = vadd.s32 72, %v4093_v6 }
  0x10   :  { %110 = vmatpush.bf16.msra.mxu0 %v49_v25  ;;  %137 = vmatpush.bf16.msra.mxu1 %v49_v25  ;;  %v417_v10 = vmul.f32 0.125, %v4205_v4  ;;  %v4215_v12 = vcvt.s32.f32 %v316_v7  ;;  %v4222_v19 = vcvt.s32.f32 %v315_v13  ;;  %v4229_v28 = vcvt.s32.f32 %v314_v20 }
  0x11   :  { %285 = vmatpush.bf16.msra.mxu3 %v3844_v46  ;;  %v366_v8 = vmul.f32 0.125, %v4202_v3  ;;  %v4213_v11 = vadd.f32 0.5, %v4207_v5  ;;  %v4240_v41 = vcvt.s32.f32 %v313_v30  ;;  %v5795_v46 = vmov 1.0  }
  0x12   :  { %v418_v16 = vfloor.f32 %v417_v10  ;;  %v4220_v18 = vadd.f32 0.5, %v4215_v12  ;;  %v4227_v25 = vadd.f32 0.5, %v4222_v19  ;;  %v4238_v40 = vadd.f32 0.5, %v4229_v28 }
  0x13   :  { %3056 = vmatmul.msk.bf16.vlgmr.msra.gmra.mxu0 %vm5790_vm4, %v4151_v33  ;;  %3058 = vmatmul.msk.bf16.vlgmr.msra.gmra.mxu1 %vm5790_vm4, %v4154_v34  ;;  %v382_v15 = vfloor.f32 %v366_v8  ;;  %v365_v17 = vmul.f32 0.125, %v4213_v11  ;;  %v4297_v13 = vadd.s32 48, %v4093_v6 }
  0x14   :  { %225 = vmatpush.bf16.msra.mxu2 %v3849_v47  ;;  %v419_v22 = vmul.f32 8.0, %v418_v16  ;;  %v364_v24 = vmul.f32 0.125, %v4220_v18  ;;  %v363_v39 = vmul.f32 0.125, %v4227_v25 }
  0x15   :  { %286 = vmatpush.bf16.msra.mxu3 %v3843_v48  ;;  %v398_v21 = vmul.f32 8.0, %v382_v15  ;;  %v381_v23 = vfloor.f32 %v365_v17  ;;  %v362_v48 = vmul.f32 0.125, %v4238_v40  ;;  %5872 = vst [vmem:[#allocation11_spill] sm:$0xff] %v4297_v13  ;;  %v5873_v15 = vmov 0 }
  0x16   :  { %v4234_v36 = vsub.f32 %v4195_v63, %v419_v22  ;;  %v380_v38 = vfloor.f32 %v364_v24  ;;  %v379_v47 = vfloor.f32 %v363_v39  ;;  %v5876_v24 = vmov 0 }
  0x17   :  { %v414_v35 = vsub.f32 %v4198_v1, %v398_v21  ;;  %v397_v37 = vmul.f32 8.0, %v381_v23  ;;  %v4311_v23 = vcvt.s32.f32 %v4297_v13 }
  0x18   :  { %226 = vmatpush.bf16.msra.mxu2 %v3848_v49  ;;  %v396_v45 = vmul.f32 8.0, %v380_v38  ;;  %v4254_v49 = vadd.f32 0.5, %v4240_v41 }
  0x19   :  { %287 = vmatpush.bf16.msra.mxu3 %v3842_v50  ;;  %vm4244_vm10 = vcmp.eq.f32.partialorder %v414_v35, %v4234_v36  ;;  %v4256_v50 = vcvt.s32.f32 %v312_v42  ;;  %v4326_v42 = vadd.f32 0.5, %v4311_v23 }
  0x1a   :  { %3140 = vmatpush.msk.msrb.mxu0 %vm4244_vm10, %v5795_v46 }
  0x23   :  { %3057 = vmatmul.msk.bf16.gmra.mxu0 %vm5790_vm4, %v77_v43  ;;  %3059 = vmatmul.msk.bf16.gmra.mxu1 %vm5790_vm4, %v95_v44  ;;  %v5862_v43 = vmov 0  ;;  %v413_v44 = vsub.f32 %v4207_v5, %v397_v37  ;;  %v4320_v37 = vadd.s32 40, %v4093_v6 }
  0x24   :  { %v5863_v43 = vsel %vm4244_vm10, 4294967295, %v5862_v43 }
  0x25   :  { %5864 = vst [vmem:[#allocation7_spill] sm:$0xff] %v5863_v43  ;;  %vm4259_vm11 = vcmp.eq.f32.partialorder %v413_v44, %v4234_v36  ;;  %v5880_v44 = vmov 0 }
  0x26   :  { %3141 = vmatpush.msk.msrb.mxu0 %vm4259_vm11, %v5795_v46  ;;  %5879 = vst [vmem:[#allocation14_spill] sm:$0xff] %v4320_v37 }
  0x90   :  { %v112_v51 = vpop.f32.mrf.mxu0  ;;  %v139_v52 = vpop.f32.mrf.mxu1 }
  0x98   :  { %v114_v53 = vpop.f32.mrf.mxu0  ;;  %v141_v54 = vpop.f32.mrf.mxu1 }
  0x99   :  { %v122_v55 = vpack.c.bf16 %v114_v53, %v112_v51  ;;  %v149_v56 = vpack.c.bf16 %v141_v54, %v139_v52  ;;  %v5865_v51 = vmov 0  ;;  %v412_v52 = vsub.f32 %v4215_v12, %v396_v45 }
  0x9a   :  { %v5866_v51 = vsel %vm4259_vm11, 4294967295, %v5865_v51  ;;  %v311_v53 = vadd.s32 64, %v4093_v6  ;;  %v4266_v54 = vadd.s32 56, %v4093_v6 }
  0x9b   :  { %3096 = vmatmul.msk.bf16.vlgmr.msra.gmra.mxu2 %vm5789_vm9, %v149_v56  ;;  %3122 = vmatmul.msk.bf16.vlgmr.msra.gmra.mxu3 %vm5789_vm9, %v122_v55  ;;  %5867 = vst [vmem:[#allocation8_spill] sm:$0xff] %v5866_v51  ;;  %v395_v55 = vmul.f32 8.0, %v379_v47  ;;  %v378_v56 = vfloor.f32 %v362_v48  ;;  %vm4276_vm12 = vcmp.eq.f32.partialorder %v412_v52, %v4234_v36  ;;  %v4335_v47 = vcvt.s32.f32 %v4320_v37 }
  0x9c   :  { %5868 = vst [vmem:[#allocation9_spill] sm:$0xff] %v4266_v54  ;;  %3142 = vmatpush.msk.msrb.mxu0 %vm4276_vm12, %v5795_v46  ;;  %v4338_v48 = vadd.s32 32, %v4093_v6  ;;  %v5894_v37 = vmov 0 }
  0x9d   :  { %v394_v0 = vmul.f32 8.0, %v378_v56  ;;  %v4345_v56 = vcvt.s32.f32 %v4148_v32 }
  0x9e   :  { %5883 = vst [vmem:[#allocation16_spill] sm:$0xff] %v4338_v48 }
  0x9f   :  { %v410_v16 = vsub.f32 %v4229_v28, %v394_v0  ;;  %v4356_v0 = vcvt.s32.f32 %v4338_v48 }
  0xa0   :  { %v117_v57 = vpop.f32.mrf.mxu0  ;;  %v144_v58 = vpop.f32.mrf.mxu1 }
  0xa1   :  { %vm4314_vm14 = vcmp.eq.f32.partialorder %v410_v16, %v4234_v36 }
  0xa2   :  { %v5877_v24 = vsel %vm4314_vm14, 4294967295, %v5876_v24 }
  0xa3   :  { %5878 = vst [vmem:[#allocation13_spill] sm:$0xff] %v5877_v24 }
  0xa8   :  { %v119_v59 = vpop.f32.mrf.mxu0  ;;  %v146_v60 = vpop.f32.mrf.mxu1 }
  0xa9   :  { %v123_v61 = vpack.c.bf16 %v119_v59, %v117_v57  ;;  %v150_v62 = vpack.c.bf16 %v146_v60, %v144_v58  ;;  %v361_v57 = vmul.f32 0.125, %v4254_v49  ;;  %v4273_v58 = vadd.f32 0.5, %v4256_v50 }
  0xaa   :  { %v5869_v59 = vmov 0  ;;  %v4280_v60 = vcvt.s32.f32 %v311_v53 }
  0xab   :  { %3097 = vmatmul.msk.bf16.gmra.mxu2 %vm5789_vm9, %v150_v62  ;;  %3123 = vmatmul.msk.bf16.gmra.mxu3 %vm5789_vm9, %v123_v61  ;;  %v5870_v59 = vsel %vm4276_vm12, 4294967295, %v5869_v59  ;;  %v4283_v61 = vcvt.s32.f32 %v4266_v54  ;;  %v411_v62 = vsub.f32 %v4222_v19, %v395_v55  ;;  %v377_v2 = vfloor.f32 %v361_v57 }
  0xac   :  { %5871 = vst [vmem:[#allocation10_spill] sm:$0xff] %v5870_v59  ;;  %v360_v7 = vmul.f32 0.125, %v4273_v58  ;;  %v4291_v8 = vadd.f32 0.5, %v4280_v60  ;;  %v357_v55 = vmul.f32 0.125, %v4326_v42  ;;  %v5884_v57 = vmov 0 }
  0xad   :  { %v4294_v10 = vadd.f32 0.5, %v4283_v61  ;;  %vm4300_vm13 = vcmp.eq.f32.partialorder %v411_v62, %v4234_v36  ;;  %v393_v17 = vmul.f32 8.0, %v377_v2  ;;  %v4353_v62 = vadd.f32 0.5, %v4335_v47 }
  0xae   :  { %v5874_v15 = vsel %vm4300_vm13, 4294967295, %v5873_v15  ;;  %v376_v20 = vfloor.f32 %v360_v7  ;;  %3143 = vmatpush.msk.msrb.mxu0 %vm4300_vm13, %v5795_v46  ;;  %v359_v21 = vmul.f32 0.125, %v4291_v8  ;;  %v373_v16 = vfloor.f32 %v357_v55 }
  0xaf   :  { %5875 = vst [vmem:[#allocation12_spill] sm:$0xff] %v5874_v15  ;;  %v358_v22 = vmul.f32 0.125, %v4294_v10  ;;  %v409_v30 = vsub.f32 %v4240_v41, %v393_v17  ;;  %v4364_v17 = vadd.f32 0.5, %v4345_v56  ;;  %v4392_v55 = vcvt.s32.f32 %v4099_v9 }
  0xb0   :  { %v392_v35 = vmul.f32 8.0, %v376_v20  ;;  %3144 = vmatpush.msk.msrb.mxu0 %vm4314_vm14, %v5795_v46  ;;  %v375_v38 = vfloor.f32 %v359_v21  ;;  %v356_v20 = vmul.f32 0.125, %v4353_v62  ;;  %v4368_v21 = vadd.f32 0.5, %v4356_v0 }
  0xb1   :  { %v374_v39 = vfloor.f32 %v358_v22  ;;  %vm4329_vm15 = vcmp.eq.f32.partialorder %v409_v30, %v4234_v36  ;;  %v4371_v22 = vcvt.s32.f32 %v4145_v31  ;;  %v5888_v30 = vmov 0 }
  0xb2   :  { %v5881_v44 = vsel %vm4329_vm15, 4294967295, %v5880_v44  ;;  %v408_v45 = vsub.f32 %v4256_v50, %v392_v35  ;;  %3145 = vmatpush.msk.msrb.mxu0 %vm4329_vm15, %v5795_v46  ;;  %v391_v52 = vmul.f32 8.0, %v375_v38  ;;  %v5891_v35 = vmov 0 }
  0xb3   :  { %5882 = vst [vmem:[#allocation15_spill] sm:$0xff] %v5881_v44  ;;  %v390_v53 = vmul.f32 8.0, %v374_v39  ;;  %v389_v38 = vmul.f32 8.0, %v373_v16  ;;  %v354_v39 = vmul.f32 0.125, %v4364_v17  ;;  %v4396_v16 = vcvt.s32.f32 %v4093_v6 }
  0xb4   :  { %vm4348_vm0 = vcmp.eq.f32.partialorder %v408_v45, %v4234_v36  ;;  %v407_v2 = vsub.f32 %v4280_v60, %v391_v52  ;;  %5887 = vst [vmem:[#allocation18_spill] sm:$0xff] %v4371_v22  ;;  %v372_v45 = vfloor.f32 %v356_v20  ;;  %v355_v52 = vmul.f32 0.125, %v4368_v21 }
  0xb5   :  { %v5885_v57 = vsel %vm4348_vm0, 4294967295, %v5884_v57  ;;  %3146 = vmatpush.msk.msrb.mxu0 %vm4348_vm0, %v5795_v46  ;;  %v406_v7 = vsub.f32 %v4283_v61, %v390_v53  ;;  %v4389_v53 = vadd.f32 0.5, %v4371_v22  ;;  %v4403_v13 = vadd.f32 0.5, %v4392_v55 }
  0xb6   :  { %5886 = vst [vmem:[#allocation17_spill] sm:$0xff] %v5885_v57  ;;  %vm4374_vm1 = vcmp.eq.f32.partialorder %v407_v2, %v4234_v36  ;;  %v405_v2 = vsub.f32 %v4311_v23, %v389_v38  ;;  %v388_v26 = vmul.f32 8.0, %v372_v45  ;;  %v371_v20 = vfloor.f32 %v355_v52 }
  0xb7   :  { %v5889_v30 = vsel %vm4374_vm1, 4294967295, %v5888_v30  ;;  %vm4379_vm2 = vcmp.eq.f32.partialorder %v406_v7, %v4234_v36  ;;  %3147 = vmatpush.msk.msrb.mxu0 %vm4374_vm1, %v5795_v46  ;;  %v370_v7 = vfloor.f32 %v354_v39  ;;  %v353_v54 = vmul.f32 0.125, %v4389_v53 }
  0xb8   :  { %5890 = vst [vmem:[#allocation19_spill] sm:$0xff] %v5889_v30  ;;  %v5892_v35 = vsel %vm4379_vm2, 4294967295, %v5891_v35  ;;  %vm4406_vm3 = vcmp.eq.f32.partialorder %v405_v2, %v4234_v36  ;;  %v4411_v39 = vadd.f32 0.5, %v4396_v16  ;;  %v404_v45 = vsub.f32 %v4335_v47, %v388_v26 }
  0xb9   :  { %5893 = vst [vmem:[#allocation20_spill] sm:$0xff] %v5892_v35  ;;  %3148 = vmatpush.msk.msrb.mxu0 %vm4379_vm2, %v5795_v46  ;;  %v5895_v37 = vsel %vm4406_vm3, 4294967295, %v5894_v37  ;;  %v386_v38 = vmul.f32 8.0, %v370_v7  ;;  %v387_v52 = vmul.f32 8.0, %v371_v20  ;;  %v369_v35 = vfloor.f32 %v353_v54 }
  0xba   :  { %5896 = vst [vmem:[#allocation21_spill] sm:$0xff] %v5895_v37  ;;  %v352_v57 = vmul.f32 0.125, %v4403_v13  ;;  %v351_v44 = vmul.f32 0.125, %v4411_v39  ;;  %vm4421_vm5 = vcmp.eq.f32.partialorder %v404_v45, %v4234_v36  ;;  %v5897_v7 = vmov 0 }
  0xbb   :  { %3149 = vmatpush.msk.msrb.mxu0 %vm4406_vm3, %v5795_v46  ;;  %v402_v2 = vsub.f32 %v4345_v56, %v386_v38  ;;  %v5898_v7 = vsel %vm4421_vm5, 4294967295, %v5897_v7  ;;  %v403_v24 = vsub.f32 %v4356_v0, %v387_v52  ;;  %v385_v15 = vmul.f32 8.0, %v369_v35 }
  0xbc   :  { %5899 = vst [vmem:[#allocation22_spill] sm:$0xff] %v5898_v7  ;;  %v368_v37 = vfloor.f32 %v352_v57  ;;  %v367_v26 = vfloor.f32 %v351_v44  ;;  %v5900_v54 = vmov 0  ;;  %v5903_v20 = vmov 0 }
  0xbd   :  { %3150 = vmatpush.msk.msrb.mxu0 %vm4421_vm5, %v5795_v46  ;;  %vm4430_vm6 = vcmp.eq.f32.partialorder %v403_v24, %v4234_v36  ;;  %vm4435_vm7 = vcmp.eq.f32.partialorder %v402_v2, %v4234_v36  ;;  %v401_v38 = vsub.f32 %v4371_v22, %v385_v15  ;;  %v5906_v44 = vmov 0 }
  0xbe   :  { %v5901_v54 = vsel %vm4430_vm6, 4294967295, %v5900_v54  ;;  %v5904_v20 = vsel %vm4435_vm7, 4294967295, %v5903_v20  ;;  %v384_v45 = vmul.f32 8.0, %v368_v37  ;;  %v383_v57 = vmul.f32 8.0, %v367_v26 }
  0xbf   :  { %5902 = vst [vmem:[#allocation23_spill] sm:$0xff] %v5901_v54  ;;  %3151 = vmatpush.msk.msrb.mxu0 %vm4430_vm6, %v5795_v46  ;;  %vm4444_vm8 = vcmp.eq.f32.partialorder %v401_v38, %v4234_v36  ;;  %v5909_v52 = vmov 0  ;;  %v5912_v2 = vmov 0 }
  0xc0   :  { %5905 = vst [vmem:[#allocation24_spill] sm:$0xff] %v5904_v20  ;;  %v5907_v44 = vsel %vm4444_vm8, 4294967295, %v5906_v44  ;;  %v400_v24 = vsub.f32 %v4392_v55, %v384_v45  ;;  %v399_v35 = vsub.f32 %v4396_v16, %v383_v57 }
  0xc1   :  { %5908 = vst [vmem:[#allocation25_spill] sm:$0xff] %v5907_v44  ;;  %3152 = vmatpush.msk.msrb.mxu0 %vm4435_vm7, %v5795_v46 }
  0xc2   :  { %vm4454_vm9 = vcmp.eq.f32.partialorder %v400_v24, %v4234_v36  ;;  %vm4462_vm4 = vcmp.eq.f32.partialorder %v399_v35, %v4234_v36  ;;  %v3948_v24 = vld [vmem:[%s5761_s10] ss:$0 sm:$0xff] }
  0xc3   :  { %v5910_v52 = vsel %vm4454_vm9, 4294967295, %v5909_v52  ;;  %3153 = vmatpush.msk.msrb.mxu0 %vm4444_vm8, %v5795_v46  ;;  %v5913_v2 = vsel %vm4462_vm4, 4294967295, %v5912_v2 }
  0xc4   :  { %5911 = vst [vmem:[#allocation26_spill] sm:$0xff] %v5910_v52 }
  0xc5   :  { %5914 = vst [vmem:[#allocation27_spill] sm:$0xff] %v5913_v2  ;;  %3154 = vmatpush.msk.msrb.mxu0 %vm4454_vm9, %v5795_v46 }
  0xc7   :  { %3155 = vmatpush.msk.msrb.mxu0 %vm4462_vm4, %v5795_v46 }
 0x11e   :  { %v228_v48 = vpop.f32.mrf.mxu2  ;;  %v289_v30 = vpop.f32.mrf.mxu3 }
 0x11f   :  { %v290_v57 = vadd.f32 %v289_v30, %v228_v48 }
 0x121   :  { %v4477_v44 = vadd.f32 %v3948_v24, %v290_v57 }
 0x126   :  { %v230_v15 = vpop.f32.mrf.mxu2  ;;  %v291_v37 = vpop.f32.mrf.mxu3 }
 0x127   :  { %v292_v26 = vadd.f32 %v291_v37, %v230_v15  ;;  %v478_v15 = vmul.f32 %v4477_v44, %v4477_v44 }
 0x129   :  { %v4475_v35 = vadd.f32 %v3948_v24, %v292_v26 }
 0x12b   :  { %v479_v52 = vmul.f32 %v4475_v35, %v4475_v35  ;;  %v469_v48 = vadd.f32 %v4475_v35, %v4477_v44 }
 0x12d   :  { %v482_v26 = vadd.f32 %v479_v52, %v478_v15 }
 0x12e   :  { %v233_v38 = vpop.f32.mrf.mxu2  ;;  %v294_v45 = vpop.f32.mrf.mxu3 }
 0x12f   :  { %v295_v36 = vadd.f32 %v294_v45, %v233_v38 }
 0x131   :  { %v4479_v20 = vadd.f32 %v3948_v24, %v295_v36 }
 0x133   :  { %v480_v30 = vmul.f32 %v4479_v20, %v4479_v20  ;;  %v470_v38 = vadd.f32 %v469_v48, %v4479_v20 }
 0x135   :  { %v483_v54 = vadd.f32 %v482_v26, %v480_v30 }
 0x136   :  { %v235_v2 = vpop.f32.mrf.mxu2  ;;  %v296_v46 = vpop.f32.mrf.mxu3 }
 0x137   :  { %v297_v37 = vadd.f32 %v296_v46, %v235_v2 }
 0x139   :  { %v4490_v45 = vadd.f32 %v3948_v24, %v297_v37 }
 0x13b   :  { %v471_v57 = vadd.f32 %v470_v38, %v4490_v45  ;;  %v481_v36 = vmul.f32 %v4490_v45, %v4490_v45 }
 0x13d   :  { %v472_v7 = vrot.slane %v471_v57, 4  ;;  %v484_v59 = vadd.f32 %v483_v54, %v481_v36 }
 0x13f   :  { %v473_v51 = vadd.f32 %v472_v7, %v471_v57  ;;  %v485_v32 = vrot.slane %v484_v59, 4  ;;  %v3867_v7 = vld [vmem:[%s5762_s3 + $0x68] sm:$0xff] }
 0x140   :  { %v3859_v57 = vld [vmem:[%s5762_s3 + $0x28] sm:$0xff] }
 0x141   :  { %v474_v31 = vrot.slane %v473_v51, 2  ;;  %v486_v43 = vadd.f32 %v485_v32, %v484_v59 }
 0x143   :  { %v475_v9 = vadd.f32 %v474_v31, %v473_v51  ;;  %v487_v6 = vrot.slane %v486_v43, 2  ;;  %v3869_v31 = vld [vmem:[%s5762_s3 + $0x78] sm:$0xff] }
 0x144   :  { %675 = vmatpush.bf16.msrb.mxu3 %v3869_v31  ;;  %v3865_v31 = vld [vmem:[%s5762_s3 + $0x58] sm:$0xff] }
 0x145   :  { %v476_v46 = vrot.slane %v475_v9, 1  ;;  %v488_v2 = vadd.f32 %v487_v6, %v486_v43  ;;  %v3861_v6 = vld [vmem:[%s5762_s3 + $0x38] sm:$0xff]  ;;  %v3868_v43 = vld [vmem:[%s5762_s3 + $0x70] sm:$0xff] }
 0x146   :  { %737 = vmatpush.bf16.msra.mxu0 %v3861_v6 }
 0x147   :  { %v477_v52 = vadd.f32 %v476_v46, %v475_v9  ;;  %v489_v24 = vrot.slane %v488_v2, 1 }
 0x148   :  { %676 = vmatpush.bf16.msrb.mxu3 %v3868_v43 }
 0x149   :  { %511 = vmatmul.f32.vlgmr.msrb.gmra.mxu0 %v477_v52  ;;  %v490_v15 = vadd.f32 %v489_v24, %v488_v2  ;;  %v3866_v2 = vld [vmem:[%s5762_s3 + $0x60] sm:$0xff] }
 0x14a   :  { %v3858_v24 = vld [vmem:[%s5762_s3 + $0x20] sm:$0xff] }
 0x14c   :  { %677 = vmatpush.bf16.msrb.mxu3 %v3867_v7 }
 0x150   :  { %678 = vmatpush.bf16.msrb.mxu3 %v3866_v2 }
 0x151   :  { %514 = vmatmul.f32.gmra.mxu0 %v490_v15 }
 0x154   :  { %679 = vmatpush.bf16.msrb.mxu3 %v3865_v31 }
 0x1c6   :  { %v512_v48 = vpop.f32.mrf.mxu0 }
 0x1c7   :  { %v518_v37 = vmul.f32 0.001953125, %v512_v48 }
 0x1c9   :  { %v520_v14 = vmul.f32 %v518_v37, %v518_v37  ;;  %v522_v36 = vperm.slane %v518_v37, 0 }
 0x1cb   :  { %v525_v48 = vsub.f32 %v4479_v20, %v522_v36  ;;  %v526_v37 = vsub.f32 %v4490_v45, %v522_v36  ;;  %v3857_v20 = vld [vmem:[%s5762_s3 + $0x18] sm:$0xff] }
 0x1ce   :  { %v515_v38 = vpop.f32.mrf.mxu0 }
 0x1cf   :  { %v519_v30 = vmul.f32 0.001953125, %v515_v38 }
 0x1d1   :  { %v521_v26 = vsub.f32 %v519_v30, %v520_v14  ;;  %v3860_v14 = vld [vmem:[%s5762_s3 + $0x30] sm:$0xff]  ;;  %v3949_v30 = vld [vmem:[%s5761_s10 + $0x1] ss:$0 sm:$0xff] }
 0x1d2   :  { %738 = vmatpush.bf16.msra.mxu0 %v3860_v14 }
 0x1d3   :  { %v527_v54 = vadd.f32 1e-05, %v521_v26  ;;  %v523_v26 = vsub.f32 %v4477_v44, %v522_v36 }
 0x1d5   :  { %3968 = vrsqrt.f32 %v527_v54  ;;  %vm534_vm9 = vweird.f32 %v527_v54 }
 0x1d6   :  { %739 = vmatpush.bf16.msra.mxu0 %v3859_v57 }
 0x1da   :  { %740 = vmatpush.bf16.msra.mxu0 %v3858_v24 }
 0x1db   :  { %v3969_v9 = vpop.eup %3968 }
 0x1dc   :  { %v529_v32 = vmul.f32 %v3969_v9, %v527_v54  ;;  %vm535_vm4 = vweird.f32 %v3969_v9  ;;  %v524_v54 = vsub.f32 %v4475_v35, %v522_v36 }
 0x1dd   :  { %vm536_vm8 = vmor %vm534_vm9, %vm535_vm4  ;;  %vm5815_vm4 = vcmask 261120  }
 0x1de   :  { %v530_v51 = vmul.f32 %v3969_v9, %v529_v32  ;;  %741 = vmatpush.bf16.msra.mxu0 %v3857_v20 }
 0x1e0   :  { %v531_v59 = vmul.f32 0.5, %v530_v51 }
 0x1e2   :  { %v532_v46 = vsub.f32 1.5, %v531_v59 }
 0x1e4   :  { %v533_v52 = vmul.f32 %v3969_v9, %v532_v46 }
 0x1e6   :  { %v537_v15 = vsel %vm536_vm8, %v3969_v9, %v533_v52  ;;  %v3950_v9 = vld [vmem:[%s5761_s10 + $0x2] ss:$0 sm:$0xff] }
 0x1e7   :  { %v538_v38 = vperm.slane %v537_v15, 0 }
 0x1e9   :  { %v541_v6 = vmul.f32 %v538_v38, %v525_v48  ;;  %v542_v45 = vmul.f32 %v538_v38, %v526_v37  ;;  %v539_v32 = vmul.f32 %v538_v38, %v523_v26  ;;  %v540_v44 = vmul.f32 %v538_v38, %v524_v54  ;;  %v3856_v38 = vld [vmem:[%s5762_s3 + $0x10] sm:$0xff]  ;;  %v3855_v37 = vld [vmem:[%s5762_s3 + $0x8] sm:$0xff]  ;;  %v3862_v26 = vld [vmem:[%s5762_s3 + $0x40] sm:$0xff] }
 0x1ea   :  { %742 = vmatpush.bf16.msra.mxu0 %v3856_v38 }
 0x1eb   :  { %v546_v43 = vmul.f32 %v3949_v30, %v541_v6  ;;  %v547_v35 = vmul.f32 %v3949_v30, %v542_v45  ;;  %v544_v14 = vmul.f32 %v3949_v30, %v539_v32  ;;  %v545_v51 = vmul.f32 %v3949_v30, %v540_v44  ;;  %v3864_v30 = vld [vmem:[%s5762_s3 + $0x50] sm:$0xff] }
 0x1ec   :  { %680 = vmatpush.bf16.msrb.mxu3 %v3864_v30  ;;  %v4558_v32 = vmul.f32 0.0625, %v4205_v4  ;;  %v768_v30 = vmul.f32 0.0625, %v4238_v40 }
 0x1ed   :  { %v551_v59 = vadd.f32 %v3950_v9, %v546_v43  ;;  %v552_v7 = vadd.f32 %v3950_v9, %v547_v35  ;;  %v549_v57 = vadd.f32 %v3950_v9, %v544_v14  ;;  %v550_v36 = vadd.f32 %v3950_v9, %v545_v51 }
 0x1ee   :  { %743 = vmatpush.bf16.msra.mxu0 %v3855_v37  ;;  %5915 = vst [vmem:[#allocation28_spill] sm:$0xff] %v4558_v32  ;;  %v5829_v44 = vfloor.f32 %v4558_v32  ;;  %v772_v35 = vmul.f32 0.0625, %v4202_v3  ;;  %v771_v14 = vmul.f32 0.0625, %v4213_v11 }
 0x1ef   :  { %v555_v46 = vmax.f32 %v551_v59, 0.0  ;;  %v556_v52 = vmax.f32 %v552_v7, 0.0  ;;  %v553_v24 = vmax.f32 %v549_v57, 0.0  ;;  %v554_v15 = vmax.f32 %v550_v36, 0.0 }
 0x1f0   :  { %v823_v43 = vmul.f32 16.0, %v5829_v44  ;;  %v788_v51 = vfloor.f32 %v772_v35  ;;  %v787_v59 = vfloor.f32 %v771_v14  ;;  %v770_v36 = vmul.f32 0.0625, %v4220_v18 }
 0x1f1   :  { %v558_v2 = vpack.c.bf16 %v556_v52, %v555_v46  ;;  %v557_v48 = vpack.c.bf16 %v554_v15, %v553_v24  ;;  %v769_v24 = vmul.f32 0.0625, %v4227_v25  ;;  %v766_v35 = vmul.f32 0.0625, %v4273_v58 }
 0x1f2   :  { %v4566_v7 = vsub.f32 %v4195_v63, %v823_v43  ;;  %v804_v57 = vmul.f32 16.0, %v788_v51  ;;  %v803_v46 = vmul.f32 16.0, %v787_v59  ;;  %v5924_v14 = vmov 0 }
 0x1f3   :  { %568 = vmatpush.bf16.msrb.mxu1 %v558_v2  ;;  %585 = vmatpush.bf16.msrb.mxu2 %v558_v2  ;;  %v786_v2 = vfloor.f32 %v770_v36  ;;  %v785_v37 = vfloor.f32 %v769_v24  ;;  %v782_v36 = vfloor.f32 %v766_v35  ;;  %v764_v24 = vmul.f32 0.0625, %v4294_v10 }
 0x1f4   :  { %v820_v52 = vsub.f32 %v4198_v1, %v804_v57  ;;  %v819_v15 = vsub.f32 %v4207_v5, %v803_v46  ;;  %v765_v57 = vmul.f32 0.0625, %v4291_v8  ;;  %v5927_v46 = vmov 0 }
 0x1f5   :  { %v802_v38 = vmul.f32 16.0, %v786_v2  ;;  %v5936_v35 = vmov 0 }
 0x1f6   :  { %vm4573_vm9 = vcmp.eq.f32.partialorder %v820_v52, %v4566_v7  ;;  %vm4582_vm8 = vcmp.eq.f32.partialorder %v819_v15, %v4566_v7  ;;  %v781_v2 = vfloor.f32 %v765_v57  ;;  %v798_v15 = vmul.f32 16.0, %v782_v36 }
 0x1f7   :  { %569 = vmatpush.bf16.msrb.mxu1 %v557_v48  ;;  %586 = vmatpush.bf16.msrb.mxu2 %v557_v48  ;;  %v761_v36 = vmul.f32 0.0625, %v4368_v21  ;;  %v3904_v48 = vld [vmem:[%s5768_s7 + $0x30] sm:$0xff] }
 0x1fa   :  { %3157 = vmatmul.msk.bf16.vlgmr.msrb.gmra.mxu2 %vm5815_vm4, %v4154_v34  ;;  %3156 = vmatmul.msk.bf16.vlgmr.msrb.gmra.mxu1 %vm5815_vm4, %v4151_v33  ;;  %v3863_v34 = vld [vmem:[%s5762_s3 + $0x48] sm:$0xff]  ;;  %v3854_v33 = vld [vmem:[%s5762_s3] sm:$0xff] }
 0x1fb   :  { %744 = vmatpush.bf16.msra.mxu0 %v3854_v33  ;;  %681 = vmatpush.bf16.msrb.mxu3 %v3863_v34  ;;  %v5918_v34 = vmov 1.0   ;;  %v3911_v33 = vld [vmem:[%s5768_s7 + $0x68] sm:$0xff] }
 0x1fc   :  { %3254 = vmatpush.msk.msra.mxu1 %vm4573_vm9, %v5918_v34 }
 0x1fe   :  { %3255 = vmatpush.msk.msra.mxu1 %vm4582_vm8, %v5918_v34 }
 0x1ff   :  { %682 = vmatpush.bf16.msrb.mxu3 %v3862_v26  ;;  %v818_v26 = vsub.f32 %v4215_v12, %v802_v38  ;;  %v5930_v38 = vmov 0 }
 0x201   :  { %vm4592_vm4 = vcmp.eq.f32.partialorder %v818_v26, %v4566_v7  ;;  %v763_v26 = vmul.f32 0.0625, %v4326_v42 }
 0x202   :  { %3256 = vmatpush.msk.msra.mxu1 %vm4592_vm4, %v5918_v34 }
 0x277   :  { %v571_v54 = vpop.f32.mrf.mxu1 }
 0x27d   :  { %v588_v31 = vpop.f32.mrf.mxu2 }
 0x27f   :  { %v573_v20 = vpop.f32.mrf.mxu1 }
 0x280   :  { %v576_v6 = vpack.c.bf16 %v573_v20, %v571_v54  ;;  %v801_v54 = vmul.f32 16.0, %v785_v37  ;;  %v767_v20 = vmul.f32 0.0625, %v4254_v49  ;;  %v797_v37 = vmul.f32 16.0, %v781_v2 }
 0x282   :  { %745 = vmatmul.bf16.vlgmr.msra.gmra.mxu0 %v576_v6  ;;  %v5921_v6 = vmov 0  ;;  %v783_v43 = vfloor.f32 %v767_v20 }
 0x283   :  { %v5922_v6 = vsel %vm4592_vm4, 4294967295, %v5921_v6 }
 0x284   :  { %5923 = vst [vmem:[#allocation29_spill] sm:$0xff] %v5922_v6  ;;  %v799_v59 = vmul.f32 16.0, %v783_v43  ;;  %v5933_v43 = vmov 0 }
 0x285   :  { %v590_v45 = vpop.f32.mrf.mxu2 }
 0x286   :  { %v593_v9 = vpack.c.bf16 %v590_v45, %v588_v31  ;;  %v784_v31 = vfloor.f32 %v768_v30  ;;  %v817_v45 = vsub.f32 %v4222_v19, %v801_v54  ;;  %v815_v52 = vsub.f32 %v4240_v41, %v799_v59 }
 0x287   :  { %v780_v30 = vfloor.f32 %v764_v24  ;;  %v814_v54 = vsub.f32 %v4256_v50, %v798_v15  ;;  %v760_v15 = vmul.f32 0.0625, %v4364_v17 }
 0x288   :  { %683 = vmatmul.bf16.vlgmr.msrb.gmra.mxu3 %v593_v9  ;;  %v800_v9 = vmul.f32 16.0, %v784_v31  ;;  %vm4602_vm7 = vcmp.eq.f32.partialorder %v817_v45, %v4566_v7  ;;  %vm4622_vm5 = vcmp.eq.f32.partialorder %v815_v52, %v4566_v7  ;;  %v813_v31 = vsub.f32 %v4280_v60, %v797_v37 }
 0x289   :  { %v5925_v14 = vsel %vm4602_vm7, 4294967295, %v5924_v14  ;;  %3257 = vmatpush.msk.msra.mxu1 %vm4602_vm7, %v5918_v34  ;;  %v5931_v38 = vsel %vm4622_vm5, 4294967295, %v5930_v38  ;;  %v796_v20 = vmul.f32 16.0, %v780_v30  ;;  %v779_v45 = vfloor.f32 %v763_v26 }
 0x28a   :  { %5926 = vst [vmem:[#allocation30_spill] sm:$0xff] %v5925_v14  ;;  %v816_v51 = vsub.f32 %v4229_v28, %v800_v9  ;;  %v762_v9 = vmul.f32 0.0625, %v4353_v62  ;;  %vm4634_vm3 = vcmp.eq.f32.partialorder %v814_v54, %v4566_v7  ;;  %vm4642_vm2 = vcmp.eq.f32.partialorder %v813_v31, %v4566_v7 }
 0x28b   :  { %5932 = vst [vmem:[#allocation32_spill] sm:$0xff] %v5931_v38  ;;  %v5934_v43 = vsel %vm4634_vm3, 4294967295, %v5933_v43  ;;  %v5937_v35 = vsel %vm4642_vm2, 4294967295, %v5936_v35  ;;  %v795_v59 = vmul.f32 16.0, %v779_v45  ;;  %v5939_v52 = vmov 0 }
 0x28c   :  { %vm4612_vm6 = vcmp.eq.f32.partialorder %v816_v51, %v4566_v7  ;;  %5935 = vst [vmem:[#allocation33_spill] sm:$0xff] %v5934_v43  ;;  %v812_v51 = vsub.f32 %v4283_v61, %v796_v20  ;;  %v778_v57 = vfloor.f32 %v762_v9  ;;  %v777_v37 = vfloor.f32 %v761_v36 }
 0x28d   :  { %v5928_v46 = vsel %vm4612_vm6, 4294967295, %v5927_v46  ;;  %3258 = vmatpush.msk.msra.mxu1 %vm4612_vm6, %v5918_v34  ;;  %5938 = vst [vmem:[#allocation34_spill] sm:$0xff] %v5937_v35  ;;  %v811_v2 = vsub.f32 %v4311_v23, %v795_v59  ;;  %v5942_v30 = vmov 0  ;;  %v776_v54 = vfloor.f32 %v760_v15 }
 0x28e   :  { %5929 = vst [vmem:[#allocation31_spill] sm:$0xff] %v5928_v46  ;;  %vm4652_vm1 = vcmp.eq.f32.partialorder %v812_v51, %v4566_v7  ;;  %v794_v24 = vmul.f32 16.0, %v778_v57  ;;  %v759_v31 = vmul.f32 0.0625, %v4389_v53  ;;  %v793_v20 = vmul.f32 16.0, %v777_v37 }
 0x28f   :  { %3259 = vmatpush.msk.msra.mxu1 %vm4622_vm5, %v5918_v34  ;;  %v5940_v52 = vsel %vm4652_vm1, 4294967295, %v5939_v52  ;;  %vm4662_vm0 = vcmp.eq.f32.partialorder %v811_v2, %v4566_v7  ;;  %v5945_v45 = vmov 0  ;;  %v792_v9 = vmul.f32 16.0, %v776_v54 }
 0x290   :  { %5941 = vst [vmem:[#allocation35_spill] sm:$0xff] %v5940_v52  ;;  %v5943_v30 = vsel %vm4662_vm0, 4294967295, %v5942_v30  ;;  %v810_v26 = vsub.f32 %v4335_v47, %v794_v24  ;;  %v775_v51 = vfloor.f32 %v759_v31  ;;  %v758_v59 = vmul.f32 0.0625, %v4403_v13 }
 0x291   :  { %3260 = vmatpush.msk.msra.mxu1 %vm4634_vm3, %v5918_v34  ;;  %5944 = vst [vmem:[#allocation36_spill] sm:$0xff] %v5943_v30  ;;  %v809_v57 = vsub.f32 %v4356_v0, %v793_v20  ;;  %v808_v36 = vsub.f32 %v4345_v56, %v792_v9  ;;  %v757_v15 = vmul.f32 0.0625, %v4411_v39  ;;  %v5948_v37 = vmov 0 }
 0x292   :  { %vm4672_vm15 = vcmp.eq.f32.partialorder %v810_v26, %v4566_v7  ;;  %v791_v2 = vmul.f32 16.0, %v775_v51  ;;  %v774_v24 = vfloor.f32 %v758_v59  ;;  %v5951_v26 = vmov 0 }
 0x293   :  { %3261 = vmatpush.msk.msra.mxu1 %vm4642_vm2, %v5918_v34  ;;  %v5946_v45 = vsel %vm4672_vm15, 4294967295, %v5945_v45  ;;  %vm4684_vm14 = vcmp.eq.f32.partialorder %v809_v57, %v4566_v7  ;;  %vm4692_vm13 = vcmp.eq.f32.partialorder %v808_v36, %v4566_v7  ;;  %v773_v20 = vfloor.f32 %v757_v15 }
 0x294   :  { %5947 = vst [vmem:[#allocation37_spill] sm:$0xff] %v5946_v45  ;;  %v5949_v37 = vsel %vm4684_vm14, 4294967295, %v5948_v37  ;;  %v5952_v26 = vsel %vm4692_vm13, 4294967295, %v5951_v26  ;;  %v807_v54 = vsub.f32 %v4371_v22, %v791_v2  ;;  %v790_v31 = vmul.f32 16.0, %v774_v24 }
 0x295   :  { %3262 = vmatpush.msk.msra.mxu1 %vm4652_vm1, %v5918_v34  ;;  %5950 = vst [vmem:[#allocation38_spill] sm:$0xff] %v5949_v37  ;;  %v5954_v9 = vmov 0  ;;  %v789_v59 = vmul.f32 16.0, %v773_v20  ;;  %v5957_v57 = vmov 0  ;;  %v5960_v2 = vmov 0 }
 0x296   :  { %5953 = vst [vmem:[#allocation39_spill] sm:$0xff] %v5952_v26  ;;  %vm4701_vm12 = vcmp.eq.f32.partialorder %v807_v54, %v4566_v7  ;;  %v806_v51 = vsub.f32 %v4392_v55, %v790_v31  ;;  %v3951_v31 = vld [vmem:[%s5761_s10 + $0x3] ss:$0 sm:$0xff] }
 0x297   :  { %3263 = vmatpush.msk.msra.mxu1 %vm4662_vm0, %v5918_v34  ;;  %v5955_v9 = vsel %vm4701_vm12, 4294967295, %v5954_v9  ;;  %v805_v36 = vsub.f32 %v4396_v16, %v789_v59 }
 0x298   :  { %5956 = vst [vmem:[#allocation40_spill] sm:$0xff] %v5955_v9  ;;  %vm4710_vm11 = vcmp.eq.f32.partialorder %v806_v51, %v4566_v7 }
 0x299   :  { %3264 = vmatpush.msk.msra.mxu1 %vm4672_vm15, %v5918_v34  ;;  %v5958_v57 = vsel %vm4710_vm11, 4294967295, %v5957_v57  ;;  %vm4719_vm10 = vcmp.eq.f32.partialorder %v805_v36, %v4566_v7 }
 0x29a   :  { %5959 = vst [vmem:[#allocation41_spill] sm:$0xff] %v5958_v57  ;;  %v5961_v2 = vsel %vm4719_vm10, 4294967295, %v5960_v2 }
 0x29b   :  { %3265 = vmatpush.msk.msra.mxu1 %vm4684_vm14, %v5918_v34  ;;  %5962 = vst [vmem:[#allocation42_spill] sm:$0xff] %v5961_v2 }
 0x29d   :  { %3266 = vmatpush.msk.msra.mxu1 %vm4692_vm13, %v5918_v34 }
 0x29f   :  { %3267 = vmatpush.msk.msra.mxu1 %vm4701_vm12, %v5918_v34 }
 0x2a1   :  { %3268 = vmatpush.msk.msra.mxu1 %vm4710_vm11, %v5918_v34 }
 0x2a3   :  { %3269 = vmatpush.msk.msra.mxu1 %vm4719_vm10, %v5918_v34 }
 0x2ff   :  { %v746_v24 = vpop.f32.mrf.mxu0 }
 0x307   :  { %v748_v20 = vpop.f32.mrf.mxu0 }
 0x30b   :  { %v684_v15 = vpop.f32.mrf.mxu3 }
 0x30c   :  { %v747_v54 = vadd.f32 %v746_v24, %v684_v15 }
 0x30e   :  { %v753_v59 = vadd.f32 %v3951_v31, %v747_v54 }
 0x310   :  { %v880_v36 = vmul.f32 %v753_v59, %v753_v59 }
 0x313   :  { %v686_v51 = vpop.f32.mrf.mxu3 }
 0x314   :  { %v749_v44 = vadd.f32 %v748_v20, %v686_v51 }
 0x316   :  { %v754_v57 = vadd.f32 %v3951_v31, %v749_v44 }
 0x318   :  { %v873_v9 = vadd.f32 %v754_v57, %v753_v59  ;;  %v881_v26 = vmul.f32 %v754_v57, %v754_v57 }
 0x31a   :  { %v874_v32 = vrot.slane %v873_v9, 4  ;;  %v882_v37 = vadd.f32 %v881_v26, %v880_v36 }
 0x31c   :  { %v875_v45 = vadd.f32 %v874_v32, %v873_v9  ;;  %v883_v2 = vrot.slane %v882_v37, 4  ;;  %v3877_v32 = vld [vmem:[%s5763_s4 + $0x38] sm:$0xff] }
 0x31d   :  { %1123 = vmatpush.bf16.msra.mxu3 %v3877_v32  ;;  %v3873_v9 = vld [vmem:[%s5763_s4 + $0x18] sm:$0xff] }
 0x31e   :  { %v876_v30 = vrot.slane %v875_v45, 2  ;;  %v884_v52 = vadd.f32 %v883_v2, %v882_v37 }
 0x320   :  { %v877_v35 = vadd.f32 %v876_v30, %v875_v45  ;;  %v885_v24 = vrot.slane %v884_v52, 2 }
 0x322   :  { %v878_v15 = vrot.slane %v877_v35, 1  ;;  %v886_v38 = vadd.f32 %v885_v24, %v884_v52 }
 0x324   :  { %v879_v43 = vadd.f32 %v878_v15, %v877_v35  ;;  %v887_v46 = vrot.slane %v886_v38, 1 }
 0x326   :  { %907 = vmatmul.f32.vlgmr.msra.gmra.mxu1 %v879_v43  ;;  %v888_v14 = vadd.f32 %v887_v46, %v886_v38  ;;  %v3876_v43 = vld [vmem:[%s5763_s4 + $0x30] sm:$0xff] }
 0x327   :  { %1124 = vmatpush.bf16.msra.mxu3 %v3876_v43 }
 0x32e   :  { %910 = vmatmul.f32.gmra.mxu1 %v888_v14  ;;  %v3875_v14 = vld [vmem:[%s5763_s4 + $0x28] sm:$0xff] }
 0x32f   :  { %1125 = vmatpush.bf16.msra.mxu3 %v3875_v14  ;;  %v3885_v14 = vld [vmem:[%s5763_s4 + $0x78] sm:$0xff] }
 0x3a3   :  { %v908_v54 = vpop.f32.mrf.mxu1 }
 0x3a4   :  { %v914_v44 = vmul.f32 0.0078125, %v908_v54  ;;  %v3952_v54 = vld [vmem:[%s5761_s10 + $0x4] ss:$0 sm:$0xff] }
 0x3a6   :  { %v916_v20 = vmul.f32 %v914_v44, %v914_v44  ;;  %v918_v45 = vperm.slane %v914_v44, 0  ;;  %v3872_v44 = vld [vmem:[%s5763_s4 + $0x10] sm:$0xff] }
 0x3a8   :  { %v919_v36 = vsub.f32 %v753_v59, %v918_v45  ;;  %v920_v24 = vsub.f32 %v754_v57, %v918_v45  ;;  %v3871_v57 = vld [vmem:[%s5763_s4 + $0x8] sm:$0xff]  ;;  %v3881_v45 = vld [vmem:[%s5763_s4 + $0x58] sm:$0xff] }
 0x3ab   :  { %v911_v31 = vpop.f32.mrf.mxu1 }
 0x3ac   :  { %v915_v51 = vmul.f32 0.0078125, %v911_v31 }
 0x3ae   :  { %v917_v6 = vsub.f32 %v915_v51, %v916_v20  ;;  %v3953_v51 = vld [vmem:[%s5761_s10 + $0x5] ss:$0 sm:$0xff] }
 0x3b0   :  { %v921_v26 = vadd.f32 1e-05, %v917_v6  ;;  %v3874_v6 = vld [vmem:[%s5763_s4 + $0x20] sm:$0xff] }
 0x3b1   :  { %1126 = vmatpush.bf16.msra.mxu3 %v3874_v6  ;;  %v945_v6 = vpack.c.bf16 %v4141_v29, %v4141_v29  ;;  %v3882_v29 = vld [vmem:[%s5763_s4 + $0x60] sm:$0xff] }
 0x3b2   :  { %3970 = vrsqrt.f32 %v921_v26  ;;  %vm928_vm11 = vweird.f32 %v921_v26 }
 0x3b5   :  { %1127 = vmatpush.bf16.msra.mxu3 %v3873_v9  ;;  %v3879_v9 = vld [vmem:[%s5763_s4 + $0x48] sm:$0xff] }
 0x3b8   :  { %v3971_v35 = vpop.eup %3970 }
 0x3b9   :  { %v923_v46 = vmul.f32 %v3971_v35, %v921_v26  ;;  %vm929_vm10 = vweird.f32 %v3971_v35  ;;  %1128 = vmatpush.bf16.msra.mxu3 %v3872_v44  ;;  %v1154_v44 = vmul.f32 0.03125, %v4220_v18 }
 0x3ba   :  { %vm930_vm12 = vmor %vm928_vm11, %vm929_vm10  ;;  %vm5848_vm10 = vcmask 130048  }
 0x3bb   :  { %v924_v38 = vmul.f32 %v3971_v35, %v923_v46 }
 0x3bd   :  { %v925_v52 = vmul.f32 0.5, %v924_v38  ;;  %1129 = vmatpush.bf16.msra.mxu3 %v3871_v57 }
 0x3bf   :  { %v926_v30 = vsub.f32 1.5, %v925_v52  ;;  %v944_v52 = vpack.c.bf16 %v4137_v27, %v4137_v27  ;;  %v3883_v27 = vld [vmem:[%s5763_s4 + $0x68] sm:$0xff] }
 0x3c1   :  { %v927_v37 = vmul.f32 %v3971_v35, %v926_v30  ;;  %v3884_v30 = vld [vmem:[%s5763_s4 + $0x70] sm:$0xff] }
 0x3c3   :  { %v931_v2 = vsel %vm930_vm12, %v3971_v35, %v927_v37  ;;  %v3880_v37 = vld [vmem:[%s5763_s4 + $0x50] sm:$0xff] }
 0x3c4   :  { %v932_v15 = vperm.slane %v931_v2, 0  ;;  %v3878_v2 = vld [vmem:[%s5763_s4 + $0x40] sm:$0xff] }
 0x3c6   :  { %v933_v31 = vmul.f32 %v932_v15, %v919_v36  ;;  %v934_v20 = vmul.f32 %v932_v15, %v920_v24  ;;  %v3870_v36 = vld [vmem:[%s5763_s4] sm:$0xff]  ;;  %v1156_v24 = vmul.f32 0.03125, %v4202_v3  ;;  %v4791_v15 = vmul.f32 0.03125, %v4205_v4 }
 0x3c7   :  { %1130 = vmatpush.bf16.msra.mxu3 %v3870_v36  ;;  %v1170_v3 = vfloor.f32 %v1154_v44 }
 0x3c8   :  { %v936_v26 = vmul.f32 %v3952_v54, %v933_v31  ;;  %v937_v32 = vmul.f32 %v3952_v54, %v934_v20  ;;  %v1155_v54 = vmul.f32 0.03125, %v4213_v11  ;;  %v1153_v31 = vmul.f32 0.03125, %v4227_v25 }
 0x3c9   :  { %v1152_v20 = vmul.f32 0.03125, %v4238_v40  ;;  %v5851_v57 = vfloor.f32 %v4791_v15  ;;  %v1186_v25 = vmul.f32 32.0, %v1170_v3  ;;  %v1147_v3 = vmul.f32 0.03125, %v4326_v42 }
 0x3ca   :  { %v939_v59 = vadd.f32 %v3953_v51, %v936_v26  ;;  %v940_v43 = vadd.f32 %v3953_v51, %v937_v32  ;;  %v1151_v51 = vmul.f32 0.03125, %v4254_v49  ;;  %v1150_v26 = vmul.f32 0.03125, %v4273_v58 }
 0x3cb   :  { %v1172_v32 = vfloor.f32 %v1156_v24  ;;  %v1207_v11 = vmul.f32 32.0, %v5851_v57 }
 0x3cc   :  { %v941_v35 = vmax.f32 %v939_v59, 0.0  ;;  %v942_v46 = vmax.f32 %v940_v43, 0.0  ;;  %v1171_v59 = vfloor.f32 %v1155_v54  ;;  %v1169_v43 = vfloor.f32 %v1153_v31 }
 0x3ce   :  { %v943_v38 = vpack.c.bf16 %v942_v46, %v941_v35  ;;  %v1168_v35 = vfloor.f32 %v1152_v20  ;;  %v1167_v46 = vfloor.f32 %v1151_v51  ;;  %v1187_v18 = vmul.f32 32.0, %v1171_v59 }
 0x3cf   :  { %v1149_v20 = vmul.f32 0.03125, %v4291_v8 }
 0x3d0   :  { %957 = vmatpush.bf16.msra.mxu2 %v943_v38  ;;  %974 = vmatpush.bf16.msrb.mxu1 %v943_v38  ;;  %v1185_v38 = vmul.f32 32.0, %v1169_v43 }
 0x3d1   :  { %v1165_v51 = vfloor.f32 %v1149_v20  ;;  %v1142_v20 = vmul.f32 0.03125, %v4403_v13 }
 0x3d3   :  { %3270 = vmatmul.msk.bf16.vlgmr.msra.gmra.mxu2 %vm5848_vm10, %v944_v52  ;;  %3271 = vmatmul.msk.bf16.vlgmr.msrb.gmra.mxu1 %vm5848_vm10, %v945_v6  ;;  %v1184_v52 = vmul.f32 32.0, %v1168_v35  ;;  %v1166_v6 = vfloor.f32 %v1150_v26  ;;  %v1148_v26 = vmul.f32 0.03125, %v4294_v10 }
 0x3d4   :  { %1062 = vmatpush.bf16.msrb.mxu2 %v3885_v14  ;;  %v1188_v14 = vmul.f32 32.0, %v1172_v32  ;;  %v1181_v32 = vmul.f32 32.0, %v1165_v51 }
 0x3d5   :  { %v1164_v59 = vfloor.f32 %v1148_v26 }
 0x3d6   :  { %v4851_v43 = vsub.f32 %v4280_v60, %v1181_v32 }
 0x3d7   :  { %v1180_v35 = vmul.f32 32.0, %v1164_v59  ;;  %v1158_v59 = vfloor.f32 %v1142_v20 }
 0x3d8   :  { %1063 = vmatpush.bf16.msrb.mxu2 %v3884_v30  ;;  %v4803_v30 = vsub.f32 %v4198_v1, %v1188_v14  ;;  %v1183_v1 = vmul.f32 32.0, %v1167_v46  ;;  %v1163_v46 = vfloor.f32 %v1147_v3  ;;  %v1146_v14 = vmul.f32 0.03125, %v4353_v62 }
 0x3d9   :  { %v1141_v3 = vmul.f32 0.03125, %v4411_v39 }
 0x3dc   :  { %1064 = vmatpush.bf16.msrb.mxu2 %v3883_v27  ;;  %v4806_v27 = vsub.f32 %v4195_v63, %v1207_v11  ;;  %v4857_v11 = vsub.f32 %v4283_v61, %v1180_v35 }
 0x3de   :  { %vm1224_vm11 = vcmp.eq.f32.partialorder %v4803_v30, %v4806_v27 }
 0x3df   :  { %3368 = vmatpush.msk.msrb.mxu0 %vm1224_vm11, %v5918_v34 }
 0x3e0   :  { %1065 = vmatpush.bf16.msrb.mxu2 %v3882_v29  ;;  %v4809_v29 = vsub.f32 %v4207_v5, %v1187_v18  ;;  %v4825_v5 = vsub.f32 %v4229_v28, %v1184_v52  ;;  %v1179_v18 = vmul.f32 32.0, %v1163_v46  ;;  %v1174_v46 = vmul.f32 32.0, %v1158_v59 }
 0x3e2   :  { %vm1223_vm12 = vcmp.eq.f32.partialorder %v4809_v29, %v4806_v27  ;;  %vm1220_vm11 = vcmp.eq.f32.partialorder %v4825_v5, %v4806_v27  ;;  %v4864_v52 = vsub.f32 %v4311_v23, %v1179_v18  ;;  %v4898_v18 = vsub.f32 %v4392_v55, %v1174_v46 }
 0x3e3   :  { %3369 = vmatpush.msk.msrb.mxu0 %vm1223_vm12, %v5918_v34 }
 0x3e4   :  { %1066 = vmatpush.bf16.msrb.mxu2 %v3881_v45  ;;  %v4812_v45 = vsub.f32 %v4215_v12, %v1186_v25  ;;  %v1182_v12 = vmul.f32 32.0, %v1166_v6  ;;  %v1162_v25 = vfloor.f32 %v1146_v14  ;;  %v1157_v14 = vfloor.f32 %v1141_v3 }
 0x3e6   :  { %vm1222_vm10 = vcmp.eq.f32.partialorder %v4812_v45, %v4806_v27  ;;  %v1178_v6 = vmul.f32 32.0, %v1162_v25  ;;  %v1173_v25 = vmul.f32 32.0, %v1157_v14 }
 0x3e7   :  { %3370 = vmatpush.msk.msrb.mxu0 %vm1222_vm10, %v5918_v34  ;;  %vm1215_vm10 = vcmp.eq.f32.partialorder %v4864_v52, %v4806_v27 }
 0x3e8   :  { %1067 = vmatpush.bf16.msrb.mxu2 %v3880_v37  ;;  %v4819_v37 = vsub.f32 %v4222_v19, %v1185_v38  ;;  %v4837_v19 = vsub.f32 %v4256_v50, %v1182_v12  ;;  %v1145_v38 = vmul.f32 0.03125, %v4368_v21 }
 0x3ea   :  { %vm1221_vm13 = vcmp.eq.f32.partialorder %v4819_v37, %v4806_v27  ;;  %vm1218_vm12 = vcmp.eq.f32.partialorder %v4837_v19, %v4806_v27  ;;  %v1161_v12 = vfloor.f32 %v1145_v38  ;;  %v4904_v38 = vsub.f32 %v4396_v16, %v1173_v25 }
 0x3eb   :  { %3371 = vmatpush.msk.msrb.mxu0 %vm1221_vm13, %v5918_v34  ;;  %vm1217_vm13 = vcmp.eq.f32.partialorder %v4851_v43, %v4806_v27  ;;  %vm1417_vm0 = vcmp.eq.f32.partialorder %v4819_v37, %v4195_v63 }
 0x3ec   :  { %1068 = vmatpush.bf16.msrb.mxu2 %v3879_v9  ;;  %v4831_v9 = vsub.f32 %v4240_v41, %v1183_v1  ;;  %v1144_v1 = vmul.f32 0.03125, %v4364_v17 }
 0x3ed   :  { %3372 = vmatpush.msk.msrb.mxu0 %vm1220_vm11, %v5918_v34 }
 0x3ee   :  { %vm1219_vm14 = vcmp.eq.f32.partialorder %v4831_v9, %v4806_v27 }
 0x3ef   :  { %3373 = vmatpush.msk.msrb.mxu0 %vm1219_vm14, %v5918_v34  ;;  %vm1216_vm14 = vcmp.eq.f32.partialorder %v4857_v11, %v4806_v27 }
 0x3f0   :  { %1069 = vmatpush.bf16.msrb.mxu2 %v3878_v2 }
 0x3f1   :  { %3374 = vmatpush.msk.msrb.mxu0 %vm1218_vm12, %v5918_v34 }
 0x3f3   :  { %3375 = vmatpush.msk.msrb.mxu0 %vm1217_vm13, %v5918_v34 }
 0x3f5   :  { %3376 = vmatpush.msk.msrb.mxu0 %vm1216_vm14, %v5918_v34 }
 0x3f7   :  { %3377 = vmatpush.msk.msrb.mxu0 %vm1215_vm10, %v5918_v34  ;;  %vm1210_vm10 = vcmp.eq.f32.partialorder %v4898_v18, %v4806_v27 }
 0x450   :  { %v976_v2 = vpop.f32.mrf.mxu1 }
 0x451   :  { %v980_v36 = vpack.c.bf16 %v976_v2, %v976_v2  ;;  %v4871_v2 = vsub.f32 %v4335_v47, %v1178_v6 }
 0x453   :  { %1070 = vmatmul.bf16.vlgmr.msrb.gmra.mxu2 %v980_v36  ;;  %v1160_v36 = vfloor.f32 %v1144_v1  ;;  %vm1214_vm11 = vcmp.eq.f32.partialorder %v4871_v2, %v4806_v27  ;;  %v3954_v1 = vld [vmem:[%s5761_s10 + $0x6] ss:$0 sm:$0xff] }
 0x454   :  { %3378 = vmatpush.msk.msrb.mxu0 %vm1214_vm11, %v5918_v34  ;;  %vm1209_vm11 = vcmp.eq.f32.partialorder %v4904_v38, %v4806_v27 }
 0x456   :  { %v959_v24 = vpop.f32.mrf.mxu2 }
 0x457   :  { %v963_v54 = vpack.c.bf16 %v959_v24, %v959_v24  ;;  %v1143_v24 = vmul.f32 0.03125, %v4389_v53 }
 0x458   :  { %v978_v44 = vpop.f32.mrf.mxu1 }
 0x459   :  { %1131 = vmatmul.bf16.vlgmr.msra.gmra.mxu3 %v963_v54  ;;  %v1177_v54 = vmul.f32 32.0, %v1161_v12  ;;  %v1176_v44 = vmul.f32 32.0, %v1160_v36 }
 0x45b   :  { %v4880_v51 = vsub.f32 %v4356_v0, %v1177_v54  ;;  %v4883_v26 = vsub.f32 %v4345_v56, %v1176_v44 }
 0x45d   :  { %vm1213_vm12 = vcmp.eq.f32.partialorder %v4880_v51, %v4806_v27  ;;  %vm1212_vm13 = vcmp.eq.f32.partialorder %v4883_v26, %v4806_v27 }
 0x45e   :  { %v961_v31 = vpop.f32.mrf.mxu2  ;;  %3379 = vmatpush.msk.msrb.mxu0 %vm1213_vm12, %v5918_v34  ;;  %vm1420_vm12 = vcmp.eq.f32.partialorder %v4803_v30, %v4195_v63 }
 0x45f   :  { %v1159_v31 = vfloor.f32 %v1143_v24  ;;  %3450 = vmatpush.msk.msra.mxu2 %vm1420_vm12, %v5918_v34 }
 0x460   :  { %3380 = vmatpush.msk.msrb.mxu0 %vm1212_vm13, %v5918_v34 }
 0x461   :  { %v1175_v32 = vmul.f32 32.0, %v1159_v31 }
 0x463   :  { %v4892_v35 = vsub.f32 %v4371_v22, %v1175_v32 }
 0x465   :  { %vm1211_vm14 = vcmp.eq.f32.partialorder %v4892_v35, %v4806_v27 }
 0x466   :  { %3381 = vmatpush.msk.msrb.mxu0 %vm1211_vm14, %v5918_v34  ;;  %vm1419_vm14 = vcmp.eq.f32.partialorder %v4809_v29, %v4195_v63 }
 0x467   :  { %3451 = vmatpush.msk.msra.mxu2 %vm1419_vm14, %v5918_v34  ;;  %vm1415_vm14 = vcmp.eq.f32.partialorder %v4831_v9, %v4195_v63 }
 0x468   :  { %3382 = vmatpush.msk.msrb.mxu0 %vm1210_vm10, %v5918_v34 }
 0x46a   :  { %3383 = vmatpush.msk.msrb.mxu0 %vm1209_vm11, %v5918_v34  ;;  %vm1418_vm11 = vcmp.eq.f32.partialorder %v4812_v45, %v4195_v63 }
 0x46b   :  { %3452 = vmatpush.msk.msra.mxu2 %vm1418_vm11, %v5918_v34  ;;  %vm1413_vm11 = vcmp.eq.f32.partialorder %v4851_v43, %v4195_v63 }
 0x46d   :  { %3453 = vmatpush.msk.msra.mxu2 %vm1417_vm0, %v5918_v34 }
 0x4d6   :  { %v1071_v6 = vpop.f32.mrf.mxu2 }
 0x4dc   :  { %v1132_v12 = vpop.f32.mrf.mxu3 }
 0x4dd   :  { %v1133_v36 = vadd.f32 %v1132_v12, %v1071_v6  ;;  %v3893_v12 = vld [vmem:[%s5764_s5 + $0x38] sm:$0xff] }
 0x4de   :  { %v1073_v24 = vpop.f32.mrf.mxu2  ;;  %1384 = vmatpush.bf16.msra.mxu1 %v3893_v12 }
 0x4df   :  { %v4913_v54 = vadd.f32 %v3954_v1, %v1133_v36  ;;  %v3892_v36 = vld [vmem:[%s5764_s5 + $0x30] sm:$0xff]  ;;  %v3891_v24 = vld [vmem:[%s5764_s5 + $0x28] sm:$0xff] }
 0x4e1   :  { %v1257_v44 = vrot.slane %v4913_v54, 4  ;;  %v1263_v31 = vmul.f32 %v4913_v54, %v4913_v54 }
 0x4e2   :  { %1385 = vmatpush.bf16.msra.mxu1 %v3892_v36  ;;  %v3955_v36 = vld [vmem:[%s5761_s10 + $0x7] ss:$0 sm:$0xff] }
 0x4e3   :  { %v1258_v20 = vadd.f32 %v1257_v44, %v4913_v54  ;;  %v1264_v27 = vrot.slane %v1263_v31, 4 }
 0x4e4   :  { %v1134_v32 = vpop.f32.mrf.mxu3 }
 0x4e5   :  { %v1259_v59 = vrot.slane %v1258_v20, 2  ;;  %v1265_v3 = vadd.f32 %v1264_v27, %v1263_v31  ;;  %v3888_v31 = vld [vmem:[%s5764_s5 + $0x10] sm:$0xff] }
 0x4e6   :  { %1386 = vmatpush.bf16.msra.mxu1 %v3891_v24  ;;  %v5963_v27 = vld [vmem:[#allocation4_spill] sm:$0xff] }
 0x4e7   :  { %v1260_v46 = vadd.f32 %v1259_v59, %v1258_v20  ;;  %v1266_v14 = vrot.slane %v1265_v3, 2  ;;  %v3887_v20 = vld [vmem:[%s5764_s5 + $0x8] sm:$0xff]  ;;  %v1453_v32 = vadd.s32 16, %v5963_v27 }
 0x4e9   :  { %v1261_v25 = vrot.slane %v1260_v46, 1  ;;  %v1267_v22 = vadd.f32 %v1266_v14, %v1265_v3  ;;  %v3886_v3 = vld [vmem:[%s5764_s5] sm:$0xff]  ;;  %v4946_v14 = vcvt.s32.f32 %v1453_v32 }
 0x4eb   :  { %v1262_v57 = vadd.f32 %v1261_v25, %v1260_v46  ;;  %v1268_v6 = vrot.slane %v1267_v22, 1  ;;  %vm1470_vm13 = vcmp.eq.f32.partialorder %v4803_v30, %v4946_v14  ;;  %vm1469_vm10 = vcmp.eq.f32.partialorder %v4809_v29, %v4946_v14 }
 0x4ec   :  { %3467 = vmatpush.msk.msra.mxu0 %vm1470_vm13, %v5918_v34  ;;  %vm1468_vm15 = vcmp.eq.f32.partialorder %v4812_v45, %v4946_v14  ;;  %vm1467_vm12 = vcmp.eq.f32.partialorder %v4819_v37, %v4946_v14  ;;  %vm1416_vm13 = vcmp.eq.f32.partialorder %v4825_v5, %v4195_v63  ;;  %vm1466_vm1 = vcmp.eq.f32.partialorder %v4825_v5, %v4946_v14 }
 0x4ed   :  { %1288 = vmatmul.f32.vlgmr.msrb.gmra.mxu0 %v1262_v57  ;;  %v1269_v1 = vadd.f32 %v1268_v6, %v1267_v22  ;;  %v3890_v22 = vld [vmem:[%s5764_s5 + $0x20] sm:$0xff]  ;;  %v3889_v57 = vld [vmem:[%s5764_s5 + $0x18] sm:$0xff]  ;;  %3454 = vmatpush.msk.msra.mxu2 %vm1416_vm13, %v5918_v34  ;;  %vm1464_vm0 = vcmp.eq.f32.partialorder %v4837_v19, %v4946_v14  ;;  %vm1462_vm13 = vcmp.eq.f32.partialorder %v4857_v11, %v4946_v14 }
 0x4ee   :  { %1387 = vmatpush.bf16.msra.mxu1 %v3890_v22  ;;  %3468 = vmatpush.msk.msra.mxu0 %vm1469_vm10, %v5918_v34  ;;  %vm1465_vm10 = vcmp.eq.f32.partialorder %v4831_v9, %v4946_v14 }
 0x4ef   :  { %3455 = vmatpush.msk.msra.mxu2 %vm1415_vm14, %v5918_v34 }
 0x4f0   :  { %3469 = vmatpush.msk.msra.mxu0 %vm1468_vm15, %v5918_v34  ;;  %vm1414_vm15 = vcmp.eq.f32.partialorder %v4837_v19, %v4195_v63 }
 0x4f1   :  { %3456 = vmatpush.msk.msra.mxu2 %vm1414_vm15, %v5918_v34  ;;  %vm1461_vm15 = vcmp.eq.f32.partialorder %v4864_v52, %v4946_v14 }
 0x4f2   :  { %1388 = vmatpush.bf16.msra.mxu1 %v3889_v57  ;;  %3470 = vmatpush.msk.msra.mxu0 %vm1467_vm12, %v5918_v34  ;;  %vm1463_vm12 = vcmp.eq.f32.partialorder %v4851_v43, %v4946_v14 }
 0x4f3   :  { %3457 = vmatpush.msk.msra.mxu2 %vm1413_vm11, %v5918_v34  ;;  %vm1410_vm11 = vcmp.eq.f32.partialorder %v4871_v2, %v4195_v63 }
 0x4f4   :  { %3471 = vmatpush.msk.msra.mxu0 %vm1466_vm1, %v5918_v34  ;;  %vm1412_vm1 = vcmp.eq.f32.partialorder %v4857_v11, %v4195_v63 }
 0x4f5   :  { %1291 = vmatmul.f32.gmra.mxu0 %v1269_v1  ;;  %3458 = vmatpush.msk.msra.mxu2 %vm1412_vm1, %v5918_v34  ;;  %vm1409_vm1 = vcmp.eq.f32.partialorder %v4880_v51, %v4195_v63 }
 0x4f6   :  { %1389 = vmatpush.bf16.msra.mxu1 %v3888_v31  ;;  %3472 = vmatpush.msk.msra.mxu0 %vm1465_vm10, %v5918_v34  ;;  %vm1411_vm10 = vcmp.eq.f32.partialorder %v4864_v52, %v4195_v63  ;;  %v5964_v31 = vfloor.f32 %v4791_v15 }
 0x4f7   :  { %3459 = vmatpush.msk.msra.mxu2 %vm1411_vm10, %v5918_v34  ;;  %vm1407_vm10 = vcmp.eq.f32.partialorder %v4892_v35, %v4195_v63 }
 0x4f8   :  { %3473 = vmatpush.msk.msra.mxu0 %vm1464_vm0, %v5918_v34 }
 0x4f9   :  { %3460 = vmatpush.msk.msra.mxu2 %vm1410_vm11, %v5918_v34  ;;  %vm1456_vm11 = vcmp.eq.f32.partialorder %v4898_v18, %v4946_v14 }
 0x4fa   :  { %1390 = vmatpush.bf16.msra.mxu1 %v3887_v20  ;;  %3474 = vmatpush.msk.msra.mxu0 %vm1463_vm12, %v5918_v34  ;;  %vm1460_vm12 = vcmp.eq.f32.partialorder %v4871_v2, %v4946_v14  ;;  %v5965_v20 = vmov 0.0  }
 0x4fb   :  { %3461 = vmatpush.msk.msra.mxu2 %vm1409_vm1, %v5918_v34  ;;  %vm1455_vm1 = vcmp.eq.f32.partialorder %v4904_v38, %v4946_v14 }
 0x4fc   :  { %3475 = vmatpush.msk.msra.mxu0 %vm1462_vm13, %v5918_v34  ;;  %vm1459_vm13 = vcmp.eq.f32.partialorder %v4880_v51, %v4946_v14 }
 0x4fe   :  { %1391 = vmatpush.bf16.msra.mxu1 %v3886_v3  ;;  %3476 = vmatpush.msk.msra.mxu0 %vm1461_vm15, %v5918_v34  ;;  %vm1457_vm15 = vcmp.eq.f32.partialorder %v4892_v35, %v4946_v14  ;;  %v1397_v35 = vmul.f32 0.25, %v4411_v39 }
 0x500   :  { %3477 = vmatpush.msk.msra.mxu0 %vm1460_vm12, %v5918_v34  ;;  %vm1405_vm12 = vcmp.eq.f32.partialorder %v4904_v38, %v4195_v63  ;;  %v1398_v57 = vfloor.f32 %v1397_v35  ;;  %v3913_v35 = vld [vmem:[%s5768_s7 + $0x78] sm:$0xff] }
 0x502   :  { %3478 = vmatpush.msk.msra.mxu0 %vm1459_vm13, %v5918_v34 }
 0x56a   :  { %v1289_v44 = vpop.f32.mrf.mxu0 }
 0x56b   :  { %v4941_v59 = vmul.f32 0.03125, %v1289_v44  ;;  %v1399_v44 = vmul.f32 4.0, %v1398_v57 }
 0x56d   :  { %v1297_v25 = vmul.f32 %v4941_v59, %v4941_v59  ;;  %v1299_v9 = vperm.slane %v4941_v59, 0 }
 0x56f   :  { %v1300_v11 = vsub.f32 %v4913_v54, %v1299_v9  ;;  %v3956_v54 = vld [vmem:[%s5761_s10 + $0x8] ss:$0 sm:$0xff] }
 0x572   :  { %v1292_v46 = vpop.f32.mrf.mxu0 }
 0x573   :  { %v1296_v6 = vmul.f32 0.03125, %v1292_v46  ;;  %v1503_v46 = vmul.f32 0.25, %v4205_v4 }
 0x575   :  { %v1298_v1 = vsub.f32 %v1296_v6, %v1297_v25 }
 0x577   :  { %v1301_v12 = vadd.f32 1e-05, %v1298_v1  ;;  %v3957_v1 = vld [vmem:[%s5761_s10 + $0xa] ss:$0 sm:$0xff] }
 0x579   :  { %3972 = vrsqrt.f32 %v1301_v12  ;;  %vm1308_vm0 = vweird.f32 %v1301_v12 }
 0x57f   :  { %v3973_v30 = vpop.eup %3972 }
 0x580   :  { %v1303_v29 = vmul.f32 %v3973_v30, %v1301_v12  ;;  %vm1309_vm14 = vweird.f32 %v3973_v30 }
 0x581   :  { %vm1310_vm2 = vmor %vm1308_vm0, %vm1309_vm14  ;;  %vm1458_vm14 = vcmp.eq.f32.partialorder %v4883_v26, %v4946_v14  ;;  %vm1406_vm0 = vcmp.eq.f32.partialorder %v4898_v18, %v4195_v63  ;;  %v5056_v18 = vsub.f32 %v4396_v16, %v1399_v44  ;;  %v1504_v14 = vfloor.f32 %v1503_v46  ;;  %v3912_v44 = vld [vmem:[%s5768_s7 + $0x70] sm:$0xff]  ;;  %v3910_v46 = vld [vmem:[%s5768_s7 + $0x60] sm:$0xff] }
 0x582   :  { %v1304_v45 = vmul.f32 %v3973_v30, %v1303_v29  ;;  %3479 = vmatpush.msk.msra.mxu0 %vm1458_vm14, %v5918_v34  ;;  %vm1530_vm14 = vcmask 64512  }
 0x583   :  { %vm1401_vm13 = vcmp.eq.f32.partialorder %v5056_v18, %v5964_v31 }
 0x584   :  { %v1305_v37 = vmul.f32 0.5, %v1304_v45  ;;  %3480 = vmatpush.msk.msra.mxu0 %vm1457_vm15, %v5918_v34  ;;  %v3416_v32 = vsel %vm1401_vm13, 1.0, %v5965_v20  ;;  %vm1596_vm15 = vcmask 123904   ;;  %vm1687_vm13 = vcmask 1043456  }
 0x586   :  { %v1306_v5 = vsub.f32 1.5, %v1305_v37  ;;  %3481 = vmatpush.msk.msra.mxu0 %vm1456_vm11, %v5918_v34  ;;  %v3958_v37 = vld [vmem:[%s5761_s10 + $0x9] ss:$0 sm:$0xff]  ;;  %vm1613_vm11 = vcmask 1041408  }
 0x588   :  { %v1307_v19 = vmul.f32 %v3973_v30, %v1306_v5  ;;  %3482 = vmatpush.msk.msra.mxu0 %vm1455_vm1, %v5918_v34  ;;  %v1600_v5 = vld [vmem:[%s5766_s1] sm:$0x3]  ;;  %vm1637_vm1 = vcmp.eq.f32.partialorder %v4396_v16, %v4566_v7 }
 0x58a   :  { %v1311_v43 = vsel %vm1310_vm2, %v3973_v30, %v1307_v19  ;;  %vm1408_vm2 = vcmp.eq.f32.partialorder %v4883_v26, %v4195_v63 }
 0x58b   :  { %v1312_v52 = vperm.slane %v1311_v43, 0  ;;  %3462 = vmatpush.msk.msra.mxu2 %vm1408_vm2, %v5918_v34  ;;  %vm1505_vm2 = vcmp.eq.f32.partialorder %v4396_v16, %v1504_v14  ;;  %v3902_v14 = vld [vmem:[%s5768_s7 + $0x20] sm:$0xff] }
 0x58c   :  { %v3449_v25 = vsel %vm1505_vm2, 1.0, %v5965_v20  ;;  %vm1671_vm2 = vcmp.eq.f32.partialorder %v5056_v18, %v4195_v63 }
 0x58d   :  { %v1313_v2 = vmul.f32 %v1312_v52, %v1300_v11  ;;  %3463 = vmatpush.msk.msra.mxu2 %vm1407_vm10, %v5918_v34  ;;  %vm1638_vm10 = vcmp.eq.f32.partialorder %v4392_v55, %v4566_v7  ;;  %v3896_v7 = vld [vmem:[%s5767_s6 + $0x10] sm:$0xff] }
 0x58f   :  { %v1315_v51 = vmul.f32 %v3955_v36, %v1313_v2  ;;  %3464 = vmatpush.msk.msra.mxu2 %vm1406_vm0, %v5918_v34  ;;  %vm1606_vm0 = vcmp.eq.f32.partialorder %v1398_v57, %v4195_v63  ;;  %v3897_v2 = vld [vmem:[%s5767_s6 + $0x18] sm:$0xff] }
 0x590   :  { %v3485_v36 = vsel %vm1606_vm0, 1.0, %v5965_v20  ;;  %v3905_v57 = vld [vmem:[%s5768_s7 + $0x38] sm:$0xff] }
 0x591   :  { %v1317_v24 = vadd.f32 %v3956_v54, %v1315_v51  ;;  %3465 = vmatpush.msk.msra.mxu2 %vm1405_vm12, %v5918_v34  ;;  %vm1609_vm12 = vcmask 15360   ;;  %v1682_v54 = vld [vmem:[%s5761_s10 + $0xb] sm:$0xf]  ;;  %v3494_v51 = vsel %vm1671_vm2, 1.0, %v5965_v20 }
 0x593   :  { %v1318_v26 = vmax.f32 %v1317_v24, 0.0  ;;  %v3895_v24 = vld [vmem:[%s5767_s6 + $0x8] sm:$0xff]  ;;  %1816 = vmatpush.bf16.msrb.mxu2 %v3905_v57 }
 0x595   :  { %v1319_v22 = vpack.c.bf16 %v1318_v26, %v1318_v26 }
 0x597   :  { %1392 = vmatmul.bf16.vlgmr.msra.gmra.mxu1 %v1319_v22  ;;  %v3894_v22 = vld [vmem:[%s5767_s6] sm:$0xff]  ;;  %1817 = vmatpush.bf16.msrb.mxu2 %v3904_v48 }
 0x614   :  { %v1393_v59 = vpop.f32.mrf.mxu1 }
 0x615   :  { %v1404_v3 = vmul.f32 %v3416_v32, %v1393_v59  ;;  %v3903_v59 = vld [vmem:[%s5768_s7 + $0x28] sm:$0xff]  ;;  %v5212_v32 = vmul.u32 2, %v5963_v27 }
 0x616   :  { %1818 = vmatpush.bf16.msrb.mxu2 %v3903_v59  ;;  %v5993_v59 = vld [vmem:[#allocation2_spill] sm:$0xff] }
 0x617   :  { %1524 = vmatmul.f32.vlgmr.msra.gmra.mxu2 %v1404_v3  ;;  %1570 = vmatmul.f32.vlgmr.msra.gmra.mxu0 %v1404_v3  ;;  %v5994_v3 = vld [vmem:[#allocation3_spill] sm:$0xff] }
 0x61a   :  { %1819 = vmatpush.bf16.msrb.mxu2 %v3902_v14 }
 0x61c   :  { %v1395_v38 = vpop.f32.mrf.mxu1 }
 0x694   :  { %v1571_v6 = vpop.f32.mrf.mxu0 }
 0x695   :  { %1591 = vmatpush.msrb.mxu1 %v1571_v6  ;;  %v5972_v6 = vld [vmem:[#allocation34_spill] sm:$0xff] }
 0x696   :  { %3483 = vmatmul.msk.f32.vlgmr.msrb.gmra.mxu1 %vm1530_vm14, %v3449_v25 }
 0x697   :  { %3490 = vmatpush.msk.msra.mxu1 %vm1638_vm10, %v5918_v34  ;;  %vm1683_vm10 = vcmask 31744  }
 0x699   :  { %3491 = vmatpush.msk.msra.mxu1 %vm1637_vm1, %v5918_v34  ;;  %vm5992_vm1 = vcmask 523264  }
 0x69a   :  { %v1525_v15 = vpop.f32.mrf.mxu2 }
 0x69b   :  { %1549 = vmatpush.msrb.mxu3 %v1525_v15  ;;  %1742 = vmatpush.bf16.msrb.mxu1 %v3897_v2  ;;  %v3909_v15 = vld [vmem:[%s5768_s7 + $0x58] sm:$0xff] }
 0x69c   :  { %3466 = vmatmul.msk.f32.vlgmr.msrb.gmra.mxu3 %vm1530_vm14, %v3449_v25 }
 0x69f   :  { %1743 = vmatpush.bf16.msrb.mxu1 %v3896_v7 }
 0x6a3   :  { %1744 = vmatpush.bf16.msrb.mxu1 %v3895_v24  ;;  %v3899_v24 = vld [vmem:[%s5768_s7 + $0x8] sm:$0xff] }
 0x6a7   :  { %1745 = vmatpush.bf16.msrb.mxu1 %v3894_v22  ;;  %v3898_v22 = vld [vmem:[%s5768_s7] sm:$0xff] }
 0x713   :  { %v1593_v12 = vpop.f32.mrf.mxu1 }
 0x714   :  { %v1594_v30 = vadd.f32 %v3957_v1, %v1593_v12  ;;  %v3901_v1 = vld [vmem:[%s5768_s7 + $0x18] sm:$0xff]  ;;  %v5974_v12 = vld [vmem:[#allocation35_spill] sm:$0xff] }
 0x715   :  { %1820 = vmatpush.bf16.msrb.mxu2 %v3901_v1 }
 0x716   :  { %3484 = vst.msk [vmem:[%s5765_s11 + $0x2] sm:$0x3] %vm1596_vm15, %v1594_v30  ;;  %v1601_v29 = vmul.f32 0.5, %v1594_v30  ;;  %v5976_v30 = vld [vmem:[#allocation36_spill] sm:$0xff] }
 0x718   :  { %v1602_v45 = vmul.f32 1.442695, %v1601_v29  ;;  %v3908_v29 = vld [vmem:[%s5768_s7 + $0x50] sm:$0xff] }
 0x71a   :  { %3974 = vpow2.f32 %v1602_v45  ;;  %v3900_v45 = vld [vmem:[%s5768_s7 + $0x10] sm:$0xff] }
 0x71b   :  { %1821 = vmatpush.bf16.msrb.mxu2 %v3900_v45 }
 0x71f   :  { %v1551_v9 = vpop.f32.mrf.mxu3  ;;  %1822 = vmatpush.bf16.msrb.mxu2 %v3899_v24 }
 0x720   :  { %v3975_v19 = vpop.eup %3974  ;;  %v1552_v43 = vadd.f32 %v3958_v37, %v1551_v9  ;;  %v5978_v37 = vld [vmem:[#allocation37_spill] sm:$0xff]  ;;  %v5982_v9 = vld [vmem:[#allocation28_spill] sm:$0xff] }
 0x721   :  { %v1604_v11 = vmul.f32 %v3975_v19, %v1600_v5  ;;  %v5980_v5 = vld [vmem:[#allocation38_spill] sm:$0xff]  ;;  %v5983_v19 = vfloor.f32 %v5982_v9 }
 0x722   :  { %1597 = vst.msk [vmem:[%s5765_s11] sm:$0x3] %vm1596_vm15, %v1552_v43  ;;  %vm5966_vm15 = vcmask 130048  }
 0x723   :  { %v1605_v52 = vadd.f32 %v1604_v11, %v1552_v43  ;;  %v3907_v43 = vld [vmem:[%s5768_s7 + $0x48] sm:$0xff]  ;;  %1823 = vmatpush.bf16.msrb.mxu2 %v3898_v22 }
 0x724   :  { %v5984_v11 = vld [vmem:[#allocation39_spill] sm:$0xff] }
 0x725   :  { %3486 = vmatpush.msk.msra.mxu3 %vm1613_vm11, %v1605_v52 }
 0x726   :  { %3487 = vmatmul.msk.f32.vlgmr.msra.gmra.mxu3 %vm1609_vm12, %v3485_v36  ;;  %v5986_v36 = vld [vmem:[#allocation40_spill] sm:$0xff] }
 0x727   :  { %3495 = vmatpush.msk.msrb.mxu3 %vm1687_vm13, %v1682_v54  ;;  %vm5987_vm0 = vnez %v5986_v36 }
 0x729   :  { %1895 = vmatpush.bf16.msra.mxu3 %v3913_v35 }
 0x72d   :  { %1896 = vmatpush.bf16.msra.mxu3 %v3912_v44 }
 0x72e   :  { %3496 = vmatmul.msk.f32.vlgmr.msrb.gmra.mxu3 %vm1683_vm10, %v3494_v51  ;;  %v5990_v51 = vld [vmem:[#allocation42_spill] sm:$0xff] }
 0x72f   :  { %vm5991_vm12 = vnez %v5990_v51 }
 0x731   :  { %1897 = vmatpush.bf16.msra.mxu3 %v3911_v33  ;;  %v5215_v33 = vadd.s32 1, %v5212_v32 }
 0x733   :  { %vm1918_vm2 = vcmp.eq.s32.totalorder %v5993_v59, %v5215_v33  ;;  %vm1919_vm10 = vcmp.eq.s32.totalorder %v5994_v3, %v5215_v33 }
 0x734   :  { %v3596_v14 = vsel %vm1918_vm2, 1.0, %v5965_v20  ;;  %v3597_v25 = vsel %vm1919_vm10, 1.0, %v5965_v20 }
 0x735   :  { %1898 = vmatpush.bf16.msra.mxu3 %v3910_v46 }
 0x739   :  { %1899 = vmatpush.bf16.msra.mxu3 %v3909_v15 }
 0x73d   :  { %1900 = vmatpush.bf16.msra.mxu3 %v3908_v29 }
 0x741   :  { %1901 = vmatpush.bf16.msra.mxu3 %v3907_v43 }
 0x7a9   :  { %v1634_v26 = vpop.f32.mrf.mxu3 }
 0x7aa   :  { %3492 = vmatmul.msk.f32.vlgmr.msra.gmra.mxu1 %vm5966_vm15, %v1634_v26  ;;  %v3906_v26 = vld [vmem:[%s5768_s7 + $0x40] sm:$0xff]  ;;  %vm1910_vm15 = vcmp.eq.s32.totalorder %v5993_v59, %v5212_v32 }
 0x7ab   :  { %3600 = vmatpush.msk.msra.mxu1 %vm4573_vm9, %v5918_v34  ;;  %vm1666_vm9 = vcmp.eq.f32.partialorder %v5056_v18, %v5983_v19  ;;  %v5988_v18 = vld [vmem:[#allocation41_spill] sm:$0xff]  ;;  %1902 = vmatpush.bf16.msra.mxu3 %v3906_v26  ;;  %v3594_v45 = vsel %vm1910_vm15, 1.0, %v5965_v20 }
 0x7ac   :  { %v3493_v52 = vsel %vm1666_vm9, 1.0, %v5965_v20  ;;  %vm5989_vm11 = vnez %v5988_v18 }
 0x7ad   :  { %3601 = vmatpush.msk.msra.mxu1 %vm4582_vm8, %v5918_v34  ;;  %vm5985_vm8 = vnez %v5984_v11 }
 0x7af   :  { %3602 = vmatpush.msk.msra.mxu1 %vm4592_vm4, %v5918_v34  ;;  %vm5981_vm4 = vnez %v5980_v5 }
 0x7b1   :  { %3603 = vmatpush.msk.msra.mxu1 %vm4602_vm7, %v5918_v34  ;;  %vm5979_vm7 = vnez %v5978_v37  ;;  %v1708_v35 = vpop.f32.mrf.mxu3 }
 0x7b3   :  { %3604 = vmatpush.msk.msra.mxu1 %vm4612_vm6, %v5918_v34  ;;  %vm5973_vm6 = vnez %v5972_v6 }
 0x7b5   :  { %3605 = vmatpush.msk.msra.mxu1 %vm4622_vm5, %v5918_v34  ;;  %vm5975_vm5 = vnez %v5974_v12  ;;  %v5225_v12 = vpack.c.bf16 %v3597_v25, %v3596_v14 }
 0x7b7   :  { %3606 = vmatpush.msk.msra.mxu1 %vm4634_vm3, %v5918_v34  ;;  %vm5977_vm3 = vnez %v5976_v30 }
 0x7b9   :  { %3607 = vmatpush.msk.msra.mxu1 %vm5973_vm6, %v5918_v34  ;;  %vm1911_vm6 = vcmp.eq.s32.totalorder %v5994_v3, %v5212_v32 }
 0x7ba   :  { %v3595_v37 = vsel %vm1911_vm6, 1.0, %v5965_v20 }
 0x7bb   :  { %3608 = vmatpush.msk.msra.mxu1 %vm5975_vm5, %v5918_v34  ;;  %v5235_v5 = vpack.c.bf16 %v3595_v37, %v3594_v45  ;;  %v3918_v45 = vld [vmem:[%s5769_s8 + $0x20] sm:$0xff] }
 0x7bc   :  { %v3926_v37 = vld [vmem:[%s5769_s8 + $0x60] sm:$0xff] }
 0x7bd   :  { %3609 = vmatpush.msk.msra.mxu1 %vm5977_vm3, %v5918_v34 }
 0x7bf   :  { %3610 = vmatpush.msk.msra.mxu1 %vm5979_vm7, %v5918_v34 }
 0x7c1   :  { %3611 = vmatpush.msk.msra.mxu1 %vm5981_vm4, %v5918_v34  ;;  %vm5995_vm4 = vcmask 130048  }
 0x7c3   :  { %3612 = vmatpush.msk.msra.mxu1 %vm5985_vm8, %v5918_v34  ;;  %vm5998_vm8 = vmmov %vm5995_vm4 }
 0x7c5   :  { %3613 = vmatpush.msk.msra.mxu1 %vm5987_vm0, %v5918_v34 }
 0x7c7   :  { %3614 = vmatpush.msk.msra.mxu1 %vm5989_vm11, %v5918_v34 }
 0x7c9   :  { %3615 = vmatpush.msk.msra.mxu1 %vm5991_vm12, %v5918_v34 }
 0x827   :  { %v1663_v2 = vpop.f32.mrf.mxu1 }
 0x828   :  { %v1669_v54 = vmul.f32 %v3493_v52, %v1663_v2  ;;  %v3959_v52 = vld [vmem:[%s5761_s10 + $0xf] ss:$0 sm:$0xff] }
 0x82a   :  { %v1670_v7 = vpack.c.bf16 %v1669_v54, %v1669_v54 }
 0x82c   :  { %3513 = vmatmul.msk.bf16.vlgmr.msrb.gmra.mxu1 %vm5992_vm1, %v1670_v7 }
 0x8a9   :  { %v1747_v57 = vpop.f32.mrf.mxu1 }
 0x8aa   :  { %v1748_v44 = vadd.f32 %v1747_v57, %v1708_v35 }
 0x8ac   :  { %v1751_v48 = vpack.c.bf16 %v1748_v44, %v1748_v44 }
 0x8ae   :  { %1903 = vmatmul.bf16.vlgmr.msra.gmra.mxu3 %v1751_v48  ;;  %1824 = vmatmul.bf16.vlgmr.msrb.gmra.mxu2 %v1751_v48 }
 0x8b1   :  { %v1749_v31 = vpop.f32.mrf.mxu1 }
 0x931   :  { %v1904_v38 = vpop.f32.mrf.mxu3  ;;  %v1825_v46 = vpop.f32.mrf.mxu2 }
 0x932   :  { %v1908_v6 = vpack.c.bf16 %v1904_v38, %v1904_v38  ;;  %v1829_v15 = vpack.c.bf16 %v1825_v46, %v1825_v46 }
 0x934   :  { %v1929_v27 = vsel %vm1687_vm13, %v1908_v6, 0  ;;  %v1949_v1 = vsel %vm1687_vm13, %v1829_v15, 0  ;;  %v3921_v6 = vld [vmem:[%s5769_s8 + $0x38] sm:$0xff] }
 0x935   :  { %1938 = vmatpush.bf16.msrb.mxu0 %v1929_v27  ;;  %v3929_v15 = vld [vmem:[%s5769_s8 + $0x78] sm:$0xff]  ;;  %v3920_v27 = vld [vmem:[%s5769_s8 + $0x30] sm:$0xff] }
 0x936   :  { %2190 = vmatpush.bf16.msra.mxu2 %v3929_v15 }
 0x938   :  { %3598 = vmatmul.msk.bf16.vlgmr.msrb.gmra.mxu0 %vm1530_vm14, %v5225_v12 }
 0x939   :  { %1958 = vmatpush.bf16.msra.mxu0 %v1949_v1  ;;  %v1827_v30 = vpop.f32.mrf.mxu2  ;;  %v1906_v29 = vpop.f32.mrf.mxu3  ;;  %v3928_v1 = vld [vmem:[%s5769_s8 + $0x70] sm:$0xff] }
 0x93a   :  { %2191 = vmatpush.bf16.msra.mxu2 %v3928_v1  ;;  %v3919_v30 = vld [vmem:[%s5769_s8 + $0x28] sm:$0xff]  ;;  %v3960_v1 = vld [vmem:[%s5761_s10 + $0x10] ss:$0 sm:$0xff] }
 0x93b   :  { %v3927_v29 = vld [vmem:[%s5769_s8 + $0x68] sm:$0xff] }
 0x93d   :  { %2110 = vmatpush.bf16.msrb.mxu0 %v3921_v6 }
 0x93e   :  { %2192 = vmatpush.bf16.msra.mxu2 %v3927_v29 }
 0x941   :  { %2111 = vmatpush.bf16.msrb.mxu0 %v3920_v27 }
 0x942   :  { %2193 = vmatpush.bf16.msra.mxu2 %v3926_v37 }
 0x945   :  { %2112 = vmatpush.bf16.msrb.mxu0 %v3919_v30 }
 0x948   :  { %3599 = vmatmul.msk.bf16.vlgmr.msra.gmra.mxu0 %vm1530_vm14, %v5235_v5 }
 0x949   :  { %2113 = vmatpush.bf16.msrb.mxu0 %v3918_v45  ;;  %v3961_v45 = vld [vmem:[%s5761_s10 + $0x11] ss:$0 sm:$0xff] }
 0x9b5   :  { %v1940_v9 = vpop.f32.mrf.mxu0 }
 0x9bd   :  { %v1942_v19 = vpop.f32.mrf.mxu0 }
 0x9c5   :  { %v1960_v43 = vpop.f32.mrf.mxu0 }
 0x9c6   :  { %v1961_v11 = vadd.f32 %v1960_v43, %v1940_v9  ;;  %v3917_v9 = vld [vmem:[%s5769_s8 + $0x18] sm:$0xff] }
 0x9c7   :  { %2114 = vmatpush.bf16.msrb.mxu0 %v3917_v9 }
 0x9c8   :  { %v5242_v2 = vadd.f32 %v3959_v52, %v1961_v11  ;;  %v3916_v11 = vld [vmem:[%s5769_s8 + $0x10] sm:$0xff] }
 0x9ca   :  { %v1978_v51 = vmul.f32 %v5242_v2, %v5242_v2 }
 0x9cb   :  { %2115 = vmatpush.bf16.msrb.mxu0 %v3916_v11 }
 0x9cd   :  { %v1962_v36 = vpop.f32.mrf.mxu0 }
 0x9ce   :  { %v1963_v18 = vadd.f32 %v1962_v36, %v1942_v19  ;;  %v3925_v19 = vld [vmem:[%s5769_s8 + $0x58] sm:$0xff]  ;;  %v3915_v36 = vld [vmem:[%s5769_s8 + $0x8] sm:$0xff] }
 0x9cf   :  { %2194 = vmatpush.bf16.msra.mxu2 %v3925_v19  ;;  %2116 = vmatpush.bf16.msrb.mxu0 %v3915_v36 }
 0x9d0   :  { %v5244_v54 = vadd.f32 %v3959_v52, %v1963_v18  ;;  %v3924_v52 = vld [vmem:[%s5769_s8 + $0x50] sm:$0xff]  ;;  %v3923_v18 = vld [vmem:[%s5769_s8 + $0x48] sm:$0xff] }
 0x9d2   :  { %v1971_v7 = vadd.f32 %v5244_v54, %v5242_v2  ;;  %v1979_v24 = vmul.f32 %v5244_v54, %v5244_v54 }
 0x9d3   :  { %2195 = vmatpush.bf16.msra.mxu2 %v3924_v52 }
 0x9d4   :  { %v1972_v26 = vrot.slane %v1971_v7, 4  ;;  %v1980_v22 = vadd.f32 %v1979_v24, %v1978_v51  ;;  %v3922_v24 = vld [vmem:[%s5769_s8 + $0x40] sm:$0xff] }
 0x9d6   :  { %v1973_v35 = vadd.f32 %v1972_v26, %v1971_v7  ;;  %v1981_v57 = vrot.slane %v1980_v22, 4  ;;  %v3914_v7 = vld [vmem:[%s5769_s8] sm:$0xff] }
 0x9d7   :  { %2196 = vmatpush.bf16.msra.mxu2 %v3923_v18  ;;  %2117 = vmatpush.bf16.msrb.mxu0 %v3914_v7 }
 0x9d8   :  { %v1974_v44 = vrot.slane %v1973_v35, 2  ;;  %v1982_v48 = vadd.f32 %v1981_v57, %v1980_v22 }
 0x9da   :  { %v1975_v31 = vadd.f32 %v1974_v44, %v1973_v35  ;;  %v1983_v59 = vrot.slane %v1982_v48, 2 }
 0x9db   :  { %2197 = vmatpush.bf16.msra.mxu2 %v3922_v24 }
 0x9dc   :  { %v1976_v3 = vrot.slane %v1975_v31, 1  ;;  %v1984_v46 = vadd.f32 %v1983_v59, %v1982_v48 }
 0x9de   :  { %v1977_v38 = vadd.f32 %v1976_v3, %v1975_v31  ;;  %v1985_v14 = vrot.slane %v1984_v46, 1 }
 0x9e0   :  { %2005 = vmatmul.f32.vlgmr.msra.gmra.mxu1 %v1977_v38  ;;  %v1986_v25 = vadd.f32 %v1985_v14, %v1984_v46 }
 0x9e8   :  { %2008 = vmatmul.f32.gmra.mxu1 %v1986_v25 }
 0xa5d   :  { %v2006_v43 = vpop.f32.mrf.mxu1 }
 0xa5e   :  { %v2012_v51 = vmul.f32 0.0078125, %v2006_v43 }
 0xa60   :  { %v2014_v22 = vmul.f32 %v2012_v51, %v2012_v51  ;;  %v2016_v46 = vperm.slane %v2012_v51, 0 }
 0xa62   :  { %v2017_v6 = vsub.f32 %v5242_v2, %v2016_v46  ;;  %v2018_v15 = vsub.f32 %v5244_v54, %v2016_v46 }
 0xa65   :  { %v2009_v26 = vpop.f32.mrf.mxu1 }
 0xa66   :  { %v2013_v35 = vmul.f32 0.0078125, %v2009_v26 }
 0xa68   :  { %v2015_v57 = vsub.f32 %v2013_v35, %v2014_v22  ;;  %v5996_v35 = vld [vmem:[#allocation7_spill] sm:$0xff] }
 0xa69   :  { %vm5997_vm9 = vnez %v5996_v35 }
 0xa6a   :  { %v2019_v44 = vadd.f32 1e-05, %v2015_v57  ;;  %v5999_v57 = vld [vmem:[#allocation5_spill] sm:$0xff] }
 0xa6b   :  { %vm2205_vm0 = vcmp.eq.s32.totalorder %v5999_v57, %v5212_v32  ;;  %vm2212_vm10 = vcmp.eq.s32.totalorder %v5999_v57, %v5215_v33 }
 0xa6c   :  { %3976 = vrsqrt.f32 %v2019_v44  ;;  %vm2026_vm13 = vweird.f32 %v2019_v44 }
 0xa72   :  { %v3977_v48 = vpop.eup %3976 }
 0xa73   :  { %v2021_v31 = vmul.f32 %v3977_v48, %v2019_v44  ;;  %vm2027_vm14 = vweird.f32 %v3977_v48  ;;  %v6000_v44 = vld [vmem:[#allocation6_spill] sm:$0xff] }
 0xa74   :  { %vm2028_vm5 = vmor %vm2026_vm13, %vm2027_vm14  ;;  %vm2206_vm11 = vcmp.eq.s32.totalorder %v6000_v44, %v5212_v32  ;;  %vm2213_vm15 = vcmp.eq.s32.totalorder %v6000_v44, %v5215_v33 }
 0xa75   :  { %v2022_v59 = vmul.f32 %v3977_v48, %v2021_v31  ;;  %v3696_v31 = vsel %vm2205_vm0, 1.0, %v5965_v20  ;;  %vm6011_vm13 = vmmov %vm5995_vm4 }
 0xa77   :  { %v2023_v3 = vmul.f32 0.5, %v2022_v59  ;;  %v3697_v59 = vsel %vm2206_vm11, 1.0, %v5965_v20 }
 0xa78   :  { %v5334_v46 = vpack.c.bf16 %v3697_v59, %v3696_v31 }
 0xa79   :  { %v2024_v38 = vsub.f32 1.5, %v2023_v3  ;;  %v6003_v3 = vld [vmem:[#allocation10_spill] sm:$0xff] }
 0xa7a   :  { %vm6004_vm1 = vnez %v6003_v3 }
 0xa7b   :  { %v2025_v14 = vmul.f32 %v3977_v48, %v2024_v38  ;;  %v6005_v38 = vld [vmem:[#allocation12_spill] sm:$0xff] }
 0xa7c   :  { %vm6006_vm2 = vnez %v6005_v38 }
 0xa7d   :  { %v2029_v25 = vsel %vm2028_vm5, %v3977_v48, %v2025_v14  ;;  %v6001_v48 = vld [vmem:[#allocation8_spill] sm:$0xff]  ;;  %v6007_v14 = vld [vmem:[#allocation13_spill] sm:$0xff] }
 0xa7e   :  { %v2030_v27 = vperm.slane %v2029_v25, 0  ;;  %vm6002_vm12 = vnez %v6001_v48  ;;  %vm6008_vm6 = vnez %v6007_v14  ;;  %v3698_v25 = vsel %vm2212_vm10, 1.0, %v5965_v20 }
 0xa80   :  { %v2031_v30 = vmul.f32 %v2030_v27, %v2017_v6  ;;  %v2032_v29 = vmul.f32 %v2030_v27, %v2018_v15  ;;  %v3699_v6 = vsel %vm2213_vm15, 1.0, %v5965_v20  ;;  %v6009_v15 = vld [vmem:[#allocation15_spill] sm:$0xff]  ;;  %v6012_v27 = vld [vmem:[#allocation17_spill] sm:$0xff] }
 0xa81   :  { %vm6010_vm14 = vnez %v6009_v15  ;;  %vm6013_vm5 = vnez %v6012_v27 }
 0xa82   :  { %v2034_v37 = vmul.f32 %v3960_v1, %v2031_v30  ;;  %v2035_v9 = vmul.f32 %v3960_v1, %v2032_v29  ;;  %v5349_v1 = vpack.c.bf16 %v3699_v6, %v3698_v25  ;;  %v6014_v30 = vld [vmem:[#allocation19_spill] sm:$0xff]  ;;  %v6016_v29 = vld [vmem:[#allocation20_spill] sm:$0xff] }
 0xa84   :  { %v2037_v19 = vadd.f32 %v3961_v45, %v2034_v37  ;;  %v2038_v43 = vadd.f32 %v3961_v45, %v2035_v9  ;;  %v6018_v45 = vld [vmem:[#allocation21_spill] sm:$0xff]  ;;  %v6020_v37 = vld [vmem:[#allocation22_spill] sm:$0xff]  ;;  %v6022_v9 = vld [vmem:[#allocation23_spill] sm:$0xff] }
 0xa85   :  { %vm6023_vm0 = vnez %v6022_v9 }
 0xa86   :  { %vm2039_vm3 = vcmp.ge.f32.partialorder %v2037_v19, 0.0  ;;  %vm2040_vm7 = vcmp.ge.f32.partialorder %v2038_v43, 0.0  ;;  %v2041_v2 = vmul.f32 0.2, %v2037_v19  ;;  %v2042_v11 = vmul.f32 0.2, %v2038_v43 }
 0xa88   :  { %v2043_v54 = vsel %vm2039_vm3, %v2037_v19, %v2041_v2  ;;  %v2044_v52 = vsel %vm2040_vm7, %v2038_v43, %v2042_v11  ;;  %vm6015_vm3 = vnez %v6014_v30  ;;  %vm6017_vm7 = vnez %v6016_v29  ;;  %v6024_v19 = vld [vmem:[#allocation24_spill] sm:$0xff]  ;;  %v6026_v43 = vld [vmem:[#allocation25_spill] sm:$0xff]  ;;  %v6028_v2 = vld [vmem:[#allocation26_spill] sm:$0xff] }
 0xa89   :  { %v2045_v36 = vpack.c.bf16 %v2044_v52, %v2043_v54  ;;  %vm6025_vm11 = vnez %v6024_v19  ;;  %v6030_v11 = vld [vmem:[#allocation27_spill] sm:$0xff] }
 0xa8b   :  { %2118 = vmatmul.bf16.vlgmr.msrb.gmra.mxu0 %v2045_v36  ;;  %2198 = vmatmul.bf16.vlgmr.msra.gmra.mxu2 %v2045_v36 }
 0xb08   :  { %v2119_v18 = vpop.f32.mrf.mxu0 }
 0xb0e   :  { %v2199_v51 = vpop.f32.mrf.mxu2 }
 0xb10   :  { %v2121_v7 = vpop.f32.mrf.mxu0 }
 0xb11   :  { %v2124_v24 = vpack.c.bf16 %v2121_v7, %v2119_v18 }
 0xb13   :  { %2255 = vmatpush.bf16.msrb.mxu1 %v2124_v24 }
 0xb16   :  { %v2201_v26 = vpop.f32.mrf.mxu2  ;;  %3702 = vmatmul.msk.bf16.vlgmr.msrb.gmra.mxu1 %vm5995_vm4, %v5235_v5 }
 0xb17   :  { %v2204_v22 = vpack.c.bf16 %v2201_v26, %v2199_v51 }
 0xb19   :  { %2231 = vmatpush.bf16.msrb.mxu3 %v2204_v22  ;;  %v3962_v22 = vld [vmem:[%s5761_s10 + $0x12] ss:$0 sm:$0xff] }
 0xb1c   :  { %3700 = vmatmul.msk.bf16.vlgmr.msrb.gmra.mxu3 %vm5998_vm8, %v5225_v12  ;;  %vm6021_vm8 = vnez %v6020_v37 }
 0xb1d   :  { %3704 = vmatpush.msk.msra.mxu3 %vm5997_vm9, %v5918_v34  ;;  %vm6019_vm9 = vnez %v6018_v45 }
 0xb1f   :  { %3705 = vmatpush.msk.msra.mxu3 %vm6002_vm12, %v5918_v34  ;;  %vm6027_vm12 = vnez %v6026_v43 }
 0xb21   :  { %3706 = vmatpush.msk.msra.mxu3 %vm6004_vm1, %v5918_v34  ;;  %vm6029_vm1 = vnez %v6028_v2 }
 0xb23   :  { %3707 = vmatpush.msk.msra.mxu3 %vm6006_vm2, %v5918_v34  ;;  %vm6031_vm2 = vnez %v6030_v11 }
 0xb25   :  { %3708 = vmatpush.msk.msra.mxu3 %vm6008_vm6, %v5918_v34 }
 0xb26   :  { %3703 = vmatmul.msk.bf16.gmra.mxu1 %vm6011_vm13, %v5334_v46 }
 0xb27   :  { %3709 = vmatpush.msk.msra.mxu3 %vm6010_vm14, %v5918_v34 }
 0xb29   :  { %3710 = vmatpush.msk.msra.mxu3 %vm6013_vm5, %v5918_v34 }
 0xb2b   :  { %3711 = vmatpush.msk.msra.mxu3 %vm6015_vm3, %v5918_v34 }
 0xb2c   :  { %3701 = vmatmul.msk.bf16.gmra.mxu3 %vm5995_vm4, %v5349_v1 }
 0xb2d   :  { %3712 = vmatpush.msk.msra.mxu3 %vm6017_vm7, %v5918_v34  ;;  %vm6032_vm7 = vcmask 261120  }
 0xb2e   :  { %vm6033_vm4 = vmmov %vm6032_vm7 }
 0xb2f   :  { %3713 = vmatpush.msk.msra.mxu3 %vm6019_vm9, %v5918_v34  ;;  %vm6034_vm9 = vmmov %vm6033_vm4 }
 0xb31   :  { %3714 = vmatpush.msk.msra.mxu3 %vm6021_vm8, %v5918_v34  ;;  %vm6035_vm8 = vmmov %vm6033_vm4 }
 0xb33   :  { %3715 = vmatpush.msk.msra.mxu3 %vm6023_vm0, %v5918_v34 }
 0xb35   :  { %3716 = vmatpush.msk.msra.mxu3 %vm6025_vm11, %v5918_v34 }
 0xb37   :  { %3717 = vmatpush.msk.msra.mxu3 %vm6027_vm12, %v5918_v34 }
 0xb39   :  { %3718 = vmatpush.msk.msra.mxu3 %vm6029_vm1, %v5918_v34 }
 0xb3b   :  { %3719 = vmatpush.msk.msra.mxu3 %vm6031_vm2, %v5918_v34  ;;  %vm6038_vm2 = vmmov %vm6033_vm4 }
 0xb93   :  { %v2257_v54 = vpop.f32.mrf.mxu1 }
 0xb9b   :  { %v2259_v36 = vpop.f32.mrf.mxu1 }
 0xb9f   :  { %v2233_v52 = vpop.f32.mrf.mxu3 }
 0xba0   :  { %v2258_v26 = vadd.f32 %v2257_v54, %v2233_v52 }
 0xba2   :  { %v5385_v44 = vadd.f32 %v3962_v22, %v2258_v26 }
 0xba3   :  { %v2262_v51 = vpop.f32.mrf.mxu1 }
 0xba4   :  { %v2284_v38 = vmul.f32 %v5385_v44, %v5385_v44 }
 0xba7   :  { %v2235_v18 = vpop.f32.mrf.mxu3 }
 0xba8   :  { %v2260_v7 = vadd.f32 %v2259_v36, %v2235_v18 }
 0xbaa   :  { %v5383_v57 = vadd.f32 %v3962_v22, %v2260_v7 }
 0xbab   :  { %v2264_v3 = vpop.f32.mrf.mxu1 }
 0xbac   :  { %v2285_v31 = vmul.f32 %v5383_v57, %v5383_v57  ;;  %v2275_v14 = vadd.f32 %v5383_v57, %v5385_v44 }
 0xbae   :  { %v2288_v15 = vadd.f32 %v2285_v31, %v2284_v38  ;;  %v3936_v31 = vld [vmem:[%s5770_s9 + $0x30] sm:$0xff]  ;;  %v3943_v38 = vld [vmem:[%s5770_s9 + $0x68] sm:$0xff] }
 0xbaf   :  { %v2238_v24 = vpop.f32.mrf.mxu3 }
 0xbb0   :  { %v2263_v35 = vadd.f32 %v2262_v51, %v2238_v24 }
 0xbb2   :  { %v5387_v48 = vadd.f32 %v3962_v22, %v2263_v35  ;;  %v3945_v35 = vld [vmem:[%s5770_s9 + $0x78] sm:$0xff] }
 0xbb3   :  { %2521 = vmatpush.bf16.msra.mxu1 %v3945_v35 }
 0xbb4   :  { %v2286_v25 = vmul.f32 %v5387_v48, %v5387_v48  ;;  %v2276_v27 = vadd.f32 %v2275_v14, %v5387_v48  ;;  %v3934_v14 = vld [vmem:[%s5770_s9 + $0x20] sm:$0xff] }
 0xbb6   :  { %v2289_v29 = vadd.f32 %v2288_v15, %v2286_v25  ;;  %v3942_v25 = vld [vmem:[%s5770_s9 + $0x60] sm:$0xff]  ;;  %v3941_v15 = vld [vmem:[%s5770_s9 + $0x58] sm:$0xff] }
 0xbb7   :  { %v2240_v59 = vpop.f32.mrf.mxu3 }
 0xbb8   :  { %v2265_v6 = vadd.f32 %v2264_v3, %v2240_v59  ;;  %v3944_v59 = vld [vmem:[%s5770_s9 + $0x70] sm:$0xff]  ;;  %v3935_v3 = vld [vmem:[%s5770_s9 + $0x28] sm:$0xff] }
 0xbb9   :  { %2522 = vmatpush.bf16.msra.mxu1 %v3944_v59 }
 0xbba   :  { %v5398_v30 = vadd.f32 %v3962_v22, %v2265_v6  ;;  %v3937_v22 = vld [vmem:[%s5770_s9 + $0x38] sm:$0xff] }
 0xbbb   :  { %2435 = vmatpush.bf16.msra.mxu0 %v3937_v22  ;;  %v3933_v6 = vld [vmem:[%s5770_s9 + $0x18] sm:$0xff] }
 0xbbc   :  { %v2277_v45 = vadd.f32 %v2276_v27, %v5398_v30  ;;  %v2287_v37 = vmul.f32 %v5398_v30, %v5398_v30 }
 0xbbd   :  { %2523 = vmatpush.bf16.msra.mxu1 %v3943_v38 }
 0xbbe   :  { %v2278_v9 = vrot.slane %v2277_v45, 4  ;;  %v2290_v19 = vadd.f32 %v2289_v29, %v2287_v37  ;;  %v3932_v29 = vld [vmem:[%s5770_s9 + $0x10] sm:$0xff]  ;;  %v3931_v37 = vld [vmem:[%s5770_s9 + $0x8] sm:$0xff] }
 0xbbf   :  { %2436 = vmatpush.bf16.msra.mxu0 %v3936_v31 }
 0xbc0   :  { %v2279_v43 = vadd.f32 %v2278_v9, %v2277_v45  ;;  %v2291_v2 = vrot.slane %v2290_v19, 4  ;;  %v3940_v45 = vld [vmem:[%s5770_s9 + $0x50] sm:$0xff]  ;;  %v3939_v9 = vld [vmem:[%s5770_s9 + $0x48] sm:$0xff] }
 0xbc1   :  { %2524 = vmatpush.bf16.msra.mxu1 %v3942_v25  ;;  %v3963_v25 = vld [vmem:[%s5761_s10 + $0x13] ss:$0 sm:$0xff] }
 0xbc2   :  { %v2280_v11 = vrot.slane %v2279_v43, 2  ;;  %v2292_v54 = vadd.f32 %v2291_v2, %v2290_v19  ;;  %v3938_v2 = vld [vmem:[%s5770_s9 + $0x40] sm:$0xff] }
 0xbc3   :  { %2437 = vmatpush.bf16.msra.mxu0 %v3935_v3 }
 0xbc4   :  { %v2281_v52 = vadd.f32 %v2280_v11, %v2279_v43  ;;  %v2293_v36 = vrot.slane %v2292_v54, 2  ;;  %v3930_v43 = vld [vmem:[%s5770_s9] sm:$0xff] }
 0xbc5   :  { %2525 = vmatpush.bf16.msra.mxu1 %v3941_v15 }
 0xbc6   :  { %v2282_v18 = vrot.slane %v2281_v52, 1  ;;  %v2294_v7 = vadd.f32 %v2293_v36, %v2292_v54 }
 0xbc7   :  { %2438 = vmatpush.bf16.msra.mxu0 %v3934_v14 }
 0xbc8   :  { %v2283_v51 = vadd.f32 %v2282_v18, %v2281_v52  ;;  %v2295_v24 = vrot.slane %v2294_v7, 1 }
 0xbc9   :  { %2526 = vmatpush.bf16.msra.mxu1 %v3940_v45 }
 0xbca   :  { %2315 = vmatmul.f32.vlgmr.msra.gmra.mxu3 %v2283_v51  ;;  %v2296_v26 = vadd.f32 %v2295_v24, %v2294_v7 }
 0xbcb   :  { %2439 = vmatpush.bf16.msra.mxu0 %v3933_v6 }
 0xbcd   :  { %2527 = vmatpush.bf16.msra.mxu1 %v3939_v9 }
 0xbcf   :  { %2440 = vmatpush.bf16.msra.mxu0 %v3932_v29 }
 0xbd1   :  { %2528 = vmatpush.bf16.msra.mxu1 %v3938_v2 }
 0xbd2   :  { %2318 = vmatmul.f32.gmra.mxu3 %v2296_v26 }
 0xbd3   :  { %2441 = vmatpush.bf16.msra.mxu0 %v3931_v37 }
 0xbd7   :  { %2442 = vmatpush.bf16.msra.mxu0 %v3930_v43 }
 0xc4d   :  { %v2316_v27 = vpop.f32.mrf.mxu3 }
 0xc4e   :  { %v2322_v19 = vmul.f32 0.001953125, %v2316_v27  ;;  %v3964_v27 = vld [vmem:[%s5761_s10 + $0x14] ss:$0 sm:$0xff] }
 0xc50   :  { %v2324_v54 = vmul.f32 %v2322_v19, %v2322_v19  ;;  %v2326_v35 = vperm.slane %v2322_v19, 0 }
 0xc52   :  { %v2327_v3 = vsub.f32 %v5385_v44, %v2326_v35  ;;  %v2328_v38 = vsub.f32 %v5383_v57, %v2326_v35  ;;  %v2329_v37 = vsub.f32 %v5387_v48, %v2326_v35  ;;  %v2330_v9 = vsub.f32 %v5398_v30, %v2326_v35 }
 0xc55   :  { %v2319_v11 = vpop.f32.mrf.mxu3 }
 0xc56   :  { %v2323_v52 = vmul.f32 0.001953125, %v2319_v11 }
 0xc58   :  { %v2325_v36 = vsub.f32 %v2323_v52, %v2324_v54 }
 0xc5a   :  { %v2331_v18 = vadd.f32 1e-05, %v2325_v36 }
 0xc5c   :  { %3978 = vrsqrt.f32 %v2331_v18  ;;  %vm2338_vm15 = vweird.f32 %v2331_v18 }
 0xc62   :  { %v3979_v51 = vpop.eup %3978 }
 0xc63   :  { %v2333_v7 = vmul.f32 %v3979_v51, %v2331_v18  ;;  %vm2339_vm10 = vweird.f32 %v3979_v51 }
 0xc64   :  { %vm2340_vm6 = vmor %vm2338_vm15, %vm2339_vm10 }
 0xc65   :  { %v2334_v24 = vmul.f32 %v3979_v51, %v2333_v7  ;;  %vm6039_vm10 = vmmov %vm6038_vm2 }
 0xc67   :  { %v2335_v26 = vmul.f32 0.5, %v2334_v24 }
 0xc69   :  { %v2336_v22 = vsub.f32 1.5, %v2335_v26 }
 0xc6b   :  { %v2337_v31 = vmul.f32 %v3979_v51, %v2336_v22 }
 0xc6d   :  { %v2341_v59 = vsel %vm2340_vm6, %v3979_v51, %v2337_v31 }
 0xc6e   :  { %v2342_v14 = vperm.slane %v2341_v59, 0 }
 0xc70   :  { %v2343_v6 = vmul.f32 %v2342_v14, %v2327_v3  ;;  %v2344_v15 = vmul.f32 %v2342_v14, %v2328_v38  ;;  %v2345_v57 = vmul.f32 %v2342_v14, %v2329_v37  ;;  %v2346_v43 = vmul.f32 %v2342_v14, %v2330_v9  ;;  %v6036_v9 = vld [vmem:[#allocation16_spill] sm:$0xff] }
 0xc71   :  { %vm2556_vm0 = vcmp.eq.s32.totalorder %v6036_v9, %v5215_v33  ;;  %vm2542_vm12 = vcmp.eq.s32.totalorder %v6036_v9, %v5212_v32 }
 0xc72   :  { %v2348_v29 = vmul.f32 %v3963_v25, %v2343_v6  ;;  %v2349_v45 = vmul.f32 %v3963_v25, %v2344_v15  ;;  %v2350_v18 = vmul.f32 %v3963_v25, %v2345_v57  ;;  %v2351_v51 = vmul.f32 %v3963_v25, %v2346_v43  ;;  %v6040_v43 = vld [vmem:[#allocation11_spill] sm:$0xff] }
 0xc73   :  { %vm2558_vm15 = vcmp.eq.s32.totalorder %v6040_v43, %v5215_v33 }
 0xc74   :  { %v2353_v44 = vadd.f32 %v3964_v27, %v2348_v29  ;;  %v2354_v19 = vadd.f32 %v3964_v27, %v2349_v45  ;;  %v2355_v7 = vadd.f32 %v3964_v27, %v2350_v18  ;;  %v2356_v24 = vadd.f32 %v3964_v27, %v2351_v51 }
 0xc76   :  { %vm2357_vm14 = vcmp.ge.f32.partialorder %v2353_v44, 0.0  ;;  %vm2358_vm13 = vcmp.ge.f32.partialorder %v2354_v19, 0.0  ;;  %v2361_v2 = vmul.f32 0.2, %v2353_v44  ;;  %v2362_v11 = vmul.f32 0.2, %v2354_v19 }
 0xc77   :  { %v2363_v48 = vmul.f32 0.2, %v2355_v7  ;;  %v2364_v26 = vmul.f32 0.2, %v2356_v24  ;;  %vm2359_vm5 = vcmp.ge.f32.partialorder %v2355_v7, 0.0  ;;  %vm2360_vm3 = vcmp.ge.f32.partialorder %v2356_v24, 0.0 }
 0xc78   :  { %v2365_v54 = vsel %vm2357_vm14, %v2353_v44, %v2361_v2  ;;  %v2366_v52 = vsel %vm2358_vm13, %v2354_v19, %v2362_v11  ;;  %v6037_v44 = vld [vmem:[#allocation14_spill] sm:$0xff]  ;;  %v6041_v2 = vld [vmem:[#allocation9_spill] sm:$0xff]  ;;  %vm2544_vm14 = vcmp.eq.s32.totalorder %v6040_v43, %v5212_v32  ;;  %v3806_v11 = vsel %vm2558_vm15, 1.0, %v5965_v20 }
 0xc79   :  { %v2369_v36 = vpack.c.bf16 %v2366_v52, %v2365_v54  ;;  %v2367_v30 = vsel %vm2359_vm5, %v2355_v7, %v2363_v48  ;;  %v2368_v22 = vsel %vm2360_vm3, %v2356_v24, %v2364_v26  ;;  %vm2557_vm11 = vcmp.eq.s32.totalorder %v6037_v44, %v5215_v33  ;;  %vm6042_vm5 = vmmov %vm6038_vm2 }
 0xc7a   :  { %v2370_v35 = vpack.c.bf16 %v2368_v22, %v2367_v30  ;;  %vm2543_vm1 = vcmp.eq.s32.totalorder %v6037_v44, %v5212_v32  ;;  %vm2559_vm6 = vcmp.eq.s32.totalorder %v6041_v2, %v5215_v33  ;;  %vm2545_vm13 = vcmp.eq.s32.totalorder %v6041_v2, %v5212_v32  ;;  %vm6043_vm3 = vmmov %vm6038_vm2 }
 0xc7b   :  { %2443 = vmatmul.bf16.vlgmr.msra.gmra.mxu0 %v2369_v36  ;;  %2529 = vmatmul.bf16.vlgmr.msra.gmra.mxu1 %v2369_v36  ;;  %v3807_v54 = vsel %vm2559_vm6, 1.0, %v5965_v20  ;;  %v3802_v52 = vsel %vm2544_vm14, 1.0, %v5965_v20  ;;  %v3803_v36 = vsel %vm2545_vm13, 1.0, %v5965_v20  ;;  %v2671_v48 = vmul.f32 0.33333334, %v4238_v40 }
 0xc7c   :  { %v2569_v18 = vpack.c.bf16 %v3807_v54, %v3806_v11  ;;  %v2555_v51 = vpack.c.bf16 %v3803_v36, %v3802_v52  ;;  %v2708_v26 = vmul.f32 0.33333334, %v4205_v4  ;;  %v2670_v22 = vmul.f32 0.33333334, %v4254_v49 }
 0xc7d   :  { %v2683_v30 = vfloor.f32 %v2671_v48  ;;  %v2661_v54 = vmul.f32 0.33333334, %v4403_v13  ;;  %v6044_v48 = vld [vmem:[#allocation18_spill] sm:$0xff]  ;;  %vm6045_vm14 = vcmask 785408  }
 0xc7e   :  { %vm6046_vm13 = vmmov %vm6045_vm14 }
 0xc8b   :  { %2448 = vmatmul.bf16.gmra.mxu0 %v2370_v35  ;;  %2534 = vmatmul.bf16.gmra.mxu1 %v2370_v35 }
 0xcf8   :  { %v2444_v31 = vpop.f32.mrf.mxu0  ;;  %v2530_v59 = vpop.f32.mrf.mxu1 }
 0xd00   :  { %v2446_v3 = vpop.f32.mrf.mxu0  ;;  %v2532_v38 = vpop.f32.mrf.mxu1 }
 0xd01   :  { %v2454_v27 = vpack.c.bf16 %v2446_v3, %v2444_v31  ;;  %v2540_v37 = vpack.c.bf16 %v2532_v38, %v2530_v59  ;;  %v2695_v59 = vmul.f32 3.0, %v2683_v30  ;;  %v2682_v38 = vfloor.f32 %v2670_v22  ;;  %v3965_v30 = vld [vmem:[%s5761_s10 + $0x15] ss:$0 sm:$0xff] }
 0xd03   :  { %v2694_v40 = vmul.f32 3.0, %v2682_v38 }
 0xd05   :  { %v2706_v49 = vsub.f32 %v4240_v41, %v2694_v40  ;;  %v2665_v41 = vmul.f32 0.33333334, %v4353_v62 }
 0xd08   :  { %v2449_v14 = vpop.f32.mrf.mxu0  ;;  %v2535_v6 = vpop.f32.mrf.mxu1 }
 0xd10   :  { %v2451_v25 = vpop.f32.mrf.mxu0  ;;  %v2537_v15 = vpop.f32.mrf.mxu1 }
 0xd11   :  { %v2455_v29 = vpack.c.bf16 %v2451_v25, %v2449_v14  ;;  %v2541_v45 = vpack.c.bf16 %v2537_v15, %v2535_v6  ;;  %v2669_v14 = vmul.f32 0.33333334, %v4273_v58  ;;  %v2707_v6 = vsub.f32 %v4229_v28, %v2695_v59 }
 0xd12   :  { %v2668_v15 = vmul.f32 0.33333334, %v4291_v8  ;;  %v2666_v28 = vmul.f32 0.33333334, %v4326_v42  ;;  %v2677_v42 = vfloor.f32 %v2665_v41 }
 0xd13   :  { %2586 = vmatpush.bf16.msrb.mxu2 %v2541_v45  ;;  %2625 = vmatpush.bf16.msrb.mxu3 %v2455_v29  ;;  %v2681_v4 = vfloor.f32 %v2669_v14 }
 0xd14   :  { %v2680_v45 = vfloor.f32 %v2668_v15  ;;  %v2678_v44 = vfloor.f32 %v2666_v28  ;;  %v2689_v62 = vmul.f32 3.0, %v2677_v42 }
 0xd15   :  { %v2693_v29 = vmul.f32 3.0, %v2681_v4 }
 0xd17   :  { %2587 = vmatpush.bf16.msrb.mxu2 %v2540_v37  ;;  %2626 = vmatpush.bf16.msrb.mxu3 %v2454_v27  ;;  %v2667_v27 = vmul.f32 0.33333334, %v4294_v10  ;;  %v2705_v8 = vsub.f32 %v4256_v50, %v2693_v29  ;;  %v2692_v37 = vmul.f32 3.0, %v2680_v45 }
 0xd19   :  { %v2679_v9 = vfloor.f32 %v2667_v27 }
 0xd1a   :  { %3808 = vmatmul.msk.bf16.vlgmr.msrb.gmra.mxu2 %vm6032_vm7, %v5225_v12  ;;  %3812 = vmatmul.msk.bf16.vlgmr.msrb.gmra.mxu3 %vm6033_vm4, %v5235_v5  ;;  %v3804_v12 = vsel %vm2556_vm0, 1.0, %v5965_v20  ;;  %v3805_v5 = vsel %vm2557_vm11, 1.0, %v5965_v20 }
 0xd1b   :  { %v2568_v19 = vpack.c.bf16 %v3805_v5, %v3804_v12  ;;  %v2704_v12 = vsub.f32 %v4280_v60, %v2692_v37  ;;  %v2691_v10 = vmul.f32 3.0, %v2679_v9  ;;  %v2690_v5 = vmul.f32 3.0, %v2678_v44 }
 0xd1c   :  { %v2663_v60 = vmul.f32 0.33333334, %v4364_v17 }
 0xd1d   :  { %v2703_v50 = vsub.f32 %v4283_v61, %v2691_v10 }
 0xd1e   :  { %v2675_v11 = vfloor.f32 %v2663_v60 }
 0xd20   :  { %v2687_v52 = vmul.f32 3.0, %v2675_v11 }
 0xd2a   :  { %3809 = vmatmul.msk.bf16.gmra.mxu2 %vm6034_vm9, %v5349_v1  ;;  %3813 = vmatmul.msk.bf16.gmra.mxu3 %vm6035_vm8, %v5334_v46  ;;  %v3800_v1 = vsel %vm2542_vm12, 1.0, %v5965_v20  ;;  %v3801_v46 = vsel %vm2543_vm1, 1.0, %v5965_v20  ;;  %v2709_v20 = vfloor.f32 %v2708_v26 }
 0xd2b   :  { %v2554_v57 = vpack.c.bf16 %v3801_v46, %v3800_v1  ;;  %v2664_v1 = vmul.f32 0.33333334, %v4368_v21  ;;  %v2702_v46 = vsub.f32 %v4311_v23, %v2690_v5  ;;  %v2701_v21 = vsub.f32 %v4335_v47, %v2689_v62 }
 0xd2c   :  { %v2710_v3 = vmul.f32 3.0, %v2709_v20  ;;  %v2673_v47 = vfloor.f32 %v2661_v54 }
 0xd2e   :  { %v5515_v25 = vsub.f32 %v4195_v63, %v2710_v3  ;;  %v2685_v26 = vmul.f32 3.0, %v2673_v47 }
 0xd30   :  { %vm2723_vm7 = vcmp.eq.f32.partialorder %v2707_v6, %v5515_v25  ;;  %vm2722_vm4 = vcmp.eq.f32.partialorder %v2706_v49, %v5515_v25  ;;  %vm2721_vm9 = vcmp.eq.f32.partialorder %v2705_v8, %v5515_v25  ;;  %vm2720_vm8 = vcmp.eq.f32.partialorder %v2704_v12, %v5515_v25 }
 0xd31   :  { %3828 = vmatpush.msk.msrb.mxu0 %vm2723_vm7, %v5918_v34  ;;  %vm2719_vm0 = vcmp.eq.f32.partialorder %v2703_v50, %v5515_v25  ;;  %vm2718_vm11 = vcmp.eq.f32.partialorder %v2702_v46, %v5515_v25  ;;  %vm2717_vm12 = vcmp.eq.f32.partialorder %v2701_v21, %v5515_v25 }
 0xd33   :  { %3829 = vmatpush.msk.msrb.mxu0 %vm2722_vm4, %v5918_v34 }
 0xd35   :  { %3830 = vmatpush.msk.msrb.mxu0 %vm2721_vm9, %v5918_v34 }
 0xd37   :  { %3831 = vmatpush.msk.msrb.mxu0 %vm2720_vm8, %v5918_v34 }
 0xd39   :  { %3832 = vmatpush.msk.msrb.mxu0 %vm2719_vm0, %v5918_v34 }
 0xd3a   :  { %3810 = vmatmul.msk.bf16.gmra.mxu2 %vm6038_vm2, %v2568_v19  ;;  %3814 = vmatmul.msk.bf16.gmra.mxu3 %vm6039_vm10, %v2554_v57  ;;  %v2676_v19 = vfloor.f32 %v2664_v1  ;;  %v2662_v57 = vmul.f32 0.33333334, %v4389_v53  ;;  %v2660_v53 = vmul.f32 0.33333334, %v4411_v39 }
 0xd3b   :  { %3833 = vmatpush.msk.msrb.mxu0 %vm2718_vm11, %v5918_v34 }
 0xd3c   :  { %v2688_v2 = vmul.f32 3.0, %v2676_v19  ;;  %v2674_v23 = vfloor.f32 %v2662_v57  ;;  %v2672_v39 = vfloor.f32 %v2660_v53 }
 0xd3d   :  { %3834 = vmatpush.msk.msrb.mxu0 %vm2717_vm12, %v5918_v34 }
 0xd3e   :  { %v2700_v17 = vsub.f32 %v4356_v0, %v2688_v2  ;;  %v2686_v36 = vmul.f32 3.0, %v2674_v23 }
 0xd40   :  { %vm2716_vm1 = vcmp.eq.f32.partialorder %v2700_v17, %v5515_v25  ;;  %v2698_v13 = vsub.f32 %v6044_v48, %v2686_v36 }
 0xd41   :  { %3835 = vmatpush.msk.msrb.mxu0 %vm2716_vm1, %v5918_v34 }
 0xd42   :  { %vm2714_vm10 = vcmp.eq.f32.partialorder %v2698_v13, %v5515_v25 }
 0xd4a   :  { %3811 = vmatmul.msk.bf16.gmra.mxu2 %vm6042_vm5, %v2569_v18  ;;  %3815 = vmatmul.msk.bf16.gmra.mxu3 %vm6043_vm3, %v2555_v51  ;;  %v2699_v51 = vsub.f32 %v4345_v56, %v2687_v52  ;;  %v2697_v56 = vsub.f32 %v4392_v55, %v2685_v26  ;;  %vm6047_vm5 = vmmov %vm6046_vm13 }
 0xd4b   :  { %vm6048_vm3 = vmmov %vm6047_vm5 }
 0xd4c   :  { %vm2715_vm2 = vcmp.eq.f32.partialorder %v2699_v51, %v5515_v25  ;;  %vm2713_vm15 = vcmp.eq.f32.partialorder %v2697_v56, %v5515_v25  ;;  %vm6049_vm7 = vmmov %vm6048_vm3 }
 0xd4d   :  { %3836 = vmatpush.msk.msrb.mxu0 %vm2715_vm2, %v5918_v34  ;;  %vm6050_vm4 = vmmov %vm6048_vm3 }
 0xd4e   :  { %vm6051_vm9 = vmmov %vm6048_vm3 }
 0xd4f   :  { %3837 = vmatpush.msk.msrb.mxu0 %vm2714_vm10, %v5918_v34  ;;  %vm6052_vm8 = vmmov %vm6048_vm3 }
 0xd50   :  { %vm6053_vm0 = vmmov %vm6048_vm3 }
 0xd51   :  { %3838 = vmatpush.msk.msrb.mxu0 %vm2713_vm15, %v5918_v34  ;;  %vm6054_vm11 = vmmov %vm6053_vm0 }
 0xd52   :  { %vm6055_vm12 = vmmov %vm6053_vm0 }
 0xd53   :  { %vm6056_vm1 = vmmov %vm6053_vm0 }
 0xd54   :  { %vm6057_vm2 = vmmov %vm6053_vm0 }
 0xd55   :  { %vm6058_vm10 = vmmov %vm6053_vm0 }
 0xd56   :  { %vm6059_vm15 = vmmov %vm6053_vm0 }
 0xd9d   :  { %v5497_v33 = vpop.f32.mrf.mxu2  ;;  %v5499_v7 = vpop.f32.mrf.mxu3 }
 0xd9e   :  { %v2629_v0 = vadd.f32 %v5499_v7, %v5497_v33  ;;  %v2684_v7 = vmul.f32 3.0, %v2672_v39 }
 0xda0   :  { %v5568_v59 = vadd.f32 %v3965_v30, %v2629_v0 }
 0xda2   :  { %v2769_v6 = vmul.f32 %v5568_v59, %v5568_v59  ;;  %v2748_v15 = vsel %vm6046_vm13, %v5568_v59, 0.0  ;;  %vm6062_vm13 = vmmov %vm6053_vm0 }
 0xda5   :  { %v5501_v24 = vpop.f32.mrf.mxu2  ;;  %v5503_v32 = vpop.f32.mrf.mxu3 }
 0xda6   :  { %v2631_v18 = vadd.f32 %v5503_v32, %v5501_v24 }
 0xda8   :  { %v5564_v32 = vadd.f32 %v3965_v30, %v2631_v18 }
 0xdaa   :  { %v2770_v55 = vmul.f32 %v5564_v32, %v5564_v32 }
 0xdad   :  { %v5508_v35 = vpop.f32.mrf.mxu2  ;;  %v5510_v31 = vpop.f32.mrf.mxu3 }
 0xdae   :  { %v2634_v24 = vadd.f32 %v5510_v31, %v5508_v35  ;;  %v2696_v35 = vsub.f32 %v4396_v16, %v2684_v7  ;;  %v2749_v16 = vsel %vm6045_vm14, %v5564_v32, 0.0  ;;  %vm6061_vm14 = vmmov %vm6053_vm0 }
 0xdb0   :  { %v5571_v31 = vadd.f32 %v3965_v30, %v2634_v24  ;;  %vm2712_vm6 = vcmp.eq.f32.partialorder %v2696_v35, %v5515_v25  ;;  %v2778_v25 = vsel %vm6047_vm5, %v2770_v55, 0.0 }
 0xdb1   :  { %3839 = vmatpush.msk.msrb.mxu0 %vm2712_vm6, %v5918_v34  ;;  %vm6060_vm6 = vmmov %vm6053_vm0 }
 0xdb2   :  { %v2771_v40 = vmul.f32 %v5571_v31, %v5571_v31  ;;  %v2751_v34 = vsel %vm6048_vm3, %v5571_v31, 0.0 }
 0xdb4   :  { %v2780_v8 = vsel %vm6050_vm4, %v2771_v40, 0.0 }
 0xdb5   :  { %v2596_v63 = vpop.f32.mrf.mxu2  ;;  %v2635_v58 = vpop.f32.mrf.mxu3 }
 0xdb6   :  { %v2636_v22 = vadd.f32 %v2635_v58, %v2596_v63  ;;  %v2777_v63 = vsel %vm6049_vm7, %v2769_v6, 0.0  ;;  %v2750_v58 = vadd.f32 %v2749_v16, %v2748_v15 }
 0xdb7   :  { %v2779_v41 = vadd.f32 %v2778_v25, %v2777_v63 }
 0xdb8   :  { %v5577_v38 = vadd.f32 %v3965_v30, %v2636_v22  ;;  %v2752_v12 = vadd.f32 %v2751_v34, %v2750_v58 }
 0xdb9   :  { %v2781_v1 = vadd.f32 %v2780_v8, %v2779_v41 }
 0xdba   :  { %v2772_v45 = vmul.f32 %v5577_v38, %v5577_v38  ;;  %v2753_v37 = vsel %vm6051_vm9, %v5577_v38, 0.0 }
 0xdbb   :  { %v2754_v50 = vadd.f32 %v2753_v37, %v2752_v12 }
 0xdbc   :  { %v2782_v10 = vsel %vm6052_vm8, %v2772_v45, 0.0 }
 0xdbd   :  { %v2599_v43 = vpop.f32.mrf.mxu2  ;;  %v2638_v61 = vpop.f32.mrf.mxu3  ;;  %v2783_v60 = vadd.f32 %v2782_v10, %v2781_v1 }
 0xdbe   :  { %v2639_v3 = vadd.f32 %v2638_v61, %v2599_v43 }
 0xdc0   :  { %v5586_v4 = vadd.f32 %v3965_v30, %v2639_v3 }
 0xdc2   :  { %v2773_v9 = vmul.f32 %v5586_v4, %v5586_v4  ;;  %v2755_v5 = vsel %vm6053_vm0, %v5586_v4, 0.0 }
 0xdc3   :  { %v2756_v21 = vadd.f32 %v2755_v5, %v2754_v50 }
 0xdc4   :  { %v2784_v46 = vsel %vm6054_vm11, %v2773_v9, 0.0 }
 0xdc5   :  { %v2601_v20 = vpop.f32.mrf.mxu2  ;;  %v2640_v33 = vpop.f32.mrf.mxu3  ;;  %v2785_v23 = vadd.f32 %v2784_v46, %v2783_v60 }
 0xdc6   :  { %v2641_v14 = vadd.f32 %v2640_v33, %v2601_v20 }
 0xdc8   :  { %v5595_v27 = vadd.f32 %v3965_v30, %v2641_v14 }
 0xdca   :  { %v2774_v42 = vmul.f32 %v5595_v27, %v5595_v27  ;;  %v2757_v62 = vsel %vm6055_vm12, %v5595_v27, 0.0 }
 0xdcb   :  { %v2758_v54 = vadd.f32 %v2757_v62, %v2756_v21 }
 0xdcc   :  { %v2786_v61 = vsel %vm6056_vm1, %v2774_v42, 0.0  ;;  %v3966_v42 = vld [vmem:[%s5761_s10 + $0x16] ss:$0 sm:$0xff] }
 0xdcd   :  { %v2604_v49 = vpop.f32.mrf.mxu2  ;;  %v2643_v29 = vpop.f32.mrf.mxu3  ;;  %v2787_v36 = vadd.f32 %v2786_v61, %v2785_v23 }
 0xdce   :  { %v2644_v28 = vadd.f32 %v2643_v29, %v2604_v49 }
 0xdd0   :  { %v5603_v44 = vadd.f32 %v3965_v30, %v2644_v28 }
 0xdd2   :  { %v2775_v19 = vmul.f32 %v5603_v44, %v5603_v44  ;;  %v2759_v2 = vsel %vm6057_vm2, %v5603_v44, 0.0 }
 0xdd3   :  { %v2760_v47 = vadd.f32 %v2759_v2, %v2758_v54 }
 0xdd4   :  { %v2788_v17 = vsel %vm6058_vm10, %v2775_v19, 0.0 }
 0xdd5   :  { %v2606_v57 = vpop.f32.mrf.mxu2  ;;  %v2645_v43 = vpop.f32.mrf.mxu3  ;;  %v2789_v51 = vadd.f32 %v2788_v17, %v2787_v36 }
 0xdd6   :  { %v2646_v11 = vadd.f32 %v2645_v43, %v2606_v57 }
 0xdd8   :  { %v2657_v52 = vadd.f32 %v3965_v30, %v2646_v11 }
 0xdda   :  { %v2761_v53 = vsel %vm6059_vm15, %v2657_v52, 0.0  ;;  %v2776_v18 = vmul.f32 %v2657_v52, %v2657_v52 }
 0xddb   :  { %v2762_v48 = vadd.f32 %v2761_v53, %v2760_v47 }
 0xddc   :  { %v2790_v13 = vsel %vm6060_vm6, %v2776_v18, 0.0 }
 0xddd   :  { %v2763_v26 = vrot.slane %v2762_v48, 4  ;;  %v2791_v0 = vadd.f32 %v2790_v13, %v2789_v51 }
 0xddf   :  { %v2764_v39 = vadd.f32 %v2763_v26, %v2762_v48  ;;  %v2792_v24 = vrot.slane %v2791_v0, 4 }
 0xde1   :  { %v2765_v56 = vrot.slane %v2764_v39, 2  ;;  %v2793_v20 = vadd.f32 %v2792_v24, %v2791_v0 }
 0xde3   :  { %v2766_v33 = vadd.f32 %v2765_v56, %v2764_v39  ;;  %v2794_v7 = vrot.slane %v2793_v20, 2 }
 0xde5   :  { %v2767_v22 = vrot.slane %v2766_v33, 1  ;;  %v2795_v30 = vadd.f32 %v2794_v7, %v2793_v20 }
 0xde7   :  { %v2768_v35 = vadd.f32 %v2767_v22, %v2766_v33  ;;  %v2796_v3 = vrot.slane %v2795_v30, 1 }
 0xde9   :  { %3840 = vmatmul.msk.f32.vlgmr.msrb.gmra.mxu0 %vm6061_vm14, %v2768_v35  ;;  %v2797_v55 = vadd.f32 %v2796_v3, %v2795_v30 }
 0xdf1   :  { %3841 = vmatmul.msk.f32.gmra.mxu0 %vm6062_vm13, %v2797_v55 }
 0xe66   :  { %v2823_v14 = vpop.f32.mrf.mxu0 }
 0xe67   :  { %v2829_v6 = vmul.f32 0.00048828125, %v2823_v14 }
 0xe69   :  { %v2831_v40 = vmul.f32 %v2829_v6, %v2829_v6  ;;  %v2833_v63 = vperm.slane %v2829_v6, 0 }
 0xe6b   :  { %v2834_v37 = vsub.f32 %v5568_v59, %v2833_v63  ;;  %v2835_v41 = vsub.f32 %v5564_v32, %v2833_v63  ;;  %v2836_v12 = vsub.f32 %v5571_v31, %v2833_v63  ;;  %v2837_v10 = vsub.f32 %v5577_v38, %v2833_v63  ;;  %v3967_v31 = vld [vmem:[%s5761_s10 + $0x17] ss:$0 sm:$0xff] }
 0xe6c   :  { %v2838_v1 = vsub.f32 %v5586_v4, %v2833_v63  ;;  %v2839_v50 = vsub.f32 %v5595_v27, %v2833_v63  ;;  %v2840_v46 = vsub.f32 %v5603_v44, %v2833_v63  ;;  %v2841_v62 = vsub.f32 %v2657_v52, %v2833_v63 }
 0xe6e   :  { %v2826_v16 = vpop.f32.mrf.mxu0 }
 0xe6f   :  { %v2830_v15 = vmul.f32 0.00048828125, %v2826_v16 }
 0xe71   :  { %v2832_v25 = vsub.f32 %v2830_v15, %v2831_v40 }
 0xe73   :  { %v2842_v49 = vadd.f32 1e-05, %v2832_v25 }
 0xe75   :  { %3980 = vrsqrt.f32 %v2842_v49  ;;  %vm2849_vm3 = vweird.f32 %v2842_v49 }
 0xe7b   :  { %v3981_v29 = vpop.eup %3980 }
 0xe7c   :  { %v2844_v34 = vmul.f32 %v3981_v29, %v2842_v49  ;;  %vm2850_vm5 = vweird.f32 %v3981_v29 }
 0xe7d   :  { %vm2851_vm7 = vmor %vm2849_vm3, %vm2850_vm5 }
 0xe7e   :  { %v2845_v45 = vmul.f32 %v3981_v29, %v2844_v34 }
 0xe80   :  { %v2846_v28 = vmul.f32 0.5, %v2845_v45 }
 0xe82   :  { %v2847_v58 = vsub.f32 1.5, %v2846_v28 }
 0xe84   :  { %v2848_v8 = vmul.f32 %v3981_v29, %v2847_v58 }
 0xe86   :  { %v2852_v9 = vsel %vm2851_vm7, %v3981_v29, %v2848_v8 }
 0xe87   :  { %v2853_v5 = vperm.slane %v2852_v9, 0 }
 0xe89   :  { %v2854_v59 = vmul.f32 %v2853_v5, %v2834_v37  ;;  %v2855_v19 = vmul.f32 %v2853_v5, %v2835_v41  ;;  %v2856_v60 = vmul.f32 %v2853_v5, %v2836_v12  ;;  %v2857_v32 = vmul.f32 %v2853_v5, %v2837_v10 }
 0xe8a   :  { %v2858_v38 = vmul.f32 %v2853_v5, %v2838_v1  ;;  %v2859_v21 = vmul.f32 %v2853_v5, %v2839_v50  ;;  %v2860_v57 = vmul.f32 %v2853_v5, %v2840_v46  ;;  %v2861_v43 = vmul.f32 %v2853_v5, %v2841_v62 }
 0xe8b   :  { %v2863_v61 = vmul.f32 %v3966_v42, %v2854_v59  ;;  %v2864_v2 = vmul.f32 %v3966_v42, %v2855_v19  ;;  %v2865_v4 = vmul.f32 %v3966_v42, %v2856_v60  ;;  %v2866_v11 = vmul.f32 %v3966_v42, %v2857_v32 }
 0xe8c   :  { %v2867_v27 = vmul.f32 %v3966_v42, %v2858_v38  ;;  %v2868_v23 = vmul.f32 %v3966_v42, %v2859_v21  ;;  %v2869_v44 = vmul.f32 %v3966_v42, %v2860_v57  ;;  %v2870_v54 = vmul.f32 %v3966_v42, %v2861_v43 }
 0xe8d   :  { %v2872_v17 = vadd.f32 %v3967_v31, %v2863_v61  ;;  %v2873_v52 = vadd.f32 %v3967_v31, %v2864_v2  ;;  %v2874_v36 = vadd.f32 %v3967_v31, %v2865_v4  ;;  %v2875_v47 = vadd.f32 %v3967_v31, %v2866_v11 }
 0xe8e   :  { %v2876_v53 = vadd.f32 %v3967_v31, %v2867_v27  ;;  %v2877_v18 = vadd.f32 %v3967_v31, %v2868_v23  ;;  %v2878_v51 = vadd.f32 %v3967_v31, %v2869_v44  ;;  %v2879_v48 = vadd.f32 %v3967_v31, %v2870_v54 }
 0xe8f   :  { %v2880_v13 = vsub.f32 0.0, %v2872_v17  ;;  %v2881_v26 = vsub.f32 0.0, %v2873_v52  ;;  %v2882_v0 = vsub.f32 0.0, %v2874_v36  ;;  %v2883_v39 = vsub.f32 0.0, %v2875_v47 }
 0xe90   :  { %v2884_v24 = vsub.f32 0.0, %v2876_v53  ;;  %v2885_v56 = vsub.f32 0.0, %v2877_v18  ;;  %v2886_v22 = vsub.f32 0.0, %v2878_v51  ;;  %v2887_v30 = vsub.f32 0.0, %v2879_v48 }
 0xe91   :  { %v2888_v20 = vmul.f32 1.442695, %v2880_v13  ;;  %v2890_v33 = vmul.f32 1.442695, %v2881_v26  ;;  %v2892_v7 = vmul.f32 1.442695, %v2882_v0 }
 0xe92   :  { %v2894_v35 = vmul.f32 1.442695, %v2883_v39  ;;  %v2896_v3 = vmul.f32 1.442695, %v2884_v24  ;;  %v2898_v55 = vmul.f32 1.442695, %v2885_v56 }
 0xe93   :  { %3982 = vpow2.f32 %v2888_v20  ;;  %v2900_v14 = vmul.f32 1.442695, %v2886_v22  ;;  %v2902_v6 = vmul.f32 1.442695, %v2887_v30 }
 0xe94   :  { %3984 = vpow2.f32 %v2890_v33 }
 0xe95   :  { %3986 = vpow2.f32 %v2892_v7 }
 0xe96   :  { %3988 = vpow2.f32 %v2894_v35 }
 0xe97   :  { %3990 = vpow2.f32 %v2896_v3 }
 0xe98   :  { %3992 = vpow2.f32 %v2898_v55 }
 0xe99   :  { %v3983_v16 = vpop.eup %3982  ;;  %3994 = vpow2.f32 %v2900_v14 }
 0xe9a   :  { %v3985_v40 = vpop.eup %3984  ;;  %v2904_v15 = vadd.f32 1.0, %v3983_v16  ;;  %3996 = vpow2.f32 %v2902_v6 }
 0xe9b   :  { %v3987_v25 = vpop.eup %3986  ;;  %v5636_v49 = vadd.f32 1.0, %v3985_v40 }
 0xe9c   :  { %v3989_v29 = vpop.eup %3988  ;;  %v5638_v34 = vadd.f32 1.0, %v3987_v25  ;;  %3998 = vrcp.f32 %v2904_v15  ;;  %v2921_v8 = vand.u32 2147483647, %v2904_v15  ;;  %v2923_v37 = vand.u32 2147483648, %v2904_v15 }
 0xe9d   :  { %v3991_v45 = vpop.eup %3990  ;;  %v5640_v28 = vadd.f32 1.0, %v3989_v29  ;;  %4000 = vrcp.f32 %v5636_v49  ;;  %v2936_v41 = vand.u32 2147483647, %v5636_v49  ;;  %v2938_v5 = vand.u32 2147483648, %v5636_v49 }
 0xe9e   :  { %v3993_v63 = vpop.eup %3992  ;;  %v5643_v58 = vadd.f32 1.0, %v3991_v45  ;;  %4002 = vrcp.f32 %v5638_v34  ;;  %vm2917_vm4 = vweird.f32 %v2904_v15  ;;  %vm2932_vm9 = vweird.f32 %v5636_v49 }
 0xe9f   :  { %v3995_v9 = vpop.eup %3994  ;;  %v5647_v10 = vadd.f32 1.0, %v3993_v63  ;;  %4004 = vrcp.f32 %v5640_v28  ;;  %v2951_v1 = vand.u32 2147483647, %v5638_v34  ;;  %vm5654_vm8 = vcmp.eq.f32.partialorder %v2921_v8, 8.507059e+37 }
 0xea0   :  { %v3997_v12 = vpop.eup %3996  ;;  %4006 = vrcp.f32 %v5643_v58  ;;  %v2924_v59 = vor.u32 1.1754944e-38, %v2923_v37  ;;  %v2953_v19 = vand.u32 2147483648, %v5638_v34  ;;  %v5659_v60 = vadd.f32 1.0, %v3995_v9 }
 0xea1   :  { %vm5662_vm0 = vcmp.eq.f32.partialorder %v2936_v41, 8.507059e+37  ;;  %vm2947_vm11 = vweird.f32 %v5638_v34  ;;  %v2966_v38 = vand.u32 2147483647, %v5640_v28  ;;  %v5668_v57 = vadd.f32 1.0, %v3997_v12 }
 0xea2   :  { %v3999_v42 = vpop.eup %3998  ;;  %v2939_v61 = vor.u32 1.1754944e-38, %v2938_v5  ;;  %4008 = vrcp.f32 %v5647_v10  ;;  %vm5672_vm1 = vcmp.eq.f32.partialorder %v2951_v1, 8.507059e+37  ;;  %vm2962_vm2 = vweird.f32 %v5640_v28 }
 0xea3   :  { %v4001_v50 = vpop.eup %4000  ;;  %v2913_v46 = vmul.f32 %v3999_v42, %v2904_v15  ;;  %vm2918_vm12 = vweird.f32 %v3999_v42  ;;  %v2968_v27 = vand.u32 2147483648, %v5640_v28  ;;  %v2954_v54 = vor.u32 1.1754944e-38, %v2953_v19 }
 0xea4   :  { %v2928_v32 = vmul.f32 %v4001_v50, %v5636_v49  ;;  %v4003_v21 = vpop.eup %4002  ;;  %vm2933_vm10 = vweird.f32 %v4001_v50  ;;  %vm2977_vm15 = vweird.f32 %v5643_v58  ;;  %vm5680_vm6 = vcmp.eq.f32.partialorder %v2966_v38, 8.507059e+37  ;;  %vm2919_vm14 = vmor %vm2917_vm4, %vm2918_vm12 }
 0xea5   :  { %v2914_v43 = vsub.f32 1.0, %v2913_v46  ;;  %v2943_v4 = vmul.f32 %v4003_v21, %v5638_v34  ;;  %v4005_v23 = vpop.eup %4004  ;;  %v2981_v48 = vand.u32 2147483647, %v5643_v58  ;;  %v2983_v13 = vand.u32 2147483648, %v5643_v58  ;;  %vm2934_vm5 = vmor %vm2932_vm9, %vm2933_vm10 }
 0xea6   :  { %v2929_v2 = vsub.f32 1.0, %v2928_v32  ;;  %v4007_v17 = vpop.eup %4006  ;;  %v2958_v47 = vmul.f32 %v4005_v23, %v5640_v28  ;;  %vm2948_vm13 = vweird.f32 %v4003_v21  ;;  %vm2963_vm3 = vweird.f32 %v4005_v23 }
 0xea7   :  { %v2915_v44 = vmul.f32 %v3999_v42, %v2914_v43  ;;  %v2944_v36 = vsub.f32 1.0, %v2943_v4  ;;  %v2973_v51 = vmul.f32 %v4007_v17, %v5643_v58  ;;  %4010 = vrcp.f32 %v5659_v60  ;;  %vm2949_vm7 = vmor %vm2947_vm11, %vm2948_vm13 }
 0xea8   :  { %v2930_v52 = vmul.f32 %v4001_v50, %v2929_v2  ;;  %v2959_v39 = vsub.f32 1.0, %v2958_v47  ;;  %v4009_v24 = vpop.eup %4008  ;;  %vm2978_vm4 = vweird.f32 %v4007_v17  ;;  %vm6071_vm9 = vcmask 785408   ;;  %vm2964_vm11 = vmor %vm2962_vm2, %vm2963_vm3 }
 0xea9   :  { %v2916_v18 = vadd.f32 %v3999_v42, %v2915_v44  ;;  %v2945_v0 = vmul.f32 %v4003_v21, %v2944_v36  ;;  %v2974_v20 = vsub.f32 1.0, %v2973_v51  ;;  %v2988_v55 = vmul.f32 %v4009_v24, %v5647_v10  ;;  %vm2979_vm12 = vmor %vm2977_vm15, %vm2978_vm4 }
 0xeaa   :  { %v2931_v26 = vadd.f32 %v4001_v50, %v2930_v52  ;;  %v2960_v35 = vmul.f32 %v4005_v23, %v2959_v39  ;;  %v2969_v16 = vor.u32 1.1754944e-38, %v2968_v27  ;;  %v2984_v49 = vor.u32 1.1754944e-38, %v2983_v13 }
 0xeab   :  { %v2920_v56 = vsel %vm2919_vm14, %v3999_v42, %v2916_v18  ;;  %v2946_v22 = vadd.f32 %v4003_v21, %v2945_v0  ;;  %v2975_v3 = vmul.f32 %v4007_v17, %v2974_v20  ;;  %v2989_v29 = vsub.f32 1.0, %v2988_v55 }
 0xeac   :  { %v2925_v33 = vsel %vm5654_vm8, %v2924_v59, %v2920_v56  ;;  %v2935_v7 = vsel %vm2934_vm5, %v4001_v50, %v2931_v26  ;;  %v2961_v6 = vadd.f32 %v4005_v23, %v2960_v35  ;;  %vm5704_vm8 = vcmp.eq.f32.partialorder %v2981_v48, 8.507059e+37 }
 0xead   :  { %v2940_v30 = vsel %vm5662_vm0, %v2939_v61, %v2935_v7  ;;  %3032 = vst.msk [vmem:[%s5771_s12] sm:$0xff] %vm6071_vm9, %v2925_v33  ;;  %v2950_v14 = vsel %vm2949_vm7, %v4003_v21, %v2946_v22  ;;  %vm6074_vm0 = vmmov %vm6071_vm9  ;;  %v2976_v25 = vadd.f32 %v4007_v17, %v2975_v3  ;;  %v2996_v45 = vand.u32 2147483647, %v5647_v10  ;;  %v4011_v28 = vpop.eup %4010 }
 0xeae   :  { %3033 = vst.msk [vmem:[%s5771_s12 + $0x8] sm:$0xff] %vm6074_vm0, %v2940_v30  ;;  %v2955_v15 = vsel %vm5672_vm1, %v2954_v54, %v2950_v14  ;;  %v2965_v34 = vsel %vm2964_vm11, %v4005_v23, %v2961_v6  ;;  %v2998_v63 = vand.u32 2147483648, %v5647_v10  ;;  %4012 = vrcp.f32 %v5668_v57  ;;  %vm6075_vm10 = vmmov %vm6074_vm0 }
 0xeaf   :  { %3034 = vst.msk [vmem:[%s5771_s12 + $0x10] sm:$0xff] %vm6075_vm10, %v2955_v15  ;;  %v2970_v8 = vsel %vm5680_vm6, %v2969_v16, %v2965_v34  ;;  %v2980_v37 = vsel %vm2979_vm12, %v4007_v17, %v2976_v25  ;;  %v2990_v9 = vmul.f32 %v4009_v24, %v2989_v29  ;;  %vm2993_vm1 = vweird.f32 %v4009_v24  ;;  %vm6076_vm2 = vmmov %vm6074_vm0 }
 0xeb0   :  { %v2985_v58 = vsel %vm5704_vm8, %v2984_v49, %v2980_v37  ;;  %v3003_v41 = vmul.f32 %v4011_v28, %v5659_v60  ;;  %3035 = vst.msk [vmem:[%s5771_s12 + $0x18] sm:$0xff] %vm6076_vm2, %v2970_v8  ;;  %vm2992_vm15 = vweird.f32 %v5647_v10  ;;  %vm6077_vm14 = vmmov %vm6074_vm0  ;;  %v2999_v5 = vor.u32 1.1754944e-38, %v2998_v63 }
 0xeb1   :  { %v2991_v12 = vadd.f32 %v4009_v24, %v2990_v9  ;;  %3036 = vst.msk [vmem:[%s5771_s12 + $0x20] sm:$0xff] %vm6077_vm14, %v2985_v58  ;;  %vm2994_vm6 = vmor %vm2992_vm15, %vm2993_vm1  ;;  %vm2997_vm13 = vcmp.eq.f32.partialorder %v2996_v45, 8.507059e+37  ;;  %v3013_v50 = vand.u32 2147483648, %v5659_v60  ;;  %vm3008_vm5 = vweird.f32 %v4011_v28 }
 0xeb2   :  { %v3004_v42 = vsub.f32 1.0, %v3003_v41  ;;  %v3011_v19 = vand.u32 2147483647, %v5659_v60  ;;  %vm6078_vm3 = vmmov %vm6074_vm0  ;;  %vm3007_vm7 = vweird.f32 %v5659_v60  ;;  %v3028_v43 = vand.u32 2147483648, %v5668_v57 }
 0xeb3   :  { %v2995_v1 = vsel %vm2994_vm6, %v4009_v24, %v2991_v12  ;;  %vm3009_vm4 = vmor %vm3007_vm7, %vm3008_vm5  ;;  %v3014_v31 = vor.u32 1.1754944e-38, %v3013_v50  ;;  %v3026_v4 = vand.u32 2147483647, %v5668_v57  ;;  %vm3022_vm11 = vweird.f32 %v5668_v57 }
 0xeb4   :  { %v4013_v46 = vpop.eup %4012  ;;  %v3000_v62 = vsel %vm2997_vm13, %v2999_v5, %v2995_v1  ;;  %v3005_v59 = vmul.f32 %v4011_v28, %v3004_v42  ;;  %vm3012_vm9 = vcmp.eq.f32.partialorder %v3011_v19, 8.507059e+37  ;;  %v3029_v60 = vor.u32 1.1754944e-38, %v3028_v43  ;;  %vm6079_vm1 = vmmov %vm6074_vm0 }
 0xeb5   :  { %v3018_v10 = vmul.f32 %v4013_v46, %v5668_v57  ;;  %3037 = vst.msk [vmem:[%s5771_s12 + $0x28] sm:$0xff] %vm6078_vm3, %v3000_v62  ;;  %vm3023_vm8 = vweird.f32 %v4013_v46  ;;  %vm3027_vm10 = vcmp.eq.f32.partialorder %v3026_v4, 8.507059e+37 }
 0xeb6   :  { %v3006_v32 = vadd.f32 %v4011_v28, %v3005_v59  ;;  %vm3024_vm12 = vmor %vm3022_vm11, %vm3023_vm8 }
 0xeb7   :  { %v3019_v38 = vsub.f32 1.0, %v3018_v10 }
 0xeb8   :  { %v3010_v21 = vsel %vm3009_vm4, %v4011_v28, %v3006_v32 }
 0xeb9   :  { %v3015_v61 = vsel %vm3012_vm9, %v3014_v31, %v3010_v21  ;;  %v3020_v2 = vmul.f32 %v4013_v46, %v3019_v38 }
 0xeba   :  { %3038 = vst.msk [vmem:[%s5771_s12 + $0x30] sm:$0xff] %vm6074_vm0, %v3015_v61 }
 0xebb   :  { %v3021_v11 = vadd.f32 %v4013_v46, %v3020_v2 }
 0xebd   :  { %v3025_v27 = vsel %vm3024_vm12, %v4013_v46, %v3021_v11 }
 0xebe   :  { %v3030_v23 = vsel %vm3027_vm10, %v3029_v60, %v3025_v27 }
 0xebf   :  { %3039 = vst.msk [vmem:[%s5771_s12 + $0x38] sm:$0xff] %vm6079_vm1, %v3030_v23 }

</bundles_post_ra>
